<compile_context>
chip_gen: v6e
topology: v6e:2x2x1
jax: 0.10.0
libtpu: 0.0.40
codegen_flags: <defaults>
</compile_context>

<pallas_src>
import jax
import jax.numpy as jnp
from jax.experimental import pallas as pl
from jax.experimental.pallas import tpu as pltpu

AMBIENT_DIM = 64
CODE_DIM = 20
H1 = 512            # encoder hidden 1 / decoder hidden 2
H2 = 256            # encoder hidden 2 / decoder hidden 1
NUM_LAYERS = 10
NUM_STEPS = 2       # 2 grid steps -> megacore sharding on v7x, cheap on v5e/v6e
LAYERS_PER_STEP = NUM_LAYERS // NUM_STEPS


# ------------------------------- fused kernel ------------------------------ #
def irmae_kernel(x_ref, w1_ref, b1_ref, w2_ref, b2_ref, w3_ref, b3_ref,
                 lins_ref, dw1_ref, db1_ref, dw2_ref, db2_ref, dw3_ref, db3_ref,
                 out_ref):
    g = pl.program_id(0)

    # ---- encoder (bf16 weights, f32 accumulation); ~3 MFLOP, recomputed per step
    xb = x_ref[...].astype(jnp.bfloat16)
    h = jnp.dot(xb, w1_ref[...], preferred_element_type=jnp.float32) + b1_ref[...]
    h = jnp.maximum(h, 0.0).astype(jnp.bfloat16)
    h = jnp.dot(h, w2_ref[...], preferred_element_type=jnp.float32) + b2_ref[...]
    h = jnp.maximum(h, 0.0).astype(jnp.bfloat16)
    code = jnp.dot(h, w3_ref[...], preferred_element_type=jnp.float32) + b3_ref[...]

    # ---- 10 chained bias-free 20x20 linears (exact original associativity)
    codes = []
    cur = code
    for i in range(NUM_LAYERS):
        cur = jnp.dot(cur, lins_ref[i], preferred_element_type=jnp.float32)
        codes.append(cur)

    # ---- this grid step's LAYERS_PER_STEP independent decoders
    for j in range(LAYERS_PER_STEP):
        # select code for global layer g*LAYERS_PER_STEP + j (static structure)
        c = codes[j]
        for s in range(1, NUM_STEPS):
            c = jnp.where(g == s, codes[s * LAYERS_PER_STEP + j], c)
        c = c.astype(jnp.bfloat16)                                        # (B, 20)
        d = jnp.dot(c, dw1_ref[j], preferred_element_type=jnp.float32) + db1_ref[j]
        d = jnp.maximum(d, 0.0).astype(jnp.bfloat16)                      # (B, 256)
        d = jnp.dot(d, dw2_ref[j], preferred_element_type=jnp.float32) + db2_ref[j]
        d = jnp.maximum(d, 0.0).astype(jnp.bfloat16)                      # (B, 512)
        out_ref[j] = (jnp.dot(d, dw3_ref[j], preferred_element_type=jnp.float32)
                      + db3_ref[j])                                       # (B, 64)


def run_irmae(x, p):
    B = x.shape[0]
    const2 = lambda g: (0, 0)        # loaded once, VMEM-resident
    const3 = lambda g: (0, 0, 0)
    per_step = lambda g: (g, 0, 0)   # 5 decoder layers per grid step

    xhat = pl.pallas_call(
        irmae_kernel,
        out_shape=jax.ShapeDtypeStruct((NUM_LAYERS, B, AMBIENT_DIM), jnp.float32),
        grid=(NUM_STEPS,),
        in_specs=[
            pl.BlockSpec((B, AMBIENT_DIM), const2),                 # x
            pl.BlockSpec((AMBIENT_DIM, H1), const2),                # w1 (bf16)
            pl.BlockSpec((1, H1), const2),                          # b1
            pl.BlockSpec((H1, H2), const2),                         # w2 (bf16)
            pl.BlockSpec((1, H2), const2),                          # b2
            pl.BlockSpec((H2, CODE_DIM), const2),                   # w3 (bf16)
            pl.BlockSpec((1, CODE_DIM), const2),                    # b3
            pl.BlockSpec((NUM_LAYERS, CODE_DIM, CODE_DIM), const3), # lins (f32)
            pl.BlockSpec((LAYERS_PER_STEP, CODE_DIM, H2), per_step),        # dw1
            pl.BlockSpec((LAYERS_PER_STEP, 1, H2), per_step),               # db1
            pl.BlockSpec((LAYERS_PER_STEP, H2, H1), per_step),              # dw2
            pl.BlockSpec((LAYERS_PER_STEP, 1, H1), per_step),               # db2
            pl.BlockSpec((LAYERS_PER_STEP, H1, AMBIENT_DIM), per_step),     # dw3
            pl.BlockSpec((LAYERS_PER_STEP, 1, AMBIENT_DIM), per_step),      # db3
        ],
        out_specs=pl.BlockSpec((LAYERS_PER_STEP, B, AMBIENT_DIM), per_step),
        compiler_params=pltpu.CompilerParams(
            dimension_semantics=("parallel",),   # decoders are independent
            vmem_limit_bytes=32 << 20,           # working set ~4-5 MiB; safe on all gens
        ),
    )(x, p["w1"], p["b1"], p["w2"], p["b2"], p["w3"], p["b3"], p["lins"],
      p["dw1"], p["db1"], p["dw2"], p["db2"], p["dw3"], p["db3"])
    return xhat


# ------------------------------ parameter init ----------------------------- #
def _uniform(key, shape, fan_in, dtype=jnp.float32):
    bound = 1.0 / jnp.sqrt(jnp.float32(fan_in))
    return jax.random.uniform(key, shape, jnp.float32, -bound, bound).astype(dtype)


def init_params(key):
    ks = jax.random.split(key, 16)
    p = {}
    # encoder: bf16 weights (halves HBM traffic), f32 biases
    p["w1"] = _uniform(ks[0], (AMBIENT_DIM, H1), AMBIENT_DIM, jnp.bfloat16)
    p["b1"] = _uniform(ks[1], (1, H1), AMBIENT_DIM)
    p["w2"] = _uniform(ks[2], (H1, H2), H1, jnp.bfloat16)
    p["b2"] = _uniform(ks[3], (1, H2), H1)
    p["w3"] = _uniform(ks[4], (H2, CODE_DIM), H2, jnp.bfloat16)
    p["b3"] = _uniform(ks[5], (1, CODE_DIM), H2)
    # 10 bias-free code-space linears, stacked (f32, tiny: 16 KB)
    p["lins"] = _uniform(ks[6], (NUM_LAYERS, CODE_DIM, CODE_DIM), CODE_DIM)
    # 10 decoders, stacked along axis 0: bf16 weights, f32 biases as (L, 1, H)
    p["dw1"] = _uniform(ks[7], (NUM_LAYERS, CODE_DIM, H2), CODE_DIM, jnp.bfloat16)
    p["db1"] = _uniform(ks[8], (NUM_LAYERS, 1, H2), CODE_DIM)
    p["dw2"] = _uniform(ks[9], (NUM_LAYERS, H2, H1), H2, jnp.bfloat16)
    p["db2"] = _uniform(ks[10], (NUM_LAYERS, 1, H1), H2)
    p["dw3"] = _uniform(ks[11], (NUM_LAYERS, H1, AMBIENT_DIM), H1, jnp.bfloat16)
    p["db3"] = _uniform(ks[12], (NUM_LAYERS, 1, AMBIENT_DIM), H1)
    return p


# ------------------------------ full forward ------------------------------- #
@jax.jit
def irmae_wd_b_forward(x, params):
    xhat = run_irmae(x, params)
    # List of 10 arrays, matching the PyTorch forward's return signature.
    return [xhat[i] for i in range(NUM_LAYERS)]


# ------------------------------ pure-JAX ref -------------------------------- #
def reference_forward(x, p):
    # Mirrors the PyTorch math using the same bf16 weights / bf16 activations
    # with f32 accumulation as the kernel.
    xb = x.astype(jnp.bfloat16)
    h = jnp.maximum(jnp.dot(xb, p["w1"], preferred_element_type=jnp.float32)
                    + p["b1"], 0.0)
    h = jnp.maximum(jnp.dot(h.astype(jnp.bfloat16), p["w2"],
                            preferred_element_type=jnp.float32) + p["b2"], 0.0)
    code = jnp.dot(h.astype(jnp.bfloat16), p["w3"],
                   preferred_element_type=jnp.float32) + p["b3"]
    outs, cur = [], code
    for i in range(NUM_LAYERS):
        cur = jnp.dot(cur, p["lins"][i], preferred_element_type=jnp.float32)
        d = jnp.maximum(jnp.dot(cur.astype(jnp.bfloat16), p["dw1"][i],
                                preferred_element_type=jnp.float32) + p["db1"][i], 0.0)
        d = jnp.maximum(jnp.dot(d.astype(jnp.bfloat16), p["dw2"][i],
                                preferred_element_type=jnp.float32) + p["db2"][i], 0.0)
        outs.append(jnp.dot(d.astype(jnp.bfloat16), p["dw3"][i],
                            preferred_element_type=jnp.float32) + p["db3"][i])
    return outs


if __name__ == "__main__":
    key = jax.random.PRNGKey(0)
    pkey, xkey = jax.random.split(key)
    params = init_params(pkey)

    B = 8  # kernel is B-agnostic; runtime is overhead/DMA-bound at small B
    x = jax.random.normal(xkey, (B, AMBIENT_DIM), jnp.float32)

    outs = irmae_wd_b_forward(x, params)
    outs = [jax.block_until_ready(o) for o in outs]

    refs = reference_forward(x, params)
    for o, r in zip(outs, refs):
        assert o.shape == (B, AMBIENT_DIM)
        max_err = float(jnp.max(jnp.abs(o - r)))
        assert max_err < 1e-2, f"mismatch: {max_err}"

    print("KERNEL_OK")
</pallas_src>

<mosaic_0001>
module attributes {stable_mosaic.version = 11 : i64} {
  func.func @irmae_kernel(%arg0: i32, %arg1: memref<8x64xf32, #tpu.memory_space<vmem>>, %arg2: memref<64x512xbf16, #tpu.memory_space<vmem>>, %arg3: memref<1x512xf32, #tpu.memory_space<vmem>>, %arg4: memref<512x256xbf16, #tpu.memory_space<vmem>>, %arg5: memref<1x256xf32, #tpu.memory_space<vmem>>, %arg6: memref<256x20xbf16, #tpu.memory_space<vmem>>, %arg7: memref<1x20xf32, #tpu.memory_space<vmem>>, %arg8: memref<10x20x20xf32, #tpu.memory_space<vmem>>, %arg9: memref<5x20x256xbf16, #tpu.memory_space<vmem>>, %arg10: memref<5x1x256xf32, #tpu.memory_space<vmem>>, %arg11: memref<5x256x512xbf16, #tpu.memory_space<vmem>>, %arg12: memref<5x1x512xf32, #tpu.memory_space<vmem>>, %arg13: memref<5x512x64xbf16, #tpu.memory_space<vmem>>, %arg14: memref<5x1x64xf32, #tpu.memory_space<vmem>>, %arg15: memref<5x8x64xf32, #tpu.memory_space<vmem>>) attributes {dimension_semantics = [#tpu.dimension_semantics<parallel>], iteration_bounds = array<i64: 2>, scalar_prefetch = 0 : i64, scratch_operands = 0 : i64, tpu.core_type = #tpu.core_type<tc>, window_params = [{pipeline_mode = #tpu.pipeline_mode<synchronous>, transform_indices = @transform_0, window_bounds = array<i64: 8, 64>}, {pipeline_mode = #tpu.pipeline_mode<synchronous>, transform_indices = @transform_1, window_bounds = array<i64: 64, 512>}, {pipeline_mode = #tpu.pipeline_mode<synchronous>, transform_indices = @transform_2, window_bounds = array<i64: 1, 512>}, {pipeline_mode = #tpu.pipeline_mode<synchronous>, transform_indices = @transform_3, window_bounds = array<i64: 512, 256>}, {pipeline_mode = #tpu.pipeline_mode<synchronous>, transform_indices = @transform_4, window_bounds = array<i64: 1, 256>}, {pipeline_mode = #tpu.pipeline_mode<synchronous>, transform_indices = @transform_5, window_bounds = array<i64: 256, 20>}, {pipeline_mode = #tpu.pipeline_mode<synchronous>, transform_indices = @transform_6, window_bounds = array<i64: 1, 20>}, {pipeline_mode = #tpu.pipeline_mode<synchronous>, transform_indices = @transform_7, window_bounds = array<i64: 10, 20, 20>}, {transform_indices = @transform_8, window_bounds = array<i64: 5, 20, 256>}, {transform_indices = @transform_9, window_bounds = array<i64: 5, 1, 256>}, {transform_indices = @transform_10, window_bounds = array<i64: 5, 256, 512>}, {transform_indices = @transform_11, window_bounds = array<i64: 5, 1, 512>}, {transform_indices = @transform_12, window_bounds = array<i64: 5, 512, 64>}, {transform_indices = @transform_13, window_bounds = array<i64: 5, 1, 64>}, {transform_indices = @transform_14, window_bounds = array<i64: 5, 8, 64>}]} {
    %c0 = arith.constant 0 : index
    %c0_0 = arith.constant 0 : index
    %0 = vector.load %arg1[%c0, %c0_0] : memref<8x64xf32, #tpu.memory_space<vmem>>, vector<8x64xf32>
    %1 = arith.truncf %0 : vector<8x64xf32> to vector<8x64xbf16>
    %c0_1 = arith.constant 0 : index
    %c0_2 = arith.constant 0 : index
    %2 = vector.load %arg2[%c0_1, %c0_2] : memref<64x512xbf16, #tpu.memory_space<vmem>>, vector<64x512xbf16>
    %cst = arith.constant dense<0.000000e+00> : vector<8x512xf32>
    %3 = tpu.matmul %1, %2, %cst {dimension_numbers = #tpu.dot_dimension_numbers<[1], [0], [0], [1], [0, 0, 1, 1], [], []>} : vector<8x64xbf16>, vector<64x512xbf16>, vector<8x512xf32> -> vector<8x512xf32>
    %c0_3 = arith.constant 0 : index
    %c0_4 = arith.constant 0 : index
    %4 = vector.load %arg3[%c0_3, %c0_4] : memref<1x512xf32, #tpu.memory_space<vmem>>, vector<1x512xf32>
    %5 = vector.broadcast %4 : vector<1x512xf32> to vector<8x512xf32>
    %6 = arith.addf %3, %5 : vector<8x512xf32>
    %cst_5 = arith.constant 0.000000e+00 : f32
    %7 = vector.broadcast %cst_5 : f32 to vector<8x512xf32>
    %8 = arith.maximumf %6, %7 : vector<8x512xf32>
    %9 = arith.truncf %8 : vector<8x512xf32> to vector<8x512xbf16>
    %c0_6 = arith.constant 0 : index
    %c0_7 = arith.constant 0 : index
    %10 = vector.load %arg4[%c0_6, %c0_7] : memref<512x256xbf16, #tpu.memory_space<vmem>>, vector<512x256xbf16>
    %cst_8 = arith.constant dense<0.000000e+00> : vector<8x256xf32>
    %11 = tpu.matmul %9, %10, %cst_8 {dimension_numbers = #tpu.dot_dimension_numbers<[1], [0], [0], [1], [0, 0, 1, 1], [], []>} : vector<8x512xbf16>, vector<512x256xbf16>, vector<8x256xf32> -> vector<8x256xf32>
    %c0_9 = arith.constant 0 : index
    %c0_10 = arith.constant 0 : index
    %12 = vector.load %arg5[%c0_9, %c0_10] : memref<1x256xf32, #tpu.memory_space<vmem>>, vector<1x256xf32>
    %13 = vector.broadcast %12 : vector<1x256xf32> to vector<8x256xf32>
    %14 = arith.addf %11, %13 : vector<8x256xf32>
    %cst_11 = arith.constant 0.000000e+00 : f32
    %15 = vector.broadcast %cst_11 : f32 to vector<8x256xf32>
    %16 = arith.maximumf %14, %15 : vector<8x256xf32>
    %17 = arith.truncf %16 : vector<8x256xf32> to vector<8x256xbf16>
    %c0_12 = arith.constant 0 : index
    %c0_13 = arith.constant 0 : index
    %18 = vector.load %arg6[%c0_12, %c0_13] : memref<256x20xbf16, #tpu.memory_space<vmem>>, vector<256x20xbf16>
    %cst_14 = arith.constant dense<0.000000e+00> : vector<8x20xf32>
    %19 = tpu.matmul %17, %18, %cst_14 {dimension_numbers = #tpu.dot_dimension_numbers<[1], [0], [0], [1], [0, 0, 1, 1], [], []>} : vector<8x256xbf16>, vector<256x20xbf16>, vector<8x20xf32> -> vector<8x20xf32>
    %c0_15 = arith.constant 0 : index
    %c0_16 = arith.constant 0 : index
    %20 = vector.load %arg7[%c0_15, %c0_16] : memref<1x20xf32, #tpu.memory_space<vmem>>, vector<1x20xf32>
    %21 = vector.broadcast %20 : vector<1x20xf32> to vector<8x20xf32>
    %22 = arith.addf %19, %21 : vector<8x20xf32>
    %c0_17 = arith.constant 0 : index
    %c0_18 = arith.constant 0 : index
    %c0_19 = arith.constant 0 : index
    %23 = vector.load %arg8[%c0_17, %c0_18, %c0_19] : memref<10x20x20xf32, #tpu.memory_space<vmem>>, vector<1x20x20xf32>
    %24 = vector.shape_cast %23 : vector<1x20x20xf32> to vector<20x20xf32>
    %cst_20 = arith.constant dense<0.000000e+00> : vector<8x20xf32>
    %25 = tpu.matmul %22, %24, %cst_20 {dimension_numbers = #tpu.dot_dimension_numbers<[1], [0], [0], [1], [0, 0, 1, 1], [], []>} : vector<8x20xf32>, vector<20x20xf32>, vector<8x20xf32> -> vector<8x20xf32>
    %c1 = arith.constant 1 : index
    %c0_21 = arith.constant 0 : index
    %c0_22 = arith.constant 0 : index
    %26 = vector.load %arg8[%c1, %c0_21, %c0_22] : memref<10x20x20xf32, #tpu.memory_space<vmem>>, vector<1x20x20xf32>
    %27 = vector.shape_cast %26 : vector<1x20x20xf32> to vector<20x20xf32>
    %cst_23 = arith.constant dense<0.000000e+00> : vector<8x20xf32>
    %28 = tpu.matmul %25, %27, %cst_23 {dimension_numbers = #tpu.dot_dimension_numbers<[1], [0], [0], [1], [0, 0, 1, 1], [], []>} : vector<8x20xf32>, vector<20x20xf32>, vector<8x20xf32> -> vector<8x20xf32>
    %c2 = arith.constant 2 : index
    %c0_24 = arith.constant 0 : index
    %c0_25 = arith.constant 0 : index
    %29 = vector.load %arg8[%c2, %c0_24, %c0_25] : memref<10x20x20xf32, #tpu.memory_space<vmem>>, vector<1x20x20xf32>
    %30 = vector.shape_cast %29 : vector<1x20x20xf32> to vector<20x20xf32>
    %cst_26 = arith.constant dense<0.000000e+00> : vector<8x20xf32>
    %31 = tpu.matmul %28, %30, %cst_26 {dimension_numbers = #tpu.dot_dimension_numbers<[1], [0], [0], [1], [0, 0, 1, 1], [], []>} : vector<8x20xf32>, vector<20x20xf32>, vector<8x20xf32> -> vector<8x20xf32>
    %c3 = arith.constant 3 : index
    %c0_27 = arith.constant 0 : index
    %c0_28 = arith.constant 0 : index
    %32 = vector.load %arg8[%c3, %c0_27, %c0_28] : memref<10x20x20xf32, #tpu.memory_space<vmem>>, vector<1x20x20xf32>
    %33 = vector.shape_cast %32 : vector<1x20x20xf32> to vector<20x20xf32>
    %cst_29 = arith.constant dense<0.000000e+00> : vector<8x20xf32>
    %34 = tpu.matmul %31, %33, %cst_29 {dimension_numbers = #tpu.dot_dimension_numbers<[1], [0], [0], [1], [0, 0, 1, 1], [], []>} : vector<8x20xf32>, vector<20x20xf32>, vector<8x20xf32> -> vector<8x20xf32>
    %c4 = arith.constant 4 : index
    %c0_30 = arith.constant 0 : index
    %c0_31 = arith.constant 0 : index
    %35 = vector.load %arg8[%c4, %c0_30, %c0_31] : memref<10x20x20xf32, #tpu.memory_space<vmem>>, vector<1x20x20xf32>
    %36 = vector.shape_cast %35 : vector<1x20x20xf32> to vector<20x20xf32>
    %cst_32 = arith.constant dense<0.000000e+00> : vector<8x20xf32>
    %37 = tpu.matmul %34, %36, %cst_32 {dimension_numbers = #tpu.dot_dimension_numbers<[1], [0], [0], [1], [0, 0, 1, 1], [], []>} : vector<8x20xf32>, vector<20x20xf32>, vector<8x20xf32> -> vector<8x20xf32>
    %c5 = arith.constant 5 : index
    %c0_33 = arith.constant 0 : index
    %c0_34 = arith.constant 0 : index
    %38 = vector.load %arg8[%c5, %c0_33, %c0_34] : memref<10x20x20xf32, #tpu.memory_space<vmem>>, vector<1x20x20xf32>
    %39 = vector.shape_cast %38 : vector<1x20x20xf32> to vector<20x20xf32>
    %cst_35 = arith.constant dense<0.000000e+00> : vector<8x20xf32>
    %40 = tpu.matmul %37, %39, %cst_35 {dimension_numbers = #tpu.dot_dimension_numbers<[1], [0], [0], [1], [0, 0, 1, 1], [], []>} : vector<8x20xf32>, vector<20x20xf32>, vector<8x20xf32> -> vector<8x20xf32>
    %c6 = arith.constant 6 : index
    %c0_36 = arith.constant 0 : index
    %c0_37 = arith.constant 0 : index
    %41 = vector.load %arg8[%c6, %c0_36, %c0_37] : memref<10x20x20xf32, #tpu.memory_space<vmem>>, vector<1x20x20xf32>
    %42 = vector.shape_cast %41 : vector<1x20x20xf32> to vector<20x20xf32>
    %cst_38 = arith.constant dense<0.000000e+00> : vector<8x20xf32>
    %43 = tpu.matmul %40, %42, %cst_38 {dimension_numbers = #tpu.dot_dimension_numbers<[1], [0], [0], [1], [0, 0, 1, 1], [], []>} : vector<8x20xf32>, vector<20x20xf32>, vector<8x20xf32> -> vector<8x20xf32>
    %c7 = arith.constant 7 : index
    %c0_39 = arith.constant 0 : index
    %c0_40 = arith.constant 0 : index
    %44 = vector.load %arg8[%c7, %c0_39, %c0_40] : memref<10x20x20xf32, #tpu.memory_space<vmem>>, vector<1x20x20xf32>
    %45 = vector.shape_cast %44 : vector<1x20x20xf32> to vector<20x20xf32>
    %cst_41 = arith.constant dense<0.000000e+00> : vector<8x20xf32>
    %46 = tpu.matmul %43, %45, %cst_41 {dimension_numbers = #tpu.dot_dimension_numbers<[1], [0], [0], [1], [0, 0, 1, 1], [], []>} : vector<8x20xf32>, vector<20x20xf32>, vector<8x20xf32> -> vector<8x20xf32>
    %c8 = arith.constant 8 : index
    %c0_42 = arith.constant 0 : index
    %c0_43 = arith.constant 0 : index
    %47 = vector.load %arg8[%c8, %c0_42, %c0_43] : memref<10x20x20xf32, #tpu.memory_space<vmem>>, vector<1x20x20xf32>
    %48 = vector.shape_cast %47 : vector<1x20x20xf32> to vector<20x20xf32>
    %cst_44 = arith.constant dense<0.000000e+00> : vector<8x20xf32>
    %49 = tpu.matmul %46, %48, %cst_44 {dimension_numbers = #tpu.dot_dimension_numbers<[1], [0], [0], [1], [0, 0, 1, 1], [], []>} : vector<8x20xf32>, vector<20x20xf32>, vector<8x20xf32> -> vector<8x20xf32>
    %c9 = arith.constant 9 : index
    %c0_45 = arith.constant 0 : index
    %c0_46 = arith.constant 0 : index
    %50 = vector.load %arg8[%c9, %c0_45, %c0_46] : memref<10x20x20xf32, #tpu.memory_space<vmem>>, vector<1x20x20xf32>
    %51 = vector.shape_cast %50 : vector<1x20x20xf32> to vector<20x20xf32>
    %cst_47 = arith.constant dense<0.000000e+00> : vector<8x20xf32>
    %52 = tpu.matmul %49, %51, %cst_47 {dimension_numbers = #tpu.dot_dimension_numbers<[1], [0], [0], [1], [0, 0, 1, 1], [], []>} : vector<8x20xf32>, vector<20x20xf32>, vector<8x20xf32> -> vector<8x20xf32>
    %c1_i32 = arith.constant 1 : i32
    %53 = arith.cmpi eq, %arg0, %c1_i32 : i32
    %54 = arith.select %53, %40, %25 : vector<8x20xf32>
    %55 = arith.truncf %54 : vector<8x20xf32> to vector<8x20xbf16>
    %c0_48 = arith.constant 0 : index
    %c0_49 = arith.constant 0 : index
    %c0_50 = arith.constant 0 : index
    %56 = vector.load %arg9[%c0_48, %c0_49, %c0_50] : memref<5x20x256xbf16, #tpu.memory_space<vmem>>, vector<1x20x256xbf16>
    %57 = vector.shape_cast %56 : vector<1x20x256xbf16> to vector<20x256xbf16>
    %cst_51 = arith.constant dense<0.000000e+00> : vector<8x256xf32>
    %58 = tpu.matmul %55, %57, %cst_51 {dimension_numbers = #tpu.dot_dimension_numbers<[1], [0], [0], [1], [0, 0, 1, 1], [], []>} : vector<8x20xbf16>, vector<20x256xbf16>, vector<8x256xf32> -> vector<8x256xf32>
    %c0_52 = arith.constant 0 : index
    %c0_53 = arith.constant 0 : index
    %c0_54 = arith.constant 0 : index
    %59 = vector.load %arg10[%c0_52, %c0_53, %c0_54] : memref<5x1x256xf32, #tpu.memory_space<vmem>>, vector<1x1x256xf32>
    %60 = vector.shape_cast %59 : vector<1x1x256xf32> to vector<1x256xf32>
    %61 = vector.broadcast %60 : vector<1x256xf32> to vector<8x256xf32>
    %62 = arith.addf %58, %61 : vector<8x256xf32>
    %cst_55 = arith.constant 0.000000e+00 : f32
    %63 = vector.broadcast %cst_55 : f32 to vector<8x256xf32>
    %64 = arith.maximumf %62, %63 : vector<8x256xf32>
    %65 = arith.truncf %64 : vector<8x256xf32> to vector<8x256xbf16>
    %c0_56 = arith.constant 0 : index
    %c0_57 = arith.constant 0 : index
    %c0_58 = arith.constant 0 : index
    %66 = vector.load %arg11[%c0_56, %c0_57, %c0_58] : memref<5x256x512xbf16, #tpu.memory_space<vmem>>, vector<1x256x512xbf16>
    %67 = vector.shape_cast %66 : vector<1x256x512xbf16> to vector<256x512xbf16>
    %cst_59 = arith.constant dense<0.000000e+00> : vector<8x512xf32>
    %68 = tpu.matmul %65, %67, %cst_59 {dimension_numbers = #tpu.dot_dimension_numbers<[1], [0], [0], [1], [0, 0, 1, 1], [], []>} : vector<8x256xbf16>, vector<256x512xbf16>, vector<8x512xf32> -> vector<8x512xf32>
    %c0_60 = arith.constant 0 : index
    %c0_61 = arith.constant 0 : index
    %c0_62 = arith.constant 0 : index
    %69 = vector.load %arg12[%c0_60, %c0_61, %c0_62] : memref<5x1x512xf32, #tpu.memory_space<vmem>>, vector<1x1x512xf32>
    %70 = vector.shape_cast %69 : vector<1x1x512xf32> to vector<1x512xf32>
    %71 = vector.broadcast %70 : vector<1x512xf32> to vector<8x512xf32>
    %72 = arith.addf %68, %71 : vector<8x512xf32>
    %cst_63 = arith.constant 0.000000e+00 : f32
    %73 = vector.broadcast %cst_63 : f32 to vector<8x512xf32>
    %74 = arith.maximumf %72, %73 : vector<8x512xf32>
    %75 = arith.truncf %74 : vector<8x512xf32> to vector<8x512xbf16>
    %c0_64 = arith.constant 0 : index
    %c0_65 = arith.constant 0 : index
    %c0_66 = arith.constant 0 : index
    %76 = vector.load %arg13[%c0_64, %c0_65, %c0_66] : memref<5x512x64xbf16, #tpu.memory_space<vmem>>, vector<1x512x64xbf16>
    %77 = vector.shape_cast %76 : vector<1x512x64xbf16> to vector<512x64xbf16>
    %cst_67 = arith.constant dense<0.000000e+00> : vector<8x64xf32>
    %78 = tpu.matmul %75, %77, %cst_67 {dimension_numbers = #tpu.dot_dimension_numbers<[1], [0], [0], [1], [0, 0, 1, 1], [], []>} : vector<8x512xbf16>, vector<512x64xbf16>, vector<8x64xf32> -> vector<8x64xf32>
    %c0_68 = arith.constant 0 : index
    %c0_69 = arith.constant 0 : index
    %c0_70 = arith.constant 0 : index
    %79 = vector.load %arg14[%c0_68, %c0_69, %c0_70] : memref<5x1x64xf32, #tpu.memory_space<vmem>>, vector<1x1x64xf32>
    %80 = vector.shape_cast %79 : vector<1x1x64xf32> to vector<1x64xf32>
    %81 = vector.broadcast %80 : vector<1x64xf32> to vector<8x64xf32>
    %82 = arith.addf %78, %81 : vector<8x64xf32>
    %c0_71 = arith.constant 0 : index
    %c0_72 = arith.constant 0 : index
    %c0_73 = arith.constant 0 : index
    %83 = vector.load %arg15[%c0_71, %c0_72, %c0_73] : memref<5x8x64xf32, #tpu.memory_space<vmem>>, vector<1x8x64xf32>
    %84 = vector.shape_cast %83 : vector<1x8x64xf32> to vector<8x64xf32>
    %85 = vector.shape_cast %82 : vector<8x64xf32> to vector<1x8x64xf32>
    tpu.vector_store %arg15[%c0_71, %c0_72, %c0_73], %85 {strides = array<i32>} : memref<5x8x64xf32, #tpu.memory_space<vmem>>, vector<1x8x64xf32>,
    %c1_i32_74 = arith.constant 1 : i32
    %86 = arith.cmpi eq, %arg0, %c1_i32_74 : i32
    %87 = arith.select %86, %43, %28 : vector<8x20xf32>
    %88 = arith.truncf %87 : vector<8x20xf32> to vector<8x20xbf16>
    %c1_75 = arith.constant 1 : index
    %c0_76 = arith.constant 0 : index
    %c0_77 = arith.constant 0 : index
    %89 = vector.load %arg9[%c1_75, %c0_76, %c0_77] : memref<5x20x256xbf16, #tpu.memory_space<vmem>>, vector<1x20x256xbf16>
    %90 = vector.shape_cast %89 : vector<1x20x256xbf16> to vector<20x256xbf16>
    %cst_78 = arith.constant dense<0.000000e+00> : vector<8x256xf32>
    %91 = tpu.matmul %88, %90, %cst_78 {dimension_numbers = #tpu.dot_dimension_numbers<[1], [0], [0], [1], [0, 0, 1, 1], [], []>} : vector<8x20xbf16>, vector<20x256xbf16>, vector<8x256xf32> -> vector<8x256xf32>
    %c1_79 = arith.constant 1 : index
    %c0_80 = arith.constant 0 : index
    %c0_81 = arith.constant 0 : index
    %92 = vector.load %arg10[%c1_79, %c0_80, %c0_81] : memref<5x1x256xf32, #tpu.memory_space<vmem>>, vector<1x1x256xf32>
    %93 = vector.shape_cast %92 : vector<1x1x256xf32> to vector<1x256xf32>
    %94 = vector.broadcast %93 : vector<1x256xf32> to vector<8x256xf32>
    %95 = arith.addf %91, %94 : vector<8x256xf32>
    %cst_82 = arith.constant 0.000000e+00 : f32
    %96 = vector.broadcast %cst_82 : f32 to vector<8x256xf32>
    %97 = arith.maximumf %95, %96 : vector<8x256xf32>
    %98 = arith.truncf %97 : vector<8x256xf32> to vector<8x256xbf16>
    %c1_83 = arith.constant 1 : index
    %c0_84 = arith.constant 0 : index
    %c0_85 = arith.constant 0 : index
    %99 = vector.load %arg11[%c1_83, %c0_84, %c0_85] : memref<5x256x512xbf16, #tpu.memory_space<vmem>>, vector<1x256x512xbf16>
    %100 = vector.shape_cast %99 : vector<1x256x512xbf16> to vector<256x512xbf16>
    %cst_86 = arith.constant dense<0.000000e+00> : vector<8x512xf32>
    %101 = tpu.matmul %98, %100, %cst_86 {dimension_numbers = #tpu.dot_dimension_numbers<[1], [0], [0], [1], [0, 0, 1, 1], [], []>} : vector<8x256xbf16>, vector<256x512xbf16>, vector<8x512xf32> -> vector<8x512xf32>
    %c1_87 = arith.constant 1 : index
    %c0_88 = arith.constant 0 : index
    %c0_89 = arith.constant 0 : index
    %102 = vector.load %arg12[%c1_87, %c0_88, %c0_89] : memref<5x1x512xf32, #tpu.memory_space<vmem>>, vector<1x1x512xf32>
    %103 = vector.shape_cast %102 : vector<1x1x512xf32> to vector<1x512xf32>
    %104 = vector.broadcast %103 : vector<1x512xf32> to vector<8x512xf32>
    %105 = arith.addf %101, %104 : vector<8x512xf32>
    %cst_90 = arith.constant 0.000000e+00 : f32
    %106 = vector.broadcast %cst_90 : f32 to vector<8x512xf32>
    %107 = arith.maximumf %105, %106 : vector<8x512xf32>
    %108 = arith.truncf %107 : vector<8x512xf32> to vector<8x512xbf16>
    %c1_91 = arith.constant 1 : index
    %c0_92 = arith.constant 0 : index
    %c0_93 = arith.constant 0 : index
    %109 = vector.load %arg13[%c1_91, %c0_92, %c0_93] : memref<5x512x64xbf16, #tpu.memory_space<vmem>>, vector<1x512x64xbf16>
    %110 = vector.shape_cast %109 : vector<1x512x64xbf16> to vector<512x64xbf16>
    %cst_94 = arith.constant dense<0.000000e+00> : vector<8x64xf32>
    %111 = tpu.matmul %108, %110, %cst_94 {dimension_numbers = #tpu.dot_dimension_numbers<[1], [0], [0], [1], [0, 0, 1, 1], [], []>} : vector<8x512xbf16>, vector<512x64xbf16>, vector<8x64xf32> -> vector<8x64xf32>
    %c1_95 = arith.constant 1 : index
    %c0_96 = arith.constant 0 : index
    %c0_97 = arith.constant 0 : index
    %112 = vector.load %arg14[%c1_95, %c0_96, %c0_97] : memref<5x1x64xf32, #tpu.memory_space<vmem>>, vector<1x1x64xf32>
    %113 = vector.shape_cast %112 : vector<1x1x64xf32> to vector<1x64xf32>
    %114 = vector.broadcast %113 : vector<1x64xf32> to vector<8x64xf32>
    %115 = arith.addf %111, %114 : vector<8x64xf32>
    %c1_98 = arith.constant 1 : index
    %c0_99 = arith.constant 0 : index
    %c0_100 = arith.constant 0 : index
    %116 = vector.load %arg15[%c1_98, %c0_99, %c0_100] : memref<5x8x64xf32, #tpu.memory_space<vmem>>, vector<1x8x64xf32>
    %117 = vector.shape_cast %116 : vector<1x8x64xf32> to vector<8x64xf32>
    %118 = vector.shape_cast %115 : vector<8x64xf32> to vector<1x8x64xf32>
    tpu.vector_store %arg15[%c1_98, %c0_99, %c0_100], %118 {strides = array<i32>} : memref<5x8x64xf32, #tpu.memory_space<vmem>>, vector<1x8x64xf32>,
    %c1_i32_101 = arith.constant 1 : i32
    %119 = arith.cmpi eq, %arg0, %c1_i32_101 : i32
    %120 = arith.select %119, %46, %31 : vector<8x20xf32>
    %121 = arith.truncf %120 : vector<8x20xf32> to vector<8x20xbf16>
    %c2_102 = arith.constant 2 : index
    %c0_103 = arith.constant 0 : index
    %c0_104 = arith.constant 0 : index
    %122 = vector.load %arg9[%c2_102, %c0_103, %c0_104] : memref<5x20x256xbf16, #tpu.memory_space<vmem>>, vector<1x20x256xbf16>
    %123 = vector.shape_cast %122 : vector<1x20x256xbf16> to vector<20x256xbf16>
    %cst_105 = arith.constant dense<0.000000e+00> : vector<8x256xf32>
    %124 = tpu.matmul %121, %123, %cst_105 {dimension_numbers = #tpu.dot_dimension_numbers<[1], [0], [0], [1], [0, 0, 1, 1], [], []>} : vector<8x20xbf16>, vector<20x256xbf16>, vector<8x256xf32> -> vector<8x256xf32>
    %c2_106 = arith.constant 2 : index
    %c0_107 = arith.constant 0 : index
    %c0_108 = arith.constant 0 : index
    %125 = vector.load %arg10[%c2_106, %c0_107, %c0_108] : memref<5x1x256xf32, #tpu.memory_space<vmem>>, vector<1x1x256xf32>
    %126 = vector.shape_cast %125 : vector<1x1x256xf32> to vector<1x256xf32>
    %127 = vector.broadcast %126 : vector<1x256xf32> to vector<8x256xf32>
    %128 = arith.addf %124, %127 : vector<8x256xf32>
    %cst_109 = arith.constant 0.000000e+00 : f32
    %129 = vector.broadcast %cst_109 : f32 to vector<8x256xf32>
    %130 = arith.maximumf %128, %129 : vector<8x256xf32>
    %131 = arith.truncf %130 : vector<8x256xf32> to vector<8x256xbf16>
    %c2_110 = arith.constant 2 : index
    %c0_111 = arith.constant 0 : index
    %c0_112 = arith.constant 0 : index
    %132 = vector.load %arg11[%c2_110, %c0_111, %c0_112] : memref<5x256x512xbf16, #tpu.memory_space<vmem>>, vector<1x256x512xbf16>
    %133 = vector.shape_cast %132 : vector<1x256x512xbf16> to vector<256x512xbf16>
    %cst_113 = arith.constant dense<0.000000e+00> : vector<8x512xf32>
    %134 = tpu.matmul %131, %133, %cst_113 {dimension_numbers = #tpu.dot_dimension_numbers<[1], [0], [0], [1], [0, 0, 1, 1], [], []>} : vector<8x256xbf16>, vector<256x512xbf16>, vector<8x512xf32> -> vector<8x512xf32>
    %c2_114 = arith.constant 2 : index
    %c0_115 = arith.constant 0 : index
    %c0_116 = arith.constant 0 : index
    %135 = vector.load %arg12[%c2_114, %c0_115, %c0_116] : memref<5x1x512xf32, #tpu.memory_space<vmem>>, vector<1x1x512xf32>
    %136 = vector.shape_cast %135 : vector<1x1x512xf32> to vector<1x512xf32>
    %137 = vector.broadcast %136 : vector<1x512xf32> to vector<8x512xf32>
    %138 = arith.addf %134, %137 : vector<8x512xf32>
    %cst_117 = arith.constant 0.000000e+00 : f32
    %139 = vector.broadcast %cst_117 : f32 to vector<8x512xf32>
    %140 = arith.maximumf %138, %139 : vector<8x512xf32>
    %141 = arith.truncf %140 : vector<8x512xf32> to vector<8x512xbf16>
    %c2_118 = arith.constant 2 : index
    %c0_119 = arith.constant 0 : index
    %c0_120 = arith.constant 0 : index
    %142 = vector.load %arg13[%c2_118, %c0_119, %c0_120] : memref<5x512x64xbf16, #tpu.memory_space<vmem>>, vector<1x512x64xbf16>
    %143 = vector.shape_cast %142 : vector<1x512x64xbf16> to vector<512x64xbf16>
    %cst_121 = arith.constant dense<0.000000e+00> : vector<8x64xf32>
    %144 = tpu.matmul %141, %143, %cst_121 {dimension_numbers = #tpu.dot_dimension_numbers<[1], [0], [0], [1], [0, 0, 1, 1], [], []>} : vector<8x512xbf16>, vector<512x64xbf16>, vector<8x64xf32> -> vector<8x64xf32>
    %c2_122 = arith.constant 2 : index
    %c0_123 = arith.constant 0 : index
    %c0_124 = arith.constant 0 : index
    %145 = vector.load %arg14[%c2_122, %c0_123, %c0_124] : memref<5x1x64xf32, #tpu.memory_space<vmem>>, vector<1x1x64xf32>
    %146 = vector.shape_cast %145 : vector<1x1x64xf32> to vector<1x64xf32>
    %147 = vector.broadcast %146 : vector<1x64xf32> to vector<8x64xf32>
    %148 = arith.addf %144, %147 : vector<8x64xf32>
    %c2_125 = arith.constant 2 : index
    %c0_126 = arith.constant 0 : index
    %c0_127 = arith.constant 0 : index
    %149 = vector.load %arg15[%c2_125, %c0_126, %c0_127] : memref<5x8x64xf32, #tpu.memory_space<vmem>>, vector<1x8x64xf32>
    %150 = vector.shape_cast %149 : vector<1x8x64xf32> to vector<8x64xf32>
    %151 = vector.shape_cast %148 : vector<8x64xf32> to vector<1x8x64xf32>
    tpu.vector_store %arg15[%c2_125, %c0_126, %c0_127], %151 {strides = array<i32>} : memref<5x8x64xf32, #tpu.memory_space<vmem>>, vector<1x8x64xf32>,
    %c1_i32_128 = arith.constant 1 : i32
    %152 = arith.cmpi eq, %arg0, %c1_i32_128 : i32
    %153 = arith.select %152, %49, %34 : vector<8x20xf32>
    %154 = arith.truncf %153 : vector<8x20xf32> to vector<8x20xbf16>
    %c3_129 = arith.constant 3 : index
    %c0_130 = arith.constant 0 : index
    %c0_131 = arith.constant 0 : index
    %155 = vector.load %arg9[%c3_129, %c0_130, %c0_131] : memref<5x20x256xbf16, #tpu.memory_space<vmem>>, vector<1x20x256xbf16>
    %156 = vector.shape_cast %155 : vector<1x20x256xbf16> to vector<20x256xbf16>
    %cst_132 = arith.constant dense<0.000000e+00> : vector<8x256xf32>
    %157 = tpu.matmul %154, %156, %cst_132 {dimension_numbers = #tpu.dot_dimension_numbers<[1], [0], [0], [1], [0, 0, 1, 1], [], []>} : vector<8x20xbf16>, vector<20x256xbf16>, vector<8x256xf32> -> vector<8x256xf32>
    %c3_133 = arith.constant 3 : index
    %c0_134 = arith.constant 0 : index
    %c0_135 = arith.constant 0 : index
    %158 = vector.load %arg10[%c3_133, %c0_134, %c0_135] : memref<5x1x256xf32, #tpu.memory_space<vmem>>, vector<1x1x256xf32>
    %159 = vector.shape_cast %158 : vector<1x1x256xf32> to vector<1x256xf32>
    %160 = vector.broadcast %159 : vector<1x256xf32> to vector<8x256xf32>
    %161 = arith.addf %157, %160 : vector<8x256xf32>
    %cst_136 = arith.constant 0.000000e+00 : f32
    %162 = vector.broadcast %cst_136 : f32 to vector<8x256xf32>
    %163 = arith.maximumf %161, %162 : vector<8x256xf32>
    %164 = arith.truncf %163 : vector<8x256xf32> to vector<8x256xbf16>
    %c3_137 = arith.constant 3 : index
    %c0_138 = arith.constant 0 : index
    %c0_139 = arith.constant 0 : index
    %165 = vector.load %arg11[%c3_137, %c0_138, %c0_139] : memref<5x256x512xbf16, #tpu.memory_space<vmem>>, vector<1x256x512xbf16>
    %166 = vector.shape_cast %165 : vector<1x256x512xbf16> to vector<256x512xbf16>
    %cst_140 = arith.constant dense<0.000000e+00> : vector<8x512xf32>
    %167 = tpu.matmul %164, %166, %cst_140 {dimension_numbers = #tpu.dot_dimension_numbers<[1], [0], [0], [1], [0, 0, 1, 1], [], []>} : vector<8x256xbf16>, vector<256x512xbf16>, vector<8x512xf32> -> vector<8x512xf32>
    %c3_141 = arith.constant 3 : index
    %c0_142 = arith.constant 0 : index
    %c0_143 = arith.constant 0 : index
    %168 = vector.load %arg12[%c3_141, %c0_142, %c0_143] : memref<5x1x512xf32, #tpu.memory_space<vmem>>, vector<1x1x512xf32>
    %169 = vector.shape_cast %168 : vector<1x1x512xf32> to vector<1x512xf32>
    %170 = vector.broadcast %169 : vector<1x512xf32> to vector<8x512xf32>
    %171 = arith.addf %167, %170 : vector<8x512xf32>
    %cst_144 = arith.constant 0.000000e+00 : f32
    %172 = vector.broadcast %cst_144 : f32 to vector<8x512xf32>
    %173 = arith.maximumf %171, %172 : vector<8x512xf32>
    %174 = arith.truncf %173 : vector<8x512xf32> to vector<8x512xbf16>
    %c3_145 = arith.constant 3 : index
    %c0_146 = arith.constant 0 : index
    %c0_147 = arith.constant 0 : index
    %175 = vector.load %arg13[%c3_145, %c0_146, %c0_147] : memref<5x512x64xbf16, #tpu.memory_space<vmem>>, vector<1x512x64xbf16>
    %176 = vector.shape_cast %175 : vector<1x512x64xbf16> to vector<512x64xbf16>
    %cst_148 = arith.constant dense<0.000000e+00> : vector<8x64xf32>
    %177 = tpu.matmul %174, %176, %cst_148 {dimension_numbers = #tpu.dot_dimension_numbers<[1], [0], [0], [1], [0, 0, 1, 1], [], []>} : vector<8x512xbf16>, vector<512x64xbf16>, vector<8x64xf32> -> vector<8x64xf32>
    %c3_149 = arith.constant 3 : index
    %c0_150 = arith.constant 0 : index
    %c0_151 = arith.constant 0 : index
    %178 = vector.load %arg14[%c3_149, %c0_150, %c0_151] : memref<5x1x64xf32, #tpu.memory_space<vmem>>, vector<1x1x64xf32>
    %179 = vector.shape_cast %178 : vector<1x1x64xf32> to vector<1x64xf32>
    %180 = vector.broadcast %179 : vector<1x64xf32> to vector<8x64xf32>
    %181 = arith.addf %177, %180 : vector<8x64xf32>
    %c3_152 = arith.constant 3 : index
    %c0_153 = arith.constant 0 : index
    %c0_154 = arith.constant 0 : index
    %182 = vector.load %arg15[%c3_152, %c0_153, %c0_154] : memref<5x8x64xf32, #tpu.memory_space<vmem>>, vector<1x8x64xf32>
    %183 = vector.shape_cast %182 : vector<1x8x64xf32> to vector<8x64xf32>
    %184 = vector.shape_cast %181 : vector<8x64xf32> to vector<1x8x64xf32>
    tpu.vector_store %arg15[%c3_152, %c0_153, %c0_154], %184 {strides = array<i32>} : memref<5x8x64xf32, #tpu.memory_space<vmem>>, vector<1x8x64xf32>,
    %c1_i32_155 = arith.constant 1 : i32
    %185 = arith.cmpi eq, %arg0, %c1_i32_155 : i32
    %186 = arith.select %185, %52, %37 : vector<8x20xf32>
    %187 = arith.truncf %186 : vector<8x20xf32> to vector<8x20xbf16>
    %c4_156 = arith.constant 4 : index
    %c0_157 = arith.constant 0 : index
    %c0_158 = arith.constant 0 : index
    %188 = vector.load %arg9[%c4_156, %c0_157, %c0_158] : memref<5x20x256xbf16, #tpu.memory_space<vmem>>, vector<1x20x256xbf16>
    %189 = vector.shape_cast %188 : vector<1x20x256xbf16> to vector<20x256xbf16>
    %cst_159 = arith.constant dense<0.000000e+00> : vector<8x256xf32>
    %190 = tpu.matmul %187, %189, %cst_159 {dimension_numbers = #tpu.dot_dimension_numbers<[1], [0], [0], [1], [0, 0, 1, 1], [], []>} : vector<8x20xbf16>, vector<20x256xbf16>, vector<8x256xf32> -> vector<8x256xf32>
    %c4_160 = arith.constant 4 : index
    %c0_161 = arith.constant 0 : index
    %c0_162 = arith.constant 0 : index
    %191 = vector.load %arg10[%c4_160, %c0_161, %c0_162] : memref<5x1x256xf32, #tpu.memory_space<vmem>>, vector<1x1x256xf32>
    %192 = vector.shape_cast %191 : vector<1x1x256xf32> to vector<1x256xf32>
    %193 = vector.broadcast %192 : vector<1x256xf32> to vector<8x256xf32>
    %194 = arith.addf %190, %193 : vector<8x256xf32>
    %cst_163 = arith.constant 0.000000e+00 : f32
    %195 = vector.broadcast %cst_163 : f32 to vector<8x256xf32>
    %196 = arith.maximumf %194, %195 : vector<8x256xf32>
    %197 = arith.truncf %196 : vector<8x256xf32> to vector<8x256xbf16>
    %c4_164 = arith.constant 4 : index
    %c0_165 = arith.constant 0 : index
    %c0_166 = arith.constant 0 : index
    %198 = vector.load %arg11[%c4_164, %c0_165, %c0_166] : memref<5x256x512xbf16, #tpu.memory_space<vmem>>, vector<1x256x512xbf16>
    %199 = vector.shape_cast %198 : vector<1x256x512xbf16> to vector<256x512xbf16>
    %cst_167 = arith.constant dense<0.000000e+00> : vector<8x512xf32>
    %200 = tpu.matmul %197, %199, %cst_167 {dimension_numbers = #tpu.dot_dimension_numbers<[1], [0], [0], [1], [0, 0, 1, 1], [], []>} : vector<8x256xbf16>, vector<256x512xbf16>, vector<8x512xf32> -> vector<8x512xf32>
    %c4_168 = arith.constant 4 : index
    %c0_169 = arith.constant 0 : index
    %c0_170 = arith.constant 0 : index
    %201 = vector.load %arg12[%c4_168, %c0_169, %c0_170] : memref<5x1x512xf32, #tpu.memory_space<vmem>>, vector<1x1x512xf32>
    %202 = vector.shape_cast %201 : vector<1x1x512xf32> to vector<1x512xf32>
    %203 = vector.broadcast %202 : vector<1x512xf32> to vector<8x512xf32>
    %204 = arith.addf %200, %203 : vector<8x512xf32>
    %cst_171 = arith.constant 0.000000e+00 : f32
    %205 = vector.broadcast %cst_171 : f32 to vector<8x512xf32>
    %206 = arith.maximumf %204, %205 : vector<8x512xf32>
    %207 = arith.truncf %206 : vector<8x512xf32> to vector<8x512xbf16>
    %c4_172 = arith.constant 4 : index
    %c0_173 = arith.constant 0 : index
    %c0_174 = arith.constant 0 : index
    %208 = vector.load %arg13[%c4_172, %c0_173, %c0_174] : memref<5x512x64xbf16, #tpu.memory_space<vmem>>, vector<1x512x64xbf16>
    %209 = vector.shape_cast %208 : vector<1x512x64xbf16> to vector<512x64xbf16>
    %cst_175 = arith.constant dense<0.000000e+00> : vector<8x64xf32>
    %210 = tpu.matmul %207, %209, %cst_175 {dimension_numbers = #tpu.dot_dimension_numbers<[1], [0], [0], [1], [0, 0, 1, 1], [], []>} : vector<8x512xbf16>, vector<512x64xbf16>, vector<8x64xf32> -> vector<8x64xf32>
    %c4_176 = arith.constant 4 : index
    %c0_177 = arith.constant 0 : index
    %c0_178 = arith.constant 0 : index
    %211 = vector.load %arg14[%c4_176, %c0_177, %c0_178] : memref<5x1x64xf32, #tpu.memory_space<vmem>>, vector<1x1x64xf32>
    %212 = vector.shape_cast %211 : vector<1x1x64xf32> to vector<1x64xf32>
    %213 = vector.broadcast %212 : vector<1x64xf32> to vector<8x64xf32>
    %214 = arith.addf %210, %213 : vector<8x64xf32>
    %c4_179 = arith.constant 4 : index
    %c0_180 = arith.constant 0 : index
    %c0_181 = arith.constant 0 : index
    %215 = vector.load %arg15[%c4_179, %c0_180, %c0_181] : memref<5x8x64xf32, #tpu.memory_space<vmem>>, vector<1x8x64xf32>
    %216 = vector.shape_cast %215 : vector<1x8x64xf32> to vector<8x64xf32>
    %217 = vector.shape_cast %214 : vector<8x64xf32> to vector<1x8x64xf32>
    tpu.vector_store %arg15[%c4_179, %c0_180, %c0_181], %217 {strides = array<i32>} : memref<5x8x64xf32, #tpu.memory_space<vmem>>, vector<1x8x64xf32>,
    return
  }
  func.func @transform_0(%arg0: i32) -> (i32, i32) {
    %c0_i32 = arith.constant 0 : i32
    %c0_i32_0 = arith.constant 0 : i32
    %c0_i32_1 = arith.constant 0 : i32
    return %c0_i32, %c0_i32_0 : i32, i32
  }
  func.func @transform_1(%arg0: i32) -> (i32, i32) {
    %c0_i32 = arith.constant 0 : i32
    %c0_i32_0 = arith.constant 0 : i32
    %c0_i32_1 = arith.constant 0 : i32
    return %c0_i32, %c0_i32_0 : i32, i32
  }
  func.func @transform_2(%arg0: i32) -> (i32, i32) {
    %c0_i32 = arith.constant 0 : i32
    %c0_i32_0 = arith.constant 0 : i32
    %c0_i32_1 = arith.constant 0 : i32
    return %c0_i32, %c0_i32_0 : i32, i32
  }
  func.func @transform_3(%arg0: i32) -> (i32, i32) {
    %c0_i32 = arith.constant 0 : i32
    %c0_i32_0 = arith.constant 0 : i32
    %c0_i32_1 = arith.constant 0 : i32
    return %c0_i32, %c0_i32_0 : i32, i32
  }
  func.func @transform_4(%arg0: i32) -> (i32, i32) {
    %c0_i32 = arith.constant 0 : i32
    %c0_i32_0 = arith.constant 0 : i32
    %c0_i32_1 = arith.constant 0 : i32
    return %c0_i32, %c0_i32_0 : i32, i32
  }
  func.func @transform_5(%arg0: i32) -> (i32, i32) {
    %c0_i32 = arith.constant 0 : i32
    %c0_i32_0 = arith.constant 0 : i32
    %c0_i32_1 = arith.constant 0 : i32
    return %c0_i32, %c0_i32_0 : i32, i32
  }
  func.func @transform_6(%arg0: i32) -> (i32, i32) {
    %c0_i32 = arith.constant 0 : i32
    %c0_i32_0 = arith.constant 0 : i32
    %c0_i32_1 = arith.constant 0 : i32
    return %c0_i32, %c0_i32_0 : i32, i32
  }
  func.func @transform_7(%arg0: i32) -> (i32, i32, i32) {
    %c0_i32 = arith.constant 0 : i32
    %c0_i32_0 = arith.constant 0 : i32
    %c0_i32_1 = arith.constant 0 : i32
    %c0_i32_2 = arith.constant 0 : i32
    return %c0_i32, %c0_i32_0, %c0_i32_1 : i32, i32, i32
  }
  func.func @transform_8(%arg0: i32) -> (i32, i32, i32) {
    %c0_i32 = arith.constant 0 : i32
    %c0_i32_0 = arith.constant 0 : i32
    %c0_i32_1 = arith.constant 0 : i32
    return %arg0, %c0_i32, %c0_i32_0 : i32, i32, i32
  }
  func.func @transform_9(%arg0: i32) -> (i32, i32, i32) {
    %c0_i32 = arith.constant 0 : i32
    %c0_i32_0 = arith.constant 0 : i32
    %c0_i32_1 = arith.constant 0 : i32
    return %arg0, %c0_i32, %c0_i32_0 : i32, i32, i32
  }
  func.func @transform_10(%arg0: i32) -> (i32, i32, i32) {
    %c0_i32 = arith.constant 0 : i32
    %c0_i32_0 = arith.constant 0 : i32
    %c0_i32_1 = arith.constant 0 : i32
    return %arg0, %c0_i32, %c0_i32_0 : i32, i32, i32
  }
  func.func @transform_11(%arg0: i32) -> (i32, i32, i32) {
    %c0_i32 = arith.constant 0 : i32
    %c0_i32_0 = arith.constant 0 : i32
    %c0_i32_1 = arith.constant 0 : i32
    return %arg0, %c0_i32, %c0_i32_0 : i32, i32, i32
  }
  func.func @transform_12(%arg0: i32) -> (i32, i32, i32) {
    %c0_i32 = arith.constant 0 : i32
    %c0_i32_0 = arith.constant 0 : i32
    %c0_i32_1 = arith.constant 0 : i32
    return %arg0, %c0_i32, %c0_i32_0 : i32, i32, i32
  }
  func.func @transform_13(%arg0: i32) -> (i32, i32, i32) {
    %c0_i32 = arith.constant 0 : i32
    %c0_i32_0 = arith.constant 0 : i32
    %c0_i32_1 = arith.constant 0 : i32
    return %arg0, %c0_i32, %c0_i32_0 : i32, i32, i32
  }
  func.func @transform_14(%arg0: i32) -> (i32, i32, i32) {
    %c0_i32 = arith.constant 0 : i32
    %c0_i32_0 = arith.constant 0 : i32
    %c0_i32_1 = arith.constant 0 : i32
    return %arg0, %c0_i32, %c0_i32_0 : i32, i32, i32
  }
}

</mosaic_0001>

<bundles_post_ra>
// kernel: irmae_wd_b_forward.1
= control target key start
LH: loop header
LB: loop body
LE: loop exit
PB: predicated region body
PF: predicated region fallthrough
CT: control target
= control target key end

     0   :  { %s11506_s0 = inlined_call_operand.hbm [shape: f32[8,64], index: 0, kind: input, shape index: {}]   ;;  %s11507_s1 = inlined_call_operand.hbm [shape: bf16[64,512], index: 1, kind: input, shape index: {}]   ;;  %s11508_s2 = inlined_call_operand.hbm [shape: f32[1,512], index: 2, kind: input, shape index: {}]   ;;  %s11509_s3 = inlined_call_operand.hbm [shape: bf16[512,256], index: 3, kind: input, shape index: {}]   ;;  %s11510_s4 = inlined_call_operand.hbm [shape: f32[1,256], index: 4, kind: input, shape index: {}]   ;;  %s11511_s5 = inlined_call_operand.vmem [shape: bf16[256,20], index: 5, kind: input, shape index: {}]   ;;  %s11512_s6 = inlined_call_operand.hbm [shape: f32[1,20], index: 6, kind: input, shape index: {}]   ;;  %s11513_s7 = inlined_call_operand.hbm [shape: f32[10,20,20], index: 7, kind: input, shape index: {}]   ;;  %s11514_s8 = inlined_call_operand.hbm [shape: bf16[10,20,256], index: 8, kind: input, shape index: {}]   ;;  %s11515_s9 = inlined_call_operand.hbm [shape: f32[10,1,256], index: 9, kind: input, shape index: {}]   ;;  %s11516_s10 = inlined_call_operand.hbm [shape: bf16[10,256,512], index: 10, kind: input, shape index: {}]   ;;  %s11517_s11 = inlined_call_operand.hbm [shape: f32[10,1,512], index: 11, kind: input, shape index: {}]   ;;  %s11518_s12 = inlined_call_operand.vmem [shape: bf16[10,512,64], index: 12, kind: input, shape index: {}]   ;;  %s11519_s13 = inlined_call_operand.hbm [shape: f32[10,1,64], index: 13, kind: input, shape index: {}]   ;;  %s11520_s14 = inlined_call_operand.vmem [shape: f32[10,8,64], index: 14, kind: output, shape index: {}]  }
   0x1   :  { %11548 = sst [smem:[#allocation34_spill]] %s11507_s1 }
   0x2   :  { %11549 = sst [smem:[#allocation35_spill]] %s11509_s3 }
   0x3   :  { %11550 = sst [smem:[#allocation36_spill]] %s11511_s5 }
   0x4   :  { %11551 = sst [smem:[#allocation37_spill]] %s11512_s6 }
   0x5   :  { %11552 = sst [smem:[#allocation38_spill]] %s11514_s8 }
   0x6   :  { %11553 = sst [smem:[#allocation39_spill]] %s11518_s12 }
   0x7   :  { %11554 = sst [smem:[#allocation40_spill]] %s11520_s14 }
   0x8   :  { %19 = vsyncpa [#allocation3], 0 }
   0x9   :  { %20 = vsyncpa [#allocation5], 0 }
   0xa   :  { %21 = vsyncpa [#allocation8], 0 }
   0xb   :  { %22 = vsyncpa [#allocation11], 0 }
   0xc   :  { %23 = vsyncpa [#allocation14], 0 }
   0xd   :  { %25 = vsyncpa [#allocation14 + $0x1], 0 }
   0xe   :  { %26 = vsyncpa [#allocation17], 0 }
   0xf   :  { %28 = vsyncpa [#allocation17 + $0x1], 0 }
  0x10   :  { %29 = vsyncpa [#allocation20], 0 }
  0x11   :  { %31 = vsyncpa [#allocation20 + $0x1], 0  ;;  %s10366_s29 = smov 0   ;;  %s10368_s30 = smov 0  }
  0x12   :  { %s10370_s15 = smov 0   ;;  %s10372_s16 = smov 0  }
  0x13 LB: > { %11555 = sst [smem:[#allocation28_spill]] %s10257_s30  ;;  %s10267_s17 = smov [#allocation4]   ;;  %s10265_s16 = sphi %s10372_s16, %s11599_s16   ;;  %s10261_s15 = sphi %s10370_s15, %s11602_s15   ;;  %s10257_s30 = sphi %s10368_s30, %s11601_s30   ;;  %s10253_s29 = sphi %s10366_s29, %s11600_s29  }
  0x14   : > { %11556 = sst [smem:[#allocation29_spill]] %s10261_s15  ;;  %s415_s18 = sshll.u32 %s10267_s17, 4  ;;  %s416_s18 = int_to_ptr.vmem [resolvable:$true] %s415_s18 }
  0x15   : > { %s10387_s19 = sadd.s32 4294967295, %s10265_s16   ;;  %p7343_p0 = scmp.ge.s32.totalorder %s10265_s16, 1 }
  0x16   : > { %11557 = sst [smem:[#allocation30_spill]] %s10387_s19  ;;  %p11529_p1 = scmp.eq.s32.totalorder %s10387_s19, 0 }
  0x17   : > { %p392_p2 = scmp.lt.s32.totalorder %s10265_s16, 3  ;;  %s10268_s22 = smov [#allocation7]  }
  0x18   : > { %s439_s23 = sshll.u32 %s10268_s22, 4  ;;  %s9896_s25 = scalar_lea.vmem %s416_s18, 2048  ;;  %s440_s23 = int_to_ptr.vmem [resolvable:$true] %s439_s23 }
  0x19   : > { %p10392_p3 = pnand %p7343_p0, %p392_p2  ;;  %p9897_p7 = scmp.ne.s32.totalorder %s416_s18, %s9896_s25 }
  0x1a   : > { %p9904_p10 = scmp.lt.s32.totalorder %s416_s18, %s416_s18  ;;  %p9905_p11 = scmp.lt.s32.totalorder %s9896_s25, %s9896_s25 }
  0x1b   : > { %s11558_s20 = scalar_select %p10392_p3, 1, 0 }
  0x1c   : > { %p8979_p4 = pneg %p10392_p3  ;;  %p9906_p12 = por %p9905_p11, %p9904_p10 }
  0x1e   : > { %p10400_p5 = pnand %p8979_p4, %p11529_p1 }
  0x20   : > { %s11559_s21 = scalar_select %p10400_p5, 1, 0 }
  0x21   : > { %p10406_p6 = pneg %p10400_p5 }
  0x23   : > { %s11560_s24 = scalar_select %p10406_p6, 1, 0 }
  0x24   : > { %p9899_p8 = pnand %p9897_p7, %p10406_p6 }
  0x26   : > { %p9900_p9 = pneg %p9899_p8 }
  0x28   : > { %p9907_p13 = pnand %p9906_p12, %p9900_p9 }
  0x2a   : > { %9910 = shalt.err (!%p9907_p13)
}
  0x2b   : > { %s11521_s26 = smov 256   ;;  %s11522_s27 = smov 16  }
  0x2c   : > { %s11561_s1 = sld [smem:[#allocation34_spill]]  ;;  %s9922_s22 = scalar_lea.vmem %s440_s23, 8192 }
  0x2d   : > { %p9923_p0 = scmp.ne.s32.totalorder %s440_s23, %s9922_s22  ;;  %p9930_p7 = scmp.lt.s32.totalorder %s440_s23, %s440_s23 }
  0x2e   : > { %p9931_p8 = scmp.lt.s32.totalorder %s9922_s22, %s9922_s22 }
  0x2f   : > { %p9925_p2 = pnand %p9923_p0, %p10406_p6 }
  0x30   : > { %p9932_p9 = por %p9931_p8, %p9930_p7 }
  0x31   : > { %p9926_p4 = pneg %p9925_p2 }
  0x32   : > { %8985 = dma.hbm_to_vmem [thread:$0]  (!%p10400_p5), %s11561_s1, 2048, %s416_s18, [#allocation5], %s11521_s26, %s11521_s26, %s11522_s27  }
  0x33   : > { %p9933_p10 = pnand %p9932_p9, %p9926_p4 }
  0x35   : > { %9936 = shalt.err (!%p9933_p10)
}
  0x36   : > { %s11524_s25 = smov 128   ;;  %s11526_s14 = smov 8  }
  0x37   : > { %s11562_s3 = sld [smem:[#allocation35_spill]]  ;;  %s10273_s17 = smov [#allocation10]  }
  0x38   : > { %s467_s26 = sshll.u32 %s10273_s17, 4  ;;  %s468_s26 = int_to_ptr.vmem [resolvable:$true] %s467_s26 }
  0x39   : > { %s9948_s27 = scalar_lea.vmem %s468_s26, 16  ;;  %s9955_s22 = scalar_lea.vmem %s468_s26, 32 }
  0x3a   : > { %p9949_p11 = scmp.ne.s32.totalorder %s468_s26, %s9948_s27  ;;  %p9956_p0 = scmp.lt.s32.totalorder %s468_s26, %s468_s26 }
  0x3b   : > { %p9957_p2 = scmp.lt.s32.totalorder %s9955_s22, %s9948_s27 }
  0x3c   : > { %p9951_p12 = pnand %p9949_p11, %p10406_p6 }
  0x3d   : > { %8991 = dma.hbm_to_vmem [thread:$0]  (!%p10400_p5), %s11562_s3, 8192, %s440_s23, [#allocation8], %s11524_s25, %s11524_s25, %s11526_s14  }
  0x3e   : > { %p9952_p13 = pneg %p9951_p12  ;;  %p9958_p4 = por %p9957_p2, %p9956_p0 }
  0x40   : > { %p9959_p7 = pnand %p9958_p4, %p9952_p13 }
  0x42   : > { %9962 = shalt.err (!%p9959_p7)
}
  0x43   : > { %s11563_s6 = sld [smem:[#allocation37_spill]]  ;;  %s10438_s23 = sadd.s32 1, %s10265_s16  }
  0x44   : > { %11564 = sst [smem:[#allocation31_spill]] %s10438_s23  ;;  %s212_s27 = sadd.s32 1, %s10261_s15 }
  0x45   : > { %s209_s1 = ssub.s32 %s10265_s16, %s10438_s23  ;;  %p219_p8 = scmp.ne.s32.totalorder %s10261_s15, %s10257_s30 }
  0x46   : > { %p210_p9 = scmp.eq.s32.totalorder %s209_s1, 0  ;;  %p220_p10 = scmp.eq.s32.totalorder %s10265_s16, 0 }
  0x47   : > { %p225_p11 = scmp.ne.s32.totalorder %s10257_s30, %s10253_s29  ;;  %p9024_p12 = scmp.lt.s32.totalorder %s10265_s16, 2 }
  0x48   : > { %s10450_s12 = scalar_select %p210_p9, %s10261_s15, %s212_s27  }
  0x49   : > { %8997 = dma.hbm_to_vmem [thread:$0]  (!%p10400_p5), %s11563_s6, 16, %s468_s26, [#allocation11]  }
  0x4a   : > { %11565 = sst [smem:[#allocation32_spill]] %s10450_s12  ;;  %p221_p13 = por %p220_p10, %p219_p8 }
  0x4b   : > { %p10454_p0 = por %p11529_p1, %p225_p11  ;;  %s10460_s18 = sand.u32 1, %s10261_s15  }
  0x4c   : > { %s8930_s17 = smul.u32 120, %s10460_s18  ;;  %p10464_p2 = pnand %p9024_p12, %p221_p13 }
  0x4d   : > { %s11566_s28 = scalar_select %p10454_p0, 1, 0 }
  0x4e   : > { %s9025_s22 = smul.u32 1920, %s10265_s16  ;;  %s11569_s8 = sld [smem:[#allocation38_spill]] }
  0x4f   : > { %11567 = sst [smem:[#allocation33_spill]] %s11566_s28  ;;  %s495_s14 = scalar_lea.vmem [#allocation13], %s8930_s17 }
  0x50   : > { %s11568_s1 = scalar_select %p10464_p2, 1, 0 }
  0x51   : > { %s503_s26 = sshll.u32 %s495_s14, 4  ;;  %s11570_s3 = sand.u32 1, %s10265_s16   ;;  %s10473_s26 = int_to_ptr.vmem [resolvable:$true] %s503_s26 }
  0x52   : > { %s10477_s6 = scalar_lea.sflag [#allocation14], %s11570_s3  ;;  %p10483_p7 = pneg %p10464_p2 }
  0x54   : > { %s10471_s27 = scalar_lea.hbm %s11569_s8, %s9025_s22  ;;  %s9968_s14 = scalar_lea.hbm %s11569_s8, 3840 }
  0x55   : > { %s9963_s12 = scalar_lea.hbm %s10471_s27, 1920  ;;  %p9969_p10 = scmp.lt.s32.totalorder %s10471_s27, %s11569_s8 }
  0x56   : > { %p9964_p4 = scmp.ne.s32.totalorder %s10471_s27, %s9963_s12  ;;  %p9970_p11 = scmp.lt.s32.totalorder %s9968_s14, %s9963_s12 }
  0x57   : > { %s11571_s15 = scalar_select %p10483_p7, 1, 0 }
  0x58   : > { %p9966_p8 = pnand %p10483_p7, %p9964_p4  ;;  %p9971_p12 = por %p9970_p11, %p9969_p10 }
  0x5a   : > { %p9967_p9 = pneg %p9966_p8 }
  0x5c   : > { %p9972_p13 = pnand %p9971_p12, %p9967_p9 }
  0x5e   : > { %9975 = shalt.err (!%p9972_p13)
}
  0x5f   : > { %s9976_s3 = scalar_lea.vmem %s10473_s26, 1920  ;;  %s10274_s23 = smov [#allocation13]  }
  0x60   : > { %p9977_p1 = scmp.ne.s32.totalorder %s10473_s26, %s9976_s3  ;;  %s9981_s25 = sshll.u32 %s10274_s23, 4  ;;  %s9982_s25 = int_to_ptr.vmem [resolvable:$false] %s9981_s25 }
  0x61   : > { %s9983_s22 = scalar_lea.vmem %s9982_s25, 3840  ;;  %p9984_p0 = scmp.lt.s32.totalorder %s10473_s26, %s9982_s25 }
  0x62   : > { %p9979_p4 = pnand %p9977_p1, %p10483_p7  ;;  %p9985_p3 = scmp.lt.s32.totalorder %s9983_s22, %s9976_s3 }
  0x64   : > { %p9980_p8 = pneg %p9979_p4  ;;  %p9986_p5 = por %p9985_p3, %p9984_p0 }
  0x66   : > { %p9987_p6 = pnand %p9986_p5, %p9980_p8 }
  0x68   : > { %9990 = shalt.err (!%p9987_p6)
}
  0x69   : > { %s11572_s12 = smov 8   ;;  %s11573_s14 = smov 128  }
  0x6a   : > { %9004 = dma.hbm_to_vmem [thread:$0]  (!%p10464_p2), %s10471_s27, 1920, %s10473_s26, %s10477_s6, %s11573_s14, %s11573_s14, %s11572_s12  }
  0x6b   : > { %s8933_s23 = smul.u32 2560, %s10460_s18  ;;  %s10275_s29 = smov [#allocation2]  }
  0x6c   : > { %s8556_s17 = smul.u32 40960, %s10265_s16  ;;  %s405_s3 = sshll.u32 %s10275_s29, 4  ;;  %s10511_s3 = int_to_ptr.vmem [resolvable:$true] %s405_s3 }
  0x6d   : > { %s539_s5 = scalar_lea.vmem [#allocation16], %s8933_s23  ;;  %s11574_s30 = sand.u32 1, %s10265_s16  }
  0x6e   : > { %s10516_s8 = scalar_lea.hbm %s11516_s10, %s8556_s17  ;;  %s547_s28 = sshll.u32 %s539_s5, 4  ;;  %s10518_s28 = int_to_ptr.vmem [resolvable:$true] %s547_s28 }
  0x6f   : > { %s10522_s26 = scalar_lea.sflag [#allocation17], %s11574_s30  ;;  %s9991_s27 = scalar_lea.hbm %s10516_s8, 40960 }
  0x70   : > { %p9992_p1 = scmp.ne.s32.totalorder %s10516_s8, %s9991_s27  ;;  %s9996_s17 = scalar_lea.hbm %s11516_s10, 81920 }
  0x71   : > { %p9997_p6 = scmp.lt.s32.totalorder %s10516_s8, %s11516_s10  ;;  %p9998_p0 = scmp.lt.s32.totalorder %s9996_s17, %s9991_s27 }
  0x72   : > { %p9994_p3 = pnand %p9992_p1, %p10483_p7 }
  0x73   : > { %p9999_p9 = por %p9998_p0, %p9997_p6 }
  0x74   : > { %p9995_p5 = pneg %p9994_p3 }
  0x76   : > { %p10000_p10 = pnand %p9999_p9, %p9995_p5 }
  0x78   : > { %10003 = shalt.err (!%p10000_p10)
}
  0x79   : > { %s10004_s5 = scalar_lea.vmem %s10518_s28, 40960  ;;  %s10276_s30 = smov [#allocation16]  }
  0x7a   : > { %p10005_p11 = scmp.ne.s32.totalorder %s10518_s28, %s10004_s5  ;;  %s10009_s19 = sshll.u32 %s10276_s30, 4  ;;  %s10010_s19 = int_to_ptr.vmem [resolvable:$false] %s10009_s19 }
  0x7b   : > { %s10011_s23 = scalar_lea.vmem %s10010_s19, 81920  ;;  %p10012_p4 = scmp.lt.s32.totalorder %s10518_s28, %s10010_s19 }
  0x7c   : > { %p10007_p12 = pnand %p10005_p11, %p10483_p7  ;;  %p10013_p8 = scmp.lt.s32.totalorder %s10011_s23, %s10004_s5 }
  0x7e   : > { %p10008_p13 = pneg %p10007_p12  ;;  %p10014_p1 = por %p10013_p8, %p10012_p4 }
  0x80   : > { %p10015_p3 = pnand %p10014_p1, %p10008_p13 }
  0x82   : > { %10018 = shalt.err (!%p10015_p3)
}
  0x83   : > { %s11575_s27 = smov 16   ;;  %s11576_s29 = smov 256  }
  0x84   : > { %9010 = dma.hbm_to_vmem [thread:$0]  (!%p10464_p2), %s10516_s8, 40960, %s10518_s28, %s10522_s26, %s11576_s29, %s11576_s29, %s11575_s27  }
  0x85   : > { %s10030_s17 = scalar_lea.vmem %s10511_s3, 128  ;;  %p11577_p6 = scmp.ne.s32.totalorder %s11560_s24, 0 }
  0x86   : > { %p10031_p5 = scmp.ne.s32.totalorder %s10511_s3, %s10030_s17  ;;  %p10038_p10 = scmp.lt.s32.totalorder %s10511_s3, %s10511_s3 }
  0x87   : > { %p10039_p11 = scmp.lt.s32.totalorder %s10030_s17, %s10030_s17 }
  0x88   : > { %p10033_p0 = pnand %p10031_p5, %p11577_p6 }
  0x89   : > { %p10040_p12 = por %p10039_p11, %p10038_p10 }
  0x8a   : > { %p10034_p9 = pneg %p10033_p0 }
  0x8c   : > { %p10041_p13 = pnand %p10040_p12, %p10034_p9 }
  0x8e   : > { %10044 = shalt.err (!%p10041_p13)
}
  0x8f   : > { %p11578_p4 = scmp.ne.s32.totalorder %s11559_s21, 0  ;;  %s10277_s8 = smov [#allocation6]  }
  0x90   : > { %s429_s28 = sshll.u32 %s10277_s8, 4  ;;  %s10278_s5 = smov [#allocation9]   ;;  %s430_s28 = int_to_ptr.vmem [resolvable:$true] %s429_s28 }
  0x91   : > { %8982 = dma.hbm_to_vmem [thread:$0]  (!%p11578_p4), %s11506_s0, 128, %s10511_s3, [#allocation3]  }
  0x92   : > { %s453_s30 = sshll.u32 %s10278_s5, 4  ;;  %s10056_s19 = scalar_lea.vmem %s430_s28, 64  ;;  %s454_s30 = int_to_ptr.vmem [resolvable:$true] %s453_s30 }
  0x93   : > { %p10057_p8 = scmp.ne.s32.totalorder %s430_s28, %s10056_s19  ;;  %p10064_p5 = scmp.lt.s32.totalorder %s430_s28, %s430_s28 }
  0x94   : > { %p10065_p0 = scmp.lt.s32.totalorder %s10056_s19, %s10056_s19 }
  0x95   : > { %p10059_p1 = pnand %p10057_p8, %p11577_p6 }
  0x96   : > { %p10066_p9 = por %p10065_p0, %p10064_p5 }
  0x97   : > { %p10060_p3 = pneg %p10059_p1 }
  0x99   : > { %p10067_p10 = pnand %p10066_p9, %p10060_p3 }
  0x9b   : > { %10070 = shalt.err (!%p10067_p10)
}
  0x9c   : > { %8988 = dma.hbm_to_vmem [thread:$0]  (!%p11578_p4), %s11508_s2, 64, %s430_s28, [#allocation5]  }
  0x9d   : > { %s10082_s3 = scalar_lea.vmem %s454_s30, 32  ;;  %p10090_p8 = scmp.lt.s32.totalorder %s454_s30, %s454_s30 }
  0x9e   : > { %p10083_p11 = scmp.ne.s32.totalorder %s454_s30, %s10082_s3  ;;  %p10091_p1 = scmp.lt.s32.totalorder %s10082_s3, %s10082_s3 }
  0xa0   : > { %p10085_p12 = pnand %p10083_p11, %p11577_p6  ;;  %p10092_p2 = por %p10091_p1, %p10090_p8 }
  0xa2   : > { %p10086_p13 = pneg %p10085_p12 }
  0xa4   : > { %p10093_p7 = pnand %p10092_p2, %p10086_p13 }
  0xa6   : > { %10096 = shalt.err (!%p10093_p7)
}
  0xa7   : > { %8994 = dma.hbm_to_vmem [thread:$0]  (!%p11578_p4), %s11510_s4, 32, %s454_s30, [#allocation8]  }
  0xa8   : > { %s10279_s22 = smov [#allocation12]   ;;  %s8932_s28 = smul.u32 10, %s10460_s18 }
  0xa9   : > { %s477_s8 = sshll.u32 %s10279_s22, 4  ;;  %s8555_s5 = smul.u32 160, %s10265_s16  ;;  %s478_s8 = int_to_ptr.vmem [resolvable:$true] %s477_s8 }
  0xaa   : > { %s10108_s19 = scalar_lea.vmem %s478_s8, 3840  ;;  %p10116_p7 = scmp.lt.s32.totalorder %s478_s8, %s478_s8 }
  0xab   : > { %p10109_p3 = scmp.ne.s32.totalorder %s478_s8, %s10108_s19  ;;  %p10117_p0 = scmp.lt.s32.totalorder %s10108_s19, %s10108_s19 }
  0xad   : > { %p10111_p5 = pnand %p10109_p3, %p11577_p6  ;;  %p10118_p9 = por %p10117_p0, %p10116_p7 }
  0xaf   : > { %p10112_p2 = pneg %p10111_p5 }
  0xb1   : > { %p10119_p10 = pnand %p10118_p9, %p10112_p2 }
  0xb3   : > { %10122 = shalt.err (!%p10119_p10)
}
  0xb4   : > { %9000 = dma.hbm_to_vmem [thread:$0]  (!%p11578_p4), %s11513_s7, 3840, %s478_s8, [#allocation11], %s11573_s14, %s11573_s14, %s11572_s12  }
  0xb5   : > { %s10589_s24 = scalar_lea.hbm %s11515_s9, %s8555_s5  ;;  %s517_s17 = scalar_lea.vmem [#allocation15], %s8932_s28 }
  0xb6   : > { %s525_s25 = sshll.u32 %s517_s17, 4  ;;  %s10123_s21 = scalar_lea.hbm %s10589_s24, 160  ;;  %s10591_s25 = int_to_ptr.vmem [resolvable:$true] %s525_s25 }
  0xb7   : > { %p10124_p6 = scmp.ne.s32.totalorder %s10589_s24, %s10123_s21  ;;  %p11579_p11 = scmp.ne.s32.totalorder %s11571_s15, 0 }
  0xb8   : > { %s10128_s12 = scalar_lea.hbm %s11515_s9, 320  ;;  %p10129_p4 = scmp.lt.s32.totalorder %s10589_s24, %s11515_s9 }
  0xb9   : > { %p10126_p12 = pnand %p10124_p6, %p11579_p11  ;;  %p10130_p8 = scmp.lt.s32.totalorder %s10128_s12, %s10123_s21 }
  0xbb   : > { %p10127_p13 = pneg %p10126_p12  ;;  %p10131_p1 = por %p10130_p8, %p10129_p4 }
  0xbd   : > { %p10132_p3 = pnand %p10131_p1, %p10127_p13 }
  0xbf   : > { %10135 = shalt.err (!%p10132_p3)
}
  0xc0   : > { %s10136_s28 = scalar_lea.vmem %s10591_s25, 160  ;;  %s10280_s5 = smov [#allocation15]  }
  0xc1   : > { %p10137_p5 = scmp.ne.s32.totalorder %s10591_s25, %s10136_s28  ;;  %s10141_s30 = sshll.u32 %s10280_s5, 4  ;;  %s10142_s30 = int_to_ptr.vmem [resolvable:$false] %s10141_s30 }
  0xc2   : > { %s10143_s23 = scalar_lea.vmem %s10142_s30, 320  ;;  %p10144_p0 = scmp.lt.s32.totalorder %s10591_s25, %s10142_s30 }
  0xc3   : > { %p10139_p2 = pnand %p10137_p5, %p11579_p11  ;;  %p10145_p9 = scmp.lt.s32.totalorder %s10143_s23, %s10136_s28 }
  0xc5   : > { %p10140_p7 = pneg %p10139_p2  ;;  %p10146_p10 = por %p10145_p9, %p10144_p0 }
  0xc7   : > { %p10147_p6 = pnand %p10146_p10, %p10140_p7 }
  0xc9   : > { %10150 = shalt.err (!%p10147_p6)
}
  0xca   : > { %s10281_s29 = smov 32   ;;  %s10282_s3 = smov 2  }
  0xcb   : > { %p11580_p12 = scmp.ne.s32.totalorder %s11568_s1, 0  ;;  %s8934_s17 = smul.u32 20, %s10460_s18 }
  0xcc   : > { %s8557_s21 = smul.u32 320, %s10265_s16 }
  0xcd   : > { %9007 = dma.hbm_to_vmem [thread:$0]  (!%p11580_p12), %s10589_s24, 160, %s10591_s25, %s10477_s6, %s10281_s29, %s10281_s29, %s10282_s3  }
  0xce   : > { %s10619_s12 = scalar_lea.hbm %s11517_s11, %s8557_s21  ;;  %s561_s14 = scalar_lea.vmem [#allocation18], %s8934_s17 }
  0xcf   : > { %s569_s8 = sshll.u32 %s561_s14, 4  ;;  %s8935_s28 = smul.u32 5, %s10460_s18  ;;  %s10621_s8 = int_to_ptr.vmem [resolvable:$true] %s569_s8 }
  0xd0   : > { %s10151_s5 = scalar_lea.hbm %s10619_s12, 320  ;;  %s10156_s25 = scalar_lea.hbm %s11517_s11, 640 }
  0xd1   : > { %p10152_p13 = scmp.ne.s32.totalorder %s10619_s12, %s10151_s5  ;;  %p10157_p1 = scmp.lt.s32.totalorder %s10619_s12, %s11517_s11 }
  0xd2   : > { %p10158_p3 = scmp.lt.s32.totalorder %s10156_s25, %s10151_s5 }
  0xd3   : > { %p10154_p4 = pnand %p10152_p13, %p11579_p11 }
  0xd4   : > { %p10159_p5 = por %p10158_p3, %p10157_p1 }
  0xd5   : > { %p10155_p8 = pneg %p10154_p4 }
  0xd7   : > { %p10160_p2 = pnand %p10159_p5, %p10155_p8 }
  0xd9   : > { %10163 = shalt.err (!%p10160_p2)
}
  0xda   : > { %s10164_s29 = scalar_lea.vmem %s10621_s8, 320  ;;  %s10283_s3 = smov [#allocation18]  }
  0xdb   : > { %p10165_p7 = scmp.ne.s32.totalorder %s10621_s8, %s10164_s29  ;;  %s10169_s17 = sshll.u32 %s10283_s3, 4  ;;  %s10170_s17 = int_to_ptr.vmem [resolvable:$false] %s10169_s17 }
  0xdc   : > { %s10171_s21 = scalar_lea.vmem %s10170_s17, 640  ;;  %p10172_p10 = scmp.lt.s32.totalorder %s10621_s8, %s10170_s17 }
  0xdd   : > { %p10167_p0 = pnand %p10165_p7, %p11579_p11  ;;  %p10173_p6 = scmp.lt.s32.totalorder %s10171_s21, %s10164_s29 }
  0xdf   : > { %p10168_p9 = pneg %p10167_p0  ;;  %p10174_p13 = por %p10173_p6, %p10172_p10 }
  0xe1   : > { %p10175_p4 = pnand %p10174_p13, %p10168_p9 }
  0xe3   : > { %10178 = shalt.err (!%p10175_p4)
}
  0xe4   : > { %s10284_s22 = smov 64   ;;  %s10285_s19 = smov 4  }
  0xe5   : > { %9013 = dma.hbm_to_vmem [thread:$0]  (!%p11580_p12), %s10619_s12, 320, %s10621_s8, %s10522_s26, %s10284_s22, %s10284_s22, %s10285_s19  }
  0xe6   : > { %s8553_s14 = smul.u32 80, %s10265_s16  ;;  %s593_s5 = scalar_lea.vmem [#allocation19], %s8935_s28 }
  0xe7   : > { %s600_s6 = sshll.u32 %s593_s5, 4  ;;  %s590_s23 = scalar_lea.sflag [#allocation20], %s10460_s18  ;;  %s10653_s6 = int_to_ptr.vmem [resolvable:$true] %s600_s6 }
  0xe8   : > { %s10651_s30 = scalar_lea.hbm %s11519_s13, %s8553_s14  ;;  %s10184_s12 = scalar_lea.hbm %s11519_s13, 160 }
  0xe9   : > { %s10179_s29 = scalar_lea.hbm %s10651_s30, 80  ;;  %p10185_p5 = scmp.lt.s32.totalorder %s10651_s30, %s11519_s13 }
  0xea   : > { %p10180_p8 = scmp.ne.s32.totalorder %s10651_s30, %s10179_s29  ;;  %p10186_p2 = scmp.lt.s32.totalorder %s10184_s12, %s10179_s29 }
  0xec   : > { %p10182_p1 = pnand %p10180_p8, %p11579_p11  ;;  %p10187_p7 = por %p10186_p2, %p10185_p5 }
  0xee   : > { %p10183_p3 = pneg %p10182_p1 }
  0xf0   : > { %p10188_p0 = pnand %p10187_p7, %p10183_p3 }
  0xf2   : > { %10191 = shalt.err (!%p10188_p0)
}
  0xf3   : > { %s10192_s3 = scalar_lea.vmem %s10653_s6, 80  ;;  %s10286_s17 = smov [#allocation19]  }
  0xf4   : > { %p10193_p9 = scmp.ne.s32.totalorder %s10653_s6, %s10192_s3  ;;  %s10197_s21 = sshll.u32 %s10286_s17, 4  ;;  %s10198_s21 = int_to_ptr.vmem [resolvable:$false] %s10197_s21 }
  0xf5   : > { %s10199_s22 = scalar_lea.vmem %s10198_s21, 160  ;;  %p10200_p13 = scmp.lt.s32.totalorder %s10653_s6, %s10198_s21 }
  0xf6   : > { %p10195_p10 = pnand %p10193_p9, %p11579_p11  ;;  %p10201_p4 = scmp.lt.s32.totalorder %s10199_s22, %s10192_s3 }
  0xf8   : > { %p10196_p6 = pneg %p10195_p10  ;;  %p10202_p8 = por %p10201_p4, %p10200_p13 }
  0xfa   : > { %p10203_p1 = pnand %p10202_p8, %p10196_p6 }
  0xfc   : > { %10206 = shalt.err (!%p10203_p1)
}
  0xfd   : > { %s10287_s19 = smov 1   ;;  %p11581_p11 = scmp.ne.s32.totalorder %s11558_s20, 0 }
  0xfe   : > { %9016 = dma.hbm_to_vmem [thread:$0]  (!%p11580_p12), %s10651_s30, 80, %s10653_s6, %s590_s23, %s11575_s27, %s11575_s27, %s10287_s19  }
  0xff   : > { %612 = sbr.rel (%p11581_p11) target bundleno = 4770 (0x12a2), region = 76  ;;  %s11582_s15 = sld [smem:[#allocation30_spill]] (!%p11581_p11) }
 0x105   : > { %p11583_p3 = scmp.eq.s32.totalorder %s11582_s15, 0 }
 0x107   : > { %10224 = dma.done.wait (%p11583_p3), [#allocation3], 128   ;;  %p11584_p5 = pmov %p11583_p3 }
 0x108   : > { %p11585_p2 = pmov %p11583_p3 }
 0x109   : > { %10226 = vsyncadd (%p11584_p5), [#allocation3], 4294967168 }
 0x10a   : > { %10228 = dma.done.wait (%p11585_p2), [#allocation5], 2112   ;;  %p11586_p7 = pmov %p11585_p2 }
 0x10b   : > { %p11587_p0 = pmov %p11585_p2 }
 0x10c   : > { %10230 = vsyncadd (%p11586_p7), [#allocation5], 4294965184 }
 0x10d   : > { %10232 = dma.done.wait (%p11587_p0), [#allocation8], 8224   ;;  %p11588_p12 = pmov %p11587_p0 }
 0x10e   : > { %p11589_p9 = pmov %p11587_p0 }
 0x10f   : > { %10234 = vsyncadd (%p11588_p12), [#allocation8], 4294959072 }
 0x110   : > { %10236 = dma.done.wait (%p11589_p9), [#allocation11], 3856   ;;  %p11590_p10 = pmov %p11587_p0 }
 0x111   : > { %s11591_s20 = sld [smem:[#allocation28_spill]]  ;;  %s642_s1 = sand.u32 1, %s11582_s15  }
 0x112   : > { %10238 = vsyncadd (%p11590_p10), [#allocation11], 4294963440  ;;  %s11592_s18 = sld [smem:[#allocation33_spill]]  ;;  %s643_s5 = scalar_lea.sflag [#allocation14], %s642_s1 }
 0x117   : > { %s644_s27 = sand.u32 1, %s11591_s20  }
 0x118   : > { %s8936_s14 = smul.u32 120, %s644_s27  ;;  %p11593_p6 = scmp.ne.s32.totalorder %s11592_s18, 0 }
 0x11a   : > { %s10700_s6 = scalar_lea.vmem [#allocation13], %s8936_s14 }
 0x11b   : > { %10240 = dma.done.wait (%p11593_p6), %s643_s5, 2080  }
 0x11c   : > { %10242 = vsyncadd (%p11593_p6), %s643_s5, 4294965216  ;;  %s8937_s24 = smul.u32 10, %s644_s27  ;;  %s661_s23 = scalar_lea.sflag [#allocation17], %s642_s1 }
 0x11d   : > { %s8938_s25 = smul.u32 2560, %s644_s27 }
 0x11e   : > { %s10706_s30 = scalar_lea.vmem [#allocation15], %s8937_s24 }
 0x11f   : > { %s10708_s29 = scalar_lea.vmem [#allocation16], %s8938_s25 }
 0x120   : > { %10244 = dma.done.wait (%p11593_p6), %s661_s23, 41280  }
 0x121   : > { %10246 = vsyncadd (%p11593_p6), %s661_s23, 4294926016  ;;  %s8939_s16 = smul.u32 20, %s644_s27  ;;  %s679_s8 = scalar_lea.sflag [#allocation20], %s644_s27 }
 0x122   : > { %s8940_s26 = smul.u32 5, %s644_s27 }
 0x123   : > { %s10714_s12 = scalar_lea.vmem [#allocation18], %s8939_s16 }
 0x124   : > { %s10716_s28 = scalar_lea.vmem [#allocation19], %s8940_s26 }
 0x125   : > { %10248 = dma.done.wait (%p11593_p6), %s679_s8, 80  }
 0x126   : > { %10250 = vsyncadd (%p11593_p6), %s679_s8, 4294967216  ;;  %v10288_v0 = vmov 0   ;;  %v9084_v1 = vld [vmem:[#allocation4 + $0x64] ss:$16 sps:$4 sm:$0xff]   ;;  %v9086_v2 = vld [vmem:[#allocation4 + $0x6c] ss:$16 sps:$4 sm:$0xff]  }
 0x127   : > { %928 = vmatprep.mubr.bf16.mxu0 %v10288_v0  ;;  %969 = vmatprep.mubr.bf16.mxu1 %v10288_v0  ;;  %v9088_v3 = vld [vmem:[#allocation4 + $0x60] ss:$16 sps:$4 sm:$0xff]   ;;  %v9089_v4 = vld [vmem:[#allocation4 + $0x68] ss:$16 sps:$4 sm:$0xff]   ;;  %v9090_v5 = vld [vmem:[#allocation4 + $0x44] ss:$16 sps:$4 sm:$0xff]  }
 0x128   : > { %904 = vmatprep.subr.bf16.mxu0 %v9084_v1  ;;  %945 = vmatprep.subr.bf16.mxu1 %v9086_v2  ;;  %v9092_v6 = vld [vmem:[#allocation4 + $0x4c] ss:$16 sps:$4 sm:$0xff]   ;;  %v9094_v7 = vld [vmem:[#allocation4 + $0x40] ss:$16 sps:$4 sm:$0xff]   ;;  %v9095_v8 = vld [vmem:[#allocation4 + $0x48] ss:$16 sps:$4 sm:$0xff]  }
 0x129   : > { %905 = vmatpush1.bf16.msra.mxu0 %v9088_v3  ;;  %946 = vmatpush1.bf16.msra.mxu1 %v9089_v4  ;;  %v9096_v9 = vld [vmem:[#allocation4 + $0x24] ss:$16 sps:$4 sm:$0xff]   ;;  %v9098_v10 = vld [vmem:[#allocation4 + $0x2c] ss:$16 sps:$4 sm:$0xff]   ;;  %v9100_v11 = vld [vmem:[#allocation4 + $0x20] ss:$16 sps:$4 sm:$0xff]  }
 0x12a   : > { %906 = vmatprep.subr.bf16.mxu0 %v9090_v5  ;;  %947 = vmatprep.subr.bf16.mxu1 %v9092_v6  ;;  %v9101_v12 = vld [vmem:[#allocation4 + $0x28] ss:$16 sps:$4 sm:$0xff]   ;;  %v9102_v13 = vld [vmem:[#allocation4 + $0x4] ss:$16 sps:$4 sm:$0xff]   ;;  %v9104_v14 = vld [vmem:[#allocation4 + $0xc] ss:$16 sps:$4 sm:$0xff]  }
 0x12b   : > { %v9106_v15 = vld [vmem:[#allocation4] ss:$16 sps:$4 sm:$0xff]   ;;  %v9107_v16 = vld [vmem:[#allocation4 + $0x8] ss:$16 sps:$4 sm:$0xff]   ;;  %v9108_v21 = vld [vmem:[#allocation7 + $0x70] ss:$8 sps:$4 sm:$0xff]  }
 0x12c   : > { %v772_v17 = vld [vmem:[#allocation2] sm:$0xff]  ;;  %vm892_vm0 = vcmask 523264   ;;  %v9116_v23 = vld [vmem:[#allocation7 + $0x64] ss:$8 sps:$4 sm:$0xff]   ;;  %v9114_v25 = vld [vmem:[#allocation7 + $0x60] ss:$8 sps:$4 sm:$0xff]  }
 0x12d   : > { %907 = vmatpush1.bf16.msra.mxu0 %v9094_v7  ;;  %948 = vmatpush1.bf16.msra.mxu1 %v9095_v8  ;;  %v9110_v18 = vld [vmem:[#allocation7 + $0x74] ss:$8 sps:$4 sm:$0xff]   ;;  %v773_v20 = vpack.c.bf16 %v772_v17, %v772_v17  ;;  %v9111_v22 = vld [vmem:[#allocation7 + $0x170] ss:$8 sps:$4 sm:$0xff]   ;;  %v9119_v24 = vld [vmem:[#allocation7 + $0x164] ss:$8 sps:$4 sm:$0xff]  }
 0x12e   : > { %908 = vmatprep.subr.bf16.mxu0 %v9096_v9  ;;  %949 = vmatprep.subr.bf16.mxu1 %v9098_v10  ;;  %v9113_v19 = vld [vmem:[#allocation7 + $0x174] ss:$8 sps:$4 sm:$0xff]   ;;  %v9117_v26 = vld [vmem:[#allocation7 + $0x160] ss:$8 sps:$4 sm:$0xff]   ;;  %v9120_v29 = vld [vmem:[#allocation7 + $0x50] ss:$8 sps:$4 sm:$0xff]  }
 0x12f   : > { %v9122_v27 = vld [vmem:[#allocation7 + $0x54] ss:$8 sps:$4 sm:$0xff]   ;;  %v9123_v30 = vld [vmem:[#allocation7 + $0x150] ss:$8 sps:$4 sm:$0xff]   ;;  %v9128_v31 = vld [vmem:[#allocation7 + $0x44] ss:$8 sps:$4 sm:$0xff]  }
 0x130   : > { %v9125_v28 = vld [vmem:[#allocation7 + $0x154] ss:$8 sps:$4 sm:$0xff]   ;;  %v9131_v32 = vld [vmem:[#allocation7 + $0x144] ss:$8 sps:$4 sm:$0xff]   ;;  %v9126_v33 = vld [vmem:[#allocation7 + $0x40] ss:$8 sps:$4 sm:$0xff]  }
 0x131   : > { %909 = vmatpush1.bf16.msra.mxu0 %v9100_v11  ;;  %950 = vmatpush1.bf16.msra.mxu1 %v9101_v12  ;;  %v9129_v34 = vld [vmem:[#allocation7 + $0x140] ss:$8 sps:$4 sm:$0xff]   ;;  %v9134_v35 = vld [vmem:[#allocation7 + $0x34] ss:$8 sps:$4 sm:$0xff]   ;;  %v9132_v37 = vld [vmem:[#allocation7 + $0x30] ss:$8 sps:$4 sm:$0xff]  }
 0x132   : > { %910 = vmatprep.subr.bf16.mxu0 %v9102_v13  ;;  %951 = vmatprep.subr.bf16.mxu1 %v9104_v14  ;;  %v9137_v36 = vld [vmem:[#allocation7 + $0x134] ss:$8 sps:$4 sm:$0xff]   ;;  %v9135_v38 = vld [vmem:[#allocation7 + $0x130] ss:$8 sps:$4 sm:$0xff]   ;;  %v9140_v39 = vld [vmem:[#allocation7 + $0x24] ss:$8 sps:$4 sm:$0xff]  }
 0x133   : > { %v9143_v40 = vld [vmem:[#allocation7 + $0x124] ss:$8 sps:$4 sm:$0xff]   ;;  %v9138_v41 = vld [vmem:[#allocation7 + $0x20] ss:$8 sps:$4 sm:$0xff]   ;;  %v9146_v43 = vld [vmem:[#allocation7 + $0x14] ss:$8 sps:$4 sm:$0xff]  }
 0x134   : > { %v9141_v42 = vld [vmem:[#allocation7 + $0x120] ss:$8 sps:$4 sm:$0xff]   ;;  %v9149_v44 = vld [vmem:[#allocation7 + $0x114] ss:$8 sps:$4 sm:$0xff]   ;;  %v9144_v45 = vld [vmem:[#allocation7 + $0x10] ss:$8 sps:$4 sm:$0xff]  }
 0x135   : > { %911 = vmatpush1.bf16.msra.mxu0 %v9106_v15  ;;  %952 = vmatpush1.bf16.msra.mxu1 %v9107_v16  ;;  %v9147_v46 = vld [vmem:[#allocation7 + $0x110] ss:$8 sps:$4 sm:$0xff]   ;;  %v9152_v47 = vld [vmem:[#allocation7 + $0x4] ss:$8 sps:$4 sm:$0xff]   ;;  %v9150_v49 = vld [vmem:[#allocation7] ss:$8 sps:$4 sm:$0xff]  }
 0x136   : > { %1382 = vmatprep.subr.bf16.mxu0 %v9110_v18  ;;  %1423 = vmatprep.subr.bf16.mxu1 %v9113_v19  ;;  %v9155_v48 = vld [vmem:[#allocation7 + $0x104] ss:$8 sps:$4 sm:$0xff]   ;;  %v9153_v50 = vld [vmem:[#allocation7 + $0x100] ss:$8 sps:$4 sm:$0xff]   ;;  %v9158_v51 = vld [vmem:[#allocation7 + $0xf4] ss:$8 sps:$4 sm:$0xff]  }
 0x137   : > { %v9161_v52 = vld [vmem:[#allocation7 + $0x1f4] ss:$8 sps:$4 sm:$0xff]   ;;  %v9156_v53 = vld [vmem:[#allocation7 + $0xf0] ss:$8 sps:$4 sm:$0xff]   ;;  %v9164_v55 = vld [vmem:[#allocation7 + $0xe4] ss:$8 sps:$4 sm:$0xff]  }
 0x138   : > { %7387 = vmatmul.mubr.msk.bf16.vlgmr.msra.gmra.mxu0 %vm892_vm0, %v773_v20  ;;  %7388 = vmatmul.mubr.msk.bf16.vlgmr.msra.gmra.mxu1 %vm892_vm0, %v773_v20  ;;  %v9159_v54 = vld [vmem:[#allocation7 + $0x1f0] ss:$8 sps:$4 sm:$0xff]   ;;  %v9167_v56 = vld [vmem:[#allocation7 + $0x1e4] ss:$8 sps:$4 sm:$0xff]   ;;  %v9162_v57 = vld [vmem:[#allocation7 + $0xe0] ss:$8 sps:$4 sm:$0xff]  }
 0x139   : > { %1383 = vmatpush1.bf16.msra.mxu0 %v9108_v21  ;;  %1424 = vmatpush1.bf16.msra.mxu1 %v9111_v22  ;;  %v9165_v58 = vld [vmem:[#allocation7 + $0x1e0] ss:$8 sps:$4 sm:$0xff]   ;;  %v9170_v59 = vld [vmem:[#allocation7 + $0xd4] ss:$8 sps:$4 sm:$0xff]   ;;  %v9168_v61 = vld [vmem:[#allocation7 + $0xd0] ss:$8 sps:$4 sm:$0xff]   ;;  %v792_v21 = vlaneseq }
 0x13a   : > { %1384 = vmatprep.subr.bf16.mxu0 %v9116_v23  ;;  %1425 = vmatprep.subr.bf16.mxu1 %v9119_v24  ;;  %v9173_v60 = vld [vmem:[#allocation7 + $0x1d4] ss:$8 sps:$4 sm:$0xff]   ;;  %v9171_v62 = vld [vmem:[#allocation7 + $0x1d0] ss:$8 sps:$4 sm:$0xff]   ;;  %v9176_v63 = vld [vmem:[#allocation7 + $0xc4] ss:$8 sps:$4 sm:$0xff]  }
 0x13b   : > { %v9179_v1 = vld [vmem:[#allocation7 + $0x1c4] ss:$8 sps:$4 sm:$0xff]   ;;  %v9174_v2 = vld [vmem:[#allocation7 + $0xc0] ss:$8 sps:$4 sm:$0xff]   ;;  %v9182_v4 = vld [vmem:[#allocation7 + $0xb4] ss:$8 sps:$4 sm:$0xff]  }
 0x13c   : > { %v9177_v3 = vld [vmem:[#allocation7 + $0x1c0] ss:$8 sps:$4 sm:$0xff]   ;;  %v9185_v5 = vld [vmem:[#allocation7 + $0x1b4] ss:$8 sps:$4 sm:$0xff]   ;;  %v9180_v6 = vld [vmem:[#allocation7 + $0xb0] ss:$8 sps:$4 sm:$0xff]  }
 0x13d   : > { %1385 = vmatpush1.bf16.msra.mxu0 %v9114_v25  ;;  %1426 = vmatpush1.bf16.msra.mxu1 %v9117_v26  ;;  %v9183_v7 = vld [vmem:[#allocation7 + $0x1b0] ss:$8 sps:$4 sm:$0xff]   ;;  %v9188_v8 = vld [vmem:[#allocation7 + $0xa4] ss:$8 sps:$4 sm:$0xff]   ;;  %v9186_v10 = vld [vmem:[#allocation7 + $0xa0] ss:$8 sps:$4 sm:$0xff]  }
 0x13e   : > { %1386 = vmatprep.subr.bf16.mxu0 %v9122_v27  ;;  %1427 = vmatprep.subr.bf16.mxu1 %v9125_v28  ;;  %v9191_v9 = vld [vmem:[#allocation7 + $0x1a4] ss:$8 sps:$4 sm:$0xff]   ;;  %v9189_v11 = vld [vmem:[#allocation7 + $0x1a0] ss:$8 sps:$4 sm:$0xff]   ;;  %v9194_v12 = vld [vmem:[#allocation7 + $0x94] ss:$8 sps:$4 sm:$0xff]  }
 0x13f   : > { %v9197_v13 = vld [vmem:[#allocation7 + $0x194] ss:$8 sps:$4 sm:$0xff]   ;;  %v9192_v14 = vld [vmem:[#allocation7 + $0x90] ss:$8 sps:$4 sm:$0xff]   ;;  %v9200_v16 = vld [vmem:[#allocation7 + $0x84] ss:$8 sps:$4 sm:$0xff]  }
 0x140   : > { %v9195_v15 = vld [vmem:[#allocation7 + $0x190] ss:$8 sps:$4 sm:$0xff]   ;;  %v9203_v17 = vld [vmem:[#allocation7 + $0x184] ss:$8 sps:$4 sm:$0xff]   ;;  %v9198_v18 = vld [vmem:[#allocation7 + $0x80] ss:$8 sps:$4 sm:$0xff]  }
 0x141   : > { %1387 = vmatpush1.bf16.msra.mxu0 %v9120_v29  ;;  %1428 = vmatpush1.bf16.msra.mxu1 %v9123_v30  ;;  %v9201_v19 = vld [vmem:[#allocation7 + $0x180] ss:$8 sps:$4 sm:$0xff]   ;;  %s11594_s21 = sld [smem:[#allocation36_spill]]  ;;  %v793_v22 = vshrl.u32 %v792_v21, 7  ;;  %v790_v25 = vld [vmem:[#allocation6] sm:$0xf] }
 0x142   : > { %1388 = vmatprep.subr.bf16.mxu0 %v9128_v31  ;;  %1429 = vmatprep.subr.bf16.mxu1 %v9131_v32  ;;  %vm1650_vm1 = vcmask 1043456   ;;  %vm10290_vm2 = vmmov 0   ;;  %vm1646_vm3 = vcmask 162816   ;;  %vm2483_vm4 = vcmask 1041408   ;;  %p2444_p13 = scmp.eq.s32.totalorder %s11582_s15, 1  ;;  %s757_s17 = smul.u32 5, %s11582_s15 }
 0x143   : > { %v10729_v23 = vsub.s32 0, %v793_v22  ;;  %v10731_v24 = vsub.s32 2, %v793_v22  ;;  %v10733_v26 = vsub.s32 1, %v793_v22  ;;  %v10735_v27 = vsub.s32 3, %v793_v22  ;;  %s11597_s18 = sld [smem:[#allocation39_spill]] }
 0x144   : > { %s2445_s3 = scalar_select %p2444_p13, 1, 0 }
 0x145   : > { %1389 = vmatpush1.bf16.msra.mxu0 %v9126_v33  ;;  %1430 = vmatpush1.bf16.msra.mxu1 %v9129_v34  ;;  %v795_v28 = vrot.slane %v790_v25, %v10729_v23  ;;  %v803_v29 = vrot.slane %v790_v25, %v10731_v24  ;;  %v799_v30 = vrot.slane %v790_v25, %v10733_v26  ;;  %p758_p4 = scmp.lt.s32.totalorder %s757_s17, 9  ;;  %s11598_s5 = sld [smem:[#allocation40_spill]] }
 0x146   : > { %1390 = vmatprep.subr.bf16.mxu0 %v9134_v35  ;;  %1431 = vmatprep.subr.bf16.mxu1 %v9137_v36  ;;  %v807_v31 = vrot.slane %v790_v25, %v10735_v27 }
 0x147   : > { %v9204_v20 = vld [vmem:[%s11594_s21 + $0x78] sm:$0xff]   ;;  %s11604_s17 = smov (!%p758_p4, %s757_s17), 9 }
 0x148   : > { %s8554_s22 = sshll.u32 %s11604_s17, 8  ;;  %s7370_s15 = sshll.u32 %s11604_s17, 3 }
 0x149   : > { %1391 = vmatpush1.bf16.msra.mxu0 %v9132_v37  ;;  %1432 = vmatpush1.bf16.msra.mxu1 %v9135_v38  ;;  %s10933_s1 = scalar_lea.vmem %s11597_s18, %s8554_s22 }
 0x14a   : > { %1392 = vmatprep.subr.bf16.mxu0 %v9140_v39  ;;  %1433 = vmatprep.subr.bf16.mxu1 %v9143_v40 }
 0x14b   : > { %s11096_s24 = scalar_lea.vmem %s11598_s5, %s7370_s15 }
 0x14d   : > { %1393 = vmatpush1.bf16.msra.mxu0 %v9138_v41  ;;  %1434 = vmatpush1.bf16.msra.mxu1 %v9141_v42 }
 0x14e   : > { %1394 = vmatprep.subr.bf16.mxu0 %v9146_v43  ;;  %1435 = vmatprep.subr.bf16.mxu1 %v9149_v44 }
 0x151   : > { %1395 = vmatpush1.bf16.msra.mxu0 %v9144_v45  ;;  %1436 = vmatpush1.bf16.msra.mxu1 %v9147_v46 }
 0x152   : > { %1396 = vmatprep.subr.bf16.mxu0 %v9152_v47  ;;  %1437 = vmatprep.subr.bf16.mxu1 %v9155_v48 }
 0x155   : > { %1397 = vmatpush1.bf16.msra.mxu0 %v9150_v49  ;;  %1438 = vmatpush1.bf16.msra.mxu1 %v9153_v50 }
 0x156   : > { %1398 = vmatprep.subr.bf16.mxu0 %v9158_v51  ;;  %1439 = vmatprep.subr.bf16.mxu1 %v9161_v52  ;;  %v9205_v51 = vld [vmem:[%s11594_s21 + $0x38] sm:$0xff]  }
 0x159   : > { %1399 = vmatpush2.bf16.msra.mxu0 %v9156_v53  ;;  %1440 = vmatpush2.bf16.msra.mxu1 %v9159_v54  ;;  %v9206_v53 = vld [vmem:[%s11594_s21 + $0x70] sm:$0xff]  }
 0x15a   : > { %1400 = vmatprep.subr.bf16.mxu0 %v9164_v55  ;;  %1441 = vmatprep.subr.bf16.mxu1 %v9167_v56  ;;  %v9207_v54 = vld [vmem:[%s11594_s21 + $0x30] sm:$0xff]   ;;  %v9208_v55 = vld [vmem:[%s11594_s21 + $0x68] sm:$0xff]  }
 0x15b   : > { %v9209_v56 = vld [vmem:[%s11594_s21 + $0x28] sm:$0xff]  }
 0x15d   : > { %1401 = vmatpush2.bf16.msra.mxu0 %v9162_v57  ;;  %1442 = vmatpush2.bf16.msra.mxu1 %v9165_v58  ;;  %v9210_v57 = vld [vmem:[%s11594_s21 + $0x60] sm:$0xff]  }
 0x15e   : > { %1402 = vmatprep.subr.bf16.mxu0 %v9170_v59  ;;  %1443 = vmatprep.subr.bf16.mxu1 %v9173_v60  ;;  %v9211_v58 = vld [vmem:[%s11594_s21 + $0x20] sm:$0xff]   ;;  %v9212_v59 = vld [vmem:[%s11594_s21 + $0x58] sm:$0xff]  }
 0x15f   : > { %v9213_v60 = vld [vmem:[%s11594_s21 + $0x18] sm:$0xff]  }
 0x161   : > { %1403 = vmatpush2.bf16.msra.mxu0 %v9168_v61  ;;  %1444 = vmatpush2.bf16.msra.mxu1 %v9171_v62  ;;  %v9214_v61 = vld [vmem:[%s11594_s21 + $0x50] sm:$0xff]  }
 0x162   : > { %1404 = vmatprep.subr.bf16.mxu0 %v9176_v63  ;;  %1445 = vmatprep.subr.bf16.mxu1 %v9179_v1  ;;  %v9215_v62 = vld [vmem:[%s11594_s21 + $0x10] sm:$0xff]   ;;  %v9216_v63 = vld [vmem:[%s11594_s21 + $0x48] sm:$0xff]  }
 0x163   : > { %v9217_v1 = vld [vmem:[%s11594_s21 + $0x8] sm:$0xff]  }
 0x165   : > { %1405 = vmatpush2.bf16.msra.mxu0 %v9174_v2  ;;  %1446 = vmatpush2.bf16.msra.mxu1 %v9177_v3  ;;  %v9218_v2 = vld [vmem:[%s11594_s21 + $0x40] sm:$0xff]  }
 0x166   : > { %1406 = vmatprep.subr.bf16.mxu0 %v9182_v4  ;;  %1447 = vmatprep.subr.bf16.mxu1 %v9185_v5  ;;  %v9219_v3 = vld [vmem:[%s11594_s21] sm:$0xff]   ;;  %v10289_v5 = vmov 0.0  }
 0x167   : > { %v1645_v4 = vld [vmem:[#allocation12 + $0x10] sm:$0xf] }
 0x169   : > { %1407 = vmatpush2.bf16.msra.mxu0 %v9180_v6  ;;  %1448 = vmatpush2.bf16.msra.mxu1 %v9183_v7  ;;  %v1050_v6 = vld [vmem:[#allocation9] sm:$0x3] }
 0x16a   : > { %1408 = vmatprep.subr.bf16.mxu0 %v9188_v8  ;;  %1449 = vmatprep.subr.bf16.mxu1 %v9191_v9  ;;  %v1055_v7 = vrot.slane %v1050_v6, %v10729_v23  ;;  %v1059_v8 = vrot.slane %v1050_v6, %v10733_v26 }
 0x16d   : > { %1409 = vmatpush2.bf16.msra.mxu0 %v9186_v10  ;;  %1450 = vmatpush2.bf16.msra.mxu1 %v9189_v11 }
 0x16e   : > { %1410 = vmatprep.subr.bf16.mxu0 %v9194_v12  ;;  %1451 = vmatprep.subr.bf16.mxu1 %v9197_v13 }
 0x171   : > { %1411 = vmatpush2.bf16.msra.mxu0 %v9192_v14  ;;  %1452 = vmatpush2.bf16.msra.mxu1 %v9195_v15 }
 0x172   : > { %1412 = vmatprep.subr.bf16.mxu0 %v9200_v16  ;;  %1453 = vmatprep.subr.bf16.mxu1 %v9203_v17 }
 0x175   : > { %1413 = vmatpush2.bf16.msra.mxu0 %v9198_v18  ;;  %1454 = vmatpush2.bf16.msra.mxu1 %v9201_v19 }
 0x176   : > { %8558 = vmatprep.subr.bf16.mxu0 %v9204_v20  ;;  %8840 = vmatprep.subr.mxu1 %v10289_v5 }
 0x1f8   : > { %v930_v32 = vpop.f32.mrf.mxu0  ;;  %v971_v33 = vpop.f32.mrf.mxu1 }
 0x1f9   : > { %v931_v34 = vadd.f32 %v930_v32, %v795_v28  ;;  %v972_v35 = vadd.f32 %v971_v33, %v803_v29  ;;  %v1644_v29 = vld [vmem:[#allocation12 + $0x8] sm:$0xff]  ;;  %v7453_v32 = vld [vmem:[#allocation10] ss:$0 sm:$0xff] }
 0x1fa   : > { %v932_v36 = vpop.f32.mrf.mxu0  ;;  %v973_v37 = vpop.f32.mrf.mxu1 }
 0x1fb   : > { %v980_v38 = vmax.f32 %v972_v35, 0.0  ;;  %v933_v39 = vadd.f32 %v932_v36, %v799_v30  ;;  %v974_v40 = vadd.f32 %v973_v37, %v807_v31  ;;  %v978_v41 = vmax.f32 %v931_v34, 0.0  ;;  %v1643_v30 = vld [vmem:[#allocation12] sm:$0xff]  ;;  %v1727_v37 = vld [vmem:[#allocation12 + $0x28] sm:$0xf] }
 0x1fc   : > { %v934_v42 = vpop.f32.mrf.mxu0  ;;  %v975_v43 = vpop.f32.mrf.mxu1 }
 0x1fd   : > { %v979_v44 = vmax.f32 %v933_v39, 0.0  ;;  %v981_v45 = vmax.f32 %v974_v40, 0.0  ;;  %v984_v46 = vpack.c.bf16 %v980_v38, %v980_v38  ;;  %v982_v52 = vpack.c.bf16 %v978_v41, %v978_v41  ;;  %v1726_v39 = vld [vmem:[#allocation12 + $0x20] sm:$0xff]  ;;  %v1725_v40 = vld [vmem:[#allocation12 + $0x18] sm:$0xff] }
 0x1fe   : > { %v935_v47 = vpop.f32.mrf.mxu0  ;;  %v976_v48 = vpop.f32.mrf.mxu1  ;;  %v1807_v41 = vld [vmem:[#allocation12 + $0x40] sm:$0xf]  ;;  %v1806_v43 = vld [vmem:[#allocation12 + $0x38] sm:$0xff] }
 0x1ff   : > { %v983_v49 = vpack.c.bf16 %v979_v44, %v979_v44  ;;  %v985_v50 = vpack.c.bf16 %v981_v45, %v981_v45  ;;  %v1805_v45 = vld [vmem:[#allocation12 + $0x30] sm:$0xff] }
 0x200   : > { %v1886_v48 = vld [vmem:[#allocation12 + $0x50] sm:$0xff] }
 0x201   : > { %1414 = vmatprep.mubr.bf16.mxu0 %v983_v49  ;;  %1455 = vmatprep.mubr.bf16.mxu1 %v985_v50  ;;  %v1885_v50 = vld [vmem:[#allocation12 + $0x48] sm:$0xff] }
 0x202   : > { %1415 = vmatmul.mubr.bf16.vlgmr.msra.gmra.mxu0 %v982_v52  ;;  %1456 = vmatmul.mubr.bf16.vlgmr.msra.gmra.mxu1 %v984_v46  ;;  %v1887_v46 = vld [vmem:[#allocation12 + $0x58] sm:$0xf] }
 0x203   : > { %8559 = vmatpush3.bf16.msra.mxu0 %v9205_v51  ;;  %8841 = vmatpush3.msk.msra.mxu1 %vm1650_vm1, %v1645_v4  ;;  %v1967_v51 = vld [vmem:[#allocation12 + $0x70] sm:$0xf] }
 0x204   : > { %8560 = vmatprep.subr.bf16.mxu0 %v9206_v53  ;;  %8842 = vmatprep.subr.mxu1 %v10289_v5  ;;  %v1966_v53 = vld [vmem:[#allocation12 + $0x68] sm:$0xff]  ;;  %v2206_v4 = vld [vmem:[#allocation12 + $0xb0] sm:$0xff] }
 0x205   : > { %8843 = vmatpush3.msra.mxu1 %v1644_v29  ;;  %8846 = vmatprep.mubr.msk.f32.mxu1 %vm10290_vm2, %v10289_v5  ;;  %v9222_v29 = vld [vmem:[%s10700_s6] ss:$8 sps:$4 sm:$0xff]  }
 0x206   : > { %8844 = vmatprep.subr.mxu1 %v10289_v5 }
 0x207   : > { %8561 = vmatpush3.bf16.msra.mxu0 %v9207_v54  ;;  %8845 = vmatpush3.msra.mxu1 %v1643_v30  ;;  %v9227_v30 = vld [vmem:[%s10708_s29 + $0xec] ss:$16 sps:$4 sm:$0xff]  }
 0x208   : > { %8562 = vmatprep.subr.bf16.mxu0 %v9208_v55  ;;  %8849 = vmatprep.subr.mxu1 %v10289_v5  ;;  %v1965_v55 = vld [vmem:[#allocation12 + $0x60] sm:$0xff] }
 0x20b   : > { %8563 = vmatpush3.bf16.msra.mxu0 %v9209_v56  ;;  %v2047_v56 = vld [vmem:[#allocation12 + $0x88] sm:$0xf] }
 0x20c   : > { %8564 = vmatprep.subr.bf16.mxu0 %v9210_v57 }
 0x20f   : > { %8565 = vmatpush3.bf16.msra.mxu0 %v9211_v58  ;;  %v2046_v58 = vld [vmem:[#allocation12 + $0x80] sm:$0xff] }
 0x210   : > { %8566 = vmatprep.subr.bf16.mxu0 %v9212_v59 }
 0x213   : > { %8567 = vmatpush3.bf16.msra.mxu0 %v9213_v60  ;;  %v2045_v60 = vld [vmem:[#allocation12 + $0x78] sm:$0xff] }
 0x214   : > { %8568 = vmatprep.subr.bf16.mxu0 %v9214_v61  ;;  %v2127_v61 = vld [vmem:[#allocation12 + $0xa0] sm:$0xf] }
 0x217   : > { %8569 = vmatpush3.bf16.msra.mxu0 %v9215_v62  ;;  %v2126_v62 = vld [vmem:[#allocation12 + $0x98] sm:$0xff] }
 0x218   : > { %8570 = vmatprep.subr.bf16.mxu0 %v9216_v63  ;;  %v2125_v63 = vld [vmem:[#allocation12 + $0x90] sm:$0xff] }
 0x21b   : > { %8571 = vmatpush3.bf16.msra.mxu0 %v9217_v1 }
 0x21c   : > { %8572 = vmatprep.subr.bf16.mxu0 %v9218_v2 }
 0x21f   : > { %8573 = vmatpush3.bf16.msra.mxu0 %v9219_v3  ;;  %v2207_v3 = vld [vmem:[#allocation12 + $0xb8] sm:$0xf] }
 0x220   : > { %8894 = vmatprep.subr.mxu0 %v10289_v5 }
 0x2c2   : > { %v1416_v9 = vpop.f32.mrf.mxu0  ;;  %v1457_v10 = vpop.f32.mrf.mxu1 }
 0x2c3   : > { %v1417_v11 = vadd.f32 %v1416_v9, %v1055_v7  ;;  %v2287_v9 = vld [vmem:[#allocation12 + $0xd0] sm:$0xf] }
 0x2c4   : > { %v1418_v12 = vpop.f32.mrf.mxu0  ;;  %v1459_v13 = vpop.f32.mrf.mxu1 }
 0x2c5   : > { %v1458_v14 = vadd.f32 %v1457_v10, %v1417_v11  ;;  %v1419_v15 = vadd.f32 %v1418_v12, %v1059_v8  ;;  %v2205_v8 = vld [vmem:[#allocation12 + $0xa8] sm:$0xff]  ;;  %v2285_v11 = vld [vmem:[#allocation12 + $0xc0] sm:$0xff] }
 0x2c6   : > { %v1420_v16 = vpop.f32.mrf.mxu0  ;;  %v1461_v17 = vpop.f32.mrf.mxu1  ;;  %v2286_v10 = vld [vmem:[#allocation12 + $0xc8] sm:$0xff] }
 0x2c7   : > { %v1460_v18 = vadd.f32 %v1459_v13, %v1419_v15  ;;  %v1464_v19 = vmax.f32 %v1458_v14, 0.0  ;;  %v2452_v14 = vld [vmem:[%s10700_s6 + $0x10] sm:$0x33]  ;;  %v2367_v16 = vld [vmem:[#allocation12 + $0xe8] sm:$0xf] }
 0x2c8   : > { %v1421_v20 = vpop.f32.mrf.mxu0  ;;  %v1462_v21 = vpop.f32.mrf.mxu1  ;;  %v7493_v15 = vcombine.high %v2452_v14, %v2452_v14  ;;  %v2366_v17 = vld [vmem:[#allocation12 + $0xe0] sm:$0xff] }
 0x2c9   : > { %v1465_v22 = vmax.f32 %v1460_v18, 0.0  ;;  %v1466_v28 = vpack.c.bf16 %v1464_v19, %v1464_v19  ;;  %v2365_v18 = vld [vmem:[#allocation12 + $0xd8] sm:$0xff]  ;;  %v7492_v19 = vcombine.low %v2452_v14, %v2452_v14  ;;  %v2446_v20 = vstv %s2445_s3 }
 0x2ca   : > { %vm10881_vm5 = vcmp.eq.s32.totalorder %v2446_v20, 1  ;;  %v9275_v14 = vld [vmem:[%s10708_s29 + $0xa4] ss:$16 sps:$4 sm:$0xff]  }
 0x2cb   : > { %v1467_v25 = vpack.c.bf16 %v1465_v22, %v1465_v22  ;;  %v2485_v21 = vsel %vm2483_vm4, %v7492_v19, 0  ;;  %v9224_v22 = vld [vmem:[%s10700_s6 + $0x4] ss:$8 sps:$4 sm:$0xff]  }
 0x2cd   : > { %1635 = vmatprep.mubr.bf16.mxu0 %v1467_v25 }
 0x2ce   : > { %1636 = vmatmul.mubr.bf16.vlgmr.msra.gmra.mxu0 %v1466_v28  ;;  %v9774_v28 = vld [vmem:[%s10708_s29 + $0x8ac] ss:$16 sps:$4 sm:$0xff]  }
 0x2cf   : > { %8900 = vmatprep.mubr.msk.f32.mxu0 %vm10290_vm2, %v10289_v5  ;;  %8895 = vmatpush3.msk.msra.mxu0 %vm1650_vm1, %v2127_v61  ;;  %v9264_v61 = vld [vmem:[%s10708_s29 + $0x168] ss:$16 sps:$4 sm:$0xff]  }
 0x2d0   : > { %8896 = vmatprep.subr.mxu0 %v10289_v5 }
 0x2d1   : > { %8897 = vmatpush3.msra.mxu0 %v2126_v62  ;;  %v9272_v62 = vld [vmem:[%s10708_s29 + $0x14c] ss:$16 sps:$4 sm:$0xff]  }
 0x2d2   : > { %8898 = vmatprep.subr.mxu0 %v10289_v5 }
 0x2d3   : > { %8899 = vmatpush3.msra.mxu0 %v2125_v63  ;;  %v9270_v63 = vld [vmem:[%s10708_s29 + $0x148] ss:$16 sps:$4 sm:$0xff]  }
 0x2d4   : > { %8912 = vmatprep.subr.mxu0 %v10289_v5 }
 0x38e   : > { %v8574_v31 = vpop.f32.mrf.mxu0 }
 0x390   : > { %v8575_v33 = vpop.f32.mrf.mxu0 }
 0x391   : > { %v8576_v34 = vadd.f32 %v8575_v33, %v8574_v31 }
 0x392   : > { %v8577_v35 = vpop.f32.mrf.mxu0 }
 0x393   : > { %v1638_v36 = vadd.f32 %v8576_v34, %v7453_v32  ;;  %v9225_v32 = vld [vmem:[%s10708_s29 + $0xe8] ss:$16 sps:$4 sm:$0xff]   ;;  %v9230_v34 = vld [vmem:[%s10708_s29 + $0xcc] ss:$16 sps:$4 sm:$0xff]  }
 0x394   : > { %v8578_v38 = vpop.f32.mrf.mxu0  ;;  %v9228_v35 = vld [vmem:[%s10708_s29 + $0xc8] ss:$16 sps:$4 sm:$0xff]  }
 0x395   : > { %8847 = vmatmul.mubr.msk.f32.vlgmr.msra.gmra.mxu1 %vm1646_vm3, %v1638_v36  ;;  %v9233_v36 = vld [vmem:[%s10708_s29 + $0xac] ss:$16 sps:$4 sm:$0xff]  }
 0x396   : > { %8850 = vmatpush3.msk.msra.mxu1 %vm1650_vm1, %v1727_v37  ;;  %8855 = vmatprep.mubr.msk.f32.mxu1 %vm10290_vm2, %v10289_v5  ;;  %v9231_v37 = vld [vmem:[%s10708_s29 + $0xa8] ss:$16 sps:$4 sm:$0xff]   ;;  %v9236_v38 = vld [vmem:[%s10708_s29 + $0x8c] ss:$16 sps:$4 sm:$0xff]  }
 0x397   : > { %8851 = vmatprep.subr.mxu1 %v10289_v5 }
 0x398   : > { %8852 = vmatpush3.msra.mxu1 %v1726_v39  ;;  %v9234_v39 = vld [vmem:[%s10708_s29 + $0x88] ss:$16 sps:$4 sm:$0xff]  }
 0x399   : > { %8853 = vmatprep.subr.mxu1 %v10289_v5 }
 0x39a   : > { %8854 = vmatpush3.msra.mxu1 %v1725_v40  ;;  %v9239_v40 = vld [vmem:[%s10708_s29 + $0x6c] ss:$16 sps:$4 sm:$0xff]  }
 0x39b   : > { %8858 = vmatprep.subr.mxu1 %v10289_v5 }
 0x455   : > { %v10805_v42 = vpop.f32.mrf.mxu1 }
 0x456   : > { %8856 = vmatmul.mubr.msk.f32.vlgmr.msra.gmra.mxu1 %vm1646_vm3, %v10805_v42 }
 0x457   : > { %v8848_v44 = vpop.f32.mrf.mxu1  ;;  %8859 = vmatpush3.msk.msra.mxu1 %vm1650_vm1, %v1807_v41  ;;  %8864 = vmatprep.mubr.msk.f32.mxu1 %vm10290_vm2, %v10289_v5  ;;  %v9237_v41 = vld [vmem:[%s10708_s29 + $0x68] ss:$16 sps:$4 sm:$0xff]  }
 0x458   : > { %8860 = vmatprep.subr.mxu1 %v10289_v5  ;;  %v9245_v44 = vld [vmem:[%s10708_s29 + $0x2c] ss:$16 sps:$4 sm:$0xff]  }
 0x459   : > { %8861 = vmatpush3.msra.mxu1 %v1806_v43  ;;  %v9240_v43 = vld [vmem:[%s10708_s29 + $0x48] ss:$16 sps:$4 sm:$0xff]  }
 0x45a   : > { %8862 = vmatprep.subr.mxu1 %v10289_v5 }
 0x45b   : > { %8863 = vmatpush3.msra.mxu1 %v1805_v45  ;;  %v9243_v45 = vld [vmem:[%s10708_s29 + $0x28] ss:$16 sps:$4 sm:$0xff]  }
 0x45c   : > { %8867 = vmatprep.subr.mxu1 %v10289_v5 }
 0x516   : > { %v10815_v47 = vpop.f32.mrf.mxu1 }
 0x517   : > { %8865 = vmatmul.mubr.msk.f32.vlgmr.msra.gmra.mxu1 %vm1646_vm3, %v10815_v47 }
 0x518   : > { %v8857_v49 = vpop.f32.mrf.mxu1  ;;  %8868 = vmatpush3.msk.msra.mxu1 %vm1650_vm1, %v1887_v46  ;;  %8873 = vmatprep.mubr.msk.f32.mxu1 %vm10290_vm2, %v10289_v5  ;;  %v9248_v46 = vld [vmem:[%s10708_s29 + $0xc] ss:$16 sps:$4 sm:$0xff]  }
 0x519   : > { %8869 = vmatprep.subr.mxu1 %v10289_v5  ;;  %v9251_v49 = vld [vmem:[%s10708_s29 + $0x1ec] ss:$16 sps:$4 sm:$0xff]  }
 0x51a   : > { %8870 = vmatpush3.msra.mxu1 %v1886_v48  ;;  %v9246_v48 = vld [vmem:[%s10708_s29 + $0x8] ss:$16 sps:$4 sm:$0xff]  }
 0x51b   : > { %8871 = vmatprep.subr.mxu1 %v10289_v5 }
 0x51c   : > { %8872 = vmatpush3.msra.mxu1 %v1885_v50  ;;  %v9249_v50 = vld [vmem:[%s10708_s29 + $0x1e8] ss:$16 sps:$4 sm:$0xff]  }
 0x51d   : > { %8876 = vmatprep.subr.mxu1 %v10289_v5 }
 0x5d7   : > { %v10825_v52 = vpop.f32.mrf.mxu1 }
 0x5d8   : > { %8874 = vmatmul.mubr.msk.f32.vlgmr.msra.gmra.mxu1 %vm1646_vm3, %v10825_v52 }
 0x5d9   : > { %v8866_v54 = vpop.f32.mrf.mxu1  ;;  %8877 = vmatpush3.msk.msra.mxu1 %vm1650_vm1, %v1967_v51  ;;  %8882 = vmatprep.mubr.msk.f32.mxu1 %vm10290_vm2, %v10289_v5  ;;  %v9254_v51 = vld [vmem:[%s10708_s29 + $0x1cc] ss:$16 sps:$4 sm:$0xff]  }
 0x5da   : > { %8878 = vmatprep.subr.mxu1 %v10289_v5  ;;  %v9257_v54 = vld [vmem:[%s10708_s29 + $0x1ac] ss:$16 sps:$4 sm:$0xff]  }
 0x5db   : > { %8879 = vmatpush3.msra.mxu1 %v1966_v53  ;;  %v9252_v53 = vld [vmem:[%s10708_s29 + $0x1c8] ss:$16 sps:$4 sm:$0xff]  }
 0x5dc   : > { %8880 = vmatprep.subr.mxu1 %v10289_v5 }
 0x5dd   : > { %8881 = vmatpush3.msra.mxu1 %v1965_v55  ;;  %v9255_v55 = vld [vmem:[%s10708_s29 + $0x1a8] ss:$16 sps:$4 sm:$0xff]  }
 0x5de   : > { %8885 = vmatprep.subr.mxu1 %v10289_v5 }
 0x698   : > { %v10835_v57 = vpop.f32.mrf.mxu1 }
 0x699   : > { %8883 = vmatmul.mubr.msk.f32.vlgmr.msra.gmra.mxu1 %vm1646_vm3, %v10835_v57 }
 0x69a   : > { %v8875_v59 = vpop.f32.mrf.mxu1  ;;  %8886 = vmatpush3.msk.msra.mxu1 %vm1650_vm1, %v2047_v56  ;;  %8891 = vmatprep.mubr.msk.f32.mxu1 %vm10290_vm2, %v10289_v5  ;;  %v9260_v56 = vld [vmem:[%s10708_s29 + $0x18c] ss:$16 sps:$4 sm:$0xff]  }
 0x69b   : > { %8887 = vmatprep.subr.mxu1 %v10289_v5  ;;  %v9263_v59 = vld [vmem:[%s10708_s29 + $0xe4] ss:$16 sps:$4 sm:$0xff]  }
 0x69c   : > { %8888 = vmatpush3.msra.mxu1 %v2046_v58  ;;  %v9258_v58 = vld [vmem:[%s10708_s29 + $0x188] ss:$16 sps:$4 sm:$0xff]  }
 0x69d   : > { %8889 = vmatprep.subr.mxu1 %v10289_v5 }
 0x69e   : > { %8890 = vmatpush3.msra.mxu1 %v2045_v60  ;;  %v9266_v60 = vld [vmem:[%s10708_s29 + $0x16c] ss:$16 sps:$4 sm:$0xff]  }
 0x69f   : > { %8903 = vmatprep.subr.mxu1 %v10289_v5 }
 0x759   : > { %v10849_v1 = vpop.f32.mrf.mxu1 }
 0x75a   : > { %8892 = vmatmul.mubr.msk.f32.vlgmr.msra.gmra.mxu1 %vm1646_vm3, %v10849_v1 }
 0x75b   : > { %v8884_v2 = vpop.f32.mrf.mxu1  ;;  %8909 = vmatprep.mubr.msk.f32.mxu1 %vm10290_vm2, %v10289_v5  ;;  %8904 = vmatpush3.msk.msra.mxu1 %vm1650_vm1, %v2207_v3  ;;  %v9276_v3 = vld [vmem:[%s10708_s29 + $0x128] ss:$16 sps:$4 sm:$0xff]  }
 0x75c   : > { %8905 = vmatprep.subr.mxu1 %v10289_v5  ;;  %v9278_v2 = vld [vmem:[%s10708_s29 + $0x12c] ss:$16 sps:$4 sm:$0xff]  }
 0x75d   : > { %8906 = vmatpush3.msra.mxu1 %v2206_v4  ;;  %v9284_v4 = vld [vmem:[%s10708_s29 + $0x10c] ss:$16 sps:$4 sm:$0xff]  }
 0x75e   : > { %8907 = vmatprep.subr.mxu1 %v10289_v5 }
 0x75f   : > { %8908 = vmatpush3.msra.mxu1 %v2205_v8  ;;  %v9261_v8 = vld [vmem:[%s10708_s29 + $0xe0] ss:$16 sps:$4 sm:$0xff]  }
 0x760   : > { %8921 = vmatprep.subr.mxu1 %v10289_v5 }
 0x81a   : > { %v2120_v6 = vpop.f32.mrf.mxu1 }
 0x81b   : > { %8901 = vmatmul.mubr.msk.f32.vlgmr.msra.gmra.mxu0 %vm1646_vm3, %v2120_v6  ;;  %v2448_v31 = vsel %vm10881_vm5, %v2120_v6, %v10805_v42  ;;  %v9242_v42 = vld [vmem:[%s10708_s29 + $0x4c] ss:$16 sps:$4 sm:$0xff]   ;;  %v9282_v6 = vld [vmem:[%s10708_s29 + $0x108] ss:$16 sps:$4 sm:$0xff]  }
 0x81c   : > { %v8893_v7 = vpop.f32.mrf.mxu1  ;;  %8918 = vmatprep.mubr.msk.f32.mxu0 %vm10290_vm2, %v10289_v5  ;;  %8913 = vmatpush3.msk.msra.mxu0 %vm1650_vm1, %v2287_v9  ;;  %v2449_v33 = vpack.c.bf16 %v2448_v31, %v2448_v31  ;;  %v9269_v9 = vld [vmem:[%s10708_s29 + $0xc4] ss:$16 sps:$4 sm:$0xff]  }
 0x81d   : > { %8914 = vmatprep.subr.mxu0 %v10289_v5  ;;  %v9321_v7 = vld [vmem:[%s10933_s1 + $0xf8] sm:$0xff]  }
 0x81e   : > { %8915 = vmatpush3.msra.mxu0 %v2286_v10 }
 0x81f   : > { %8916 = vmatprep.subr.mxu0 %v10289_v5 }
 0x820   : > { %8917 = vmatpush3.msra.mxu0 %v2285_v11  ;;  %v9267_v11 = vld [vmem:[%s10708_s29 + $0xc0] ss:$16 sps:$4 sm:$0xff]  }
 0x821   : > { %7494 = vmatprep.subr.msk.bf16.mxu0 %vm2483_vm4, %v7493_v15 }
 0x8db   : > { %v10865_v12 = vpop.f32.mrf.mxu0 }
 0x8dc   : > { %8910 = vmatmul.mubr.msk.f32.vlgmr.msra.gmra.mxu1 %vm1646_vm3, %v10865_v12 }
 0x8dd   : > { %v8902_v13 = vpop.f32.mrf.mxu0  ;;  %8927 = vmatprep.mubr.msk.f32.mxu1 %vm10290_vm2, %v10289_v5  ;;  %8922 = vmatpush3.msk.msra.mxu1 %vm1650_vm1, %v2367_v16  ;;  %v9273_v16 = vld [vmem:[%s10708_s29 + $0xa0] ss:$16 sps:$4 sm:$0xff]  }
 0x8de   : > { %8923 = vmatprep.subr.mxu1 %v10289_v5  ;;  %v2453_v13 = vld [vmem:[%s10706_s30] sm:$0x3] }
 0x8df   : > { %8924 = vmatpush3.msra.mxu1 %v2366_v17  ;;  %v2458_v17 = vrot.slane %v2453_v13, %v10729_v23  ;;  %v2462_v19 = vrot.slane %v2453_v13, %v10733_v26  ;;  %v9331_v13 = vld [vmem:[%s10933_s1 + $0xd0] sm:$0xff]  }
 0x8e0   : > { %8925 = vmatprep.subr.mxu1 %v10289_v5 }
 0x8e1   : > { %8926 = vmatpush3.msra.mxu1 %v2365_v18  ;;  %v9281_v18 = vld [vmem:[%s10708_s29 + $0x84] ss:$16 sps:$4 sm:$0xff]  }
 0x8e2   : > { %2941 = vmatprep.subr.bf16.mxu1 %v9263_v59  ;;  %v9309_v59 = vld [vmem:[%s10708_s29 + $0x160] ss:$16 sps:$4 sm:$0xff]  }
 0x99c   : > { %v10879_v25 = vpop.f32.mrf.mxu1 }
 0x99d   : > { %8919 = vmatmul.mubr.msk.f32.vlgmr.msra.gmra.mxu0 %vm1646_vm3, %v10879_v25 }
 0x99e   : > { %2503 = vmatpush1.bf16.msra.mxu0 %v2485_v21  ;;  %v8911_v5 = vpop.f32.mrf.mxu1  ;;  %2522 = vmatprep.mubr.bf16.mxu0 %v10288_v0  ;;  %v9279_v21 = vld [vmem:[%s10708_s29 + $0x80] ss:$16 sps:$4 sm:$0xff]  }
 0x99f   : > { %2504 = vmatprep.subr.bf16.mxu0 %v9224_v22  ;;  %v9287_v5 = vld [vmem:[%s10708_s29 + $0x64] ss:$16 sps:$4 sm:$0xff]  }
 0x9a2   : > { %2505 = vmatpush1.bf16.msra.mxu0 %v9222_v29 }
 0x9a3   : > { %2982 = vmatprep.subr.bf16.mxu0 %v9227_v30 }
 0x9a5   : > { %7495 = vmatmul.mubr.msk.bf16.vlgmr.msra.gmra.mxu0 %vm1646_vm3, %v2449_v33  ;;  %v9285_v33 = vld [vmem:[%s10708_s29 + $0x60] ss:$16 sps:$4 sm:$0xff]  }
 0x9a6   : > { %2983 = vmatpush1.bf16.msra.mxu0 %v9225_v32 }
 0x9a7   : > { %2984 = vmatprep.subr.bf16.mxu0 %v9230_v34 }
 0x9aa   : > { %2985 = vmatpush1.bf16.msra.mxu0 %v9228_v35  ;;  %v9290_v35 = vld [vmem:[%s10708_s29 + $0x44] ss:$16 sps:$4 sm:$0xff]  }
 0x9ab   : > { %2986 = vmatprep.subr.bf16.mxu0 %v9233_v36  ;;  %v9322_v36 = vld [vmem:[%s10933_s1 + $0xb8] sm:$0xff]  }
 0x9ae   : > { %2987 = vmatpush1.bf16.msra.mxu0 %v9231_v37 }
 0x9af   : > { %2988 = vmatprep.subr.bf16.mxu0 %v9236_v38  ;;  %v9323_v38 = vld [vmem:[%s10933_s1 + $0xf0] sm:$0xff]  }
 0x9b2   : > { %2989 = vmatpush1.bf16.msra.mxu0 %v9234_v39 }
 0x9b3   : > { %2990 = vmatprep.subr.bf16.mxu0 %v9239_v40 }
 0x9b6   : > { %2991 = vmatpush1.bf16.msra.mxu0 %v9237_v41  ;;  %v9288_v41 = vld [vmem:[%s10708_s29 + $0x40] ss:$16 sps:$4 sm:$0xff]  }
 0x9b7   : > { %2992 = vmatprep.subr.bf16.mxu0 %v9242_v42  ;;  %v9293_v42 = vld [vmem:[%s10708_s29 + $0x24] ss:$16 sps:$4 sm:$0xff]  }
 0x9ba   : > { %2993 = vmatpush1.bf16.msra.mxu0 %v9240_v43  ;;  %v9324_v43 = vld [vmem:[%s10933_s1 + $0xb0] sm:$0xff]  }
 0x9bb   : > { %2994 = vmatprep.subr.bf16.mxu0 %v9245_v44  ;;  %v9291_v44 = vld [vmem:[%s10708_s29 + $0x20] ss:$16 sps:$4 sm:$0xff]  }
 0x9be   : > { %2995 = vmatpush1.bf16.msra.mxu0 %v9243_v45  ;;  %v9296_v45 = vld [vmem:[%s10708_s29 + $0x4] ss:$16 sps:$4 sm:$0xff]  }
 0x9bf   : > { %2996 = vmatprep.subr.bf16.mxu0 %v9248_v46  ;;  %v9294_v46 = vld [vmem:[%s10708_s29] ss:$16 sps:$4 sm:$0xff]  }
 0x9c2   : > { %2997 = vmatpush1.bf16.msra.mxu0 %v9246_v48  ;;  %v9299_v48 = vld [vmem:[%s10708_s29 + $0x1e4] ss:$16 sps:$4 sm:$0xff]  }
 0x9c3   : > { %2998 = vmatprep.subr.bf16.mxu0 %v9251_v49  ;;  %v9297_v49 = vld [vmem:[%s10708_s29 + $0x1e0] ss:$16 sps:$4 sm:$0xff]  }
 0x9c6   : > { %2999 = vmatpush2.bf16.msra.mxu0 %v9249_v50  ;;  %v9302_v50 = vld [vmem:[%s10708_s29 + $0x1c4] ss:$16 sps:$4 sm:$0xff]  }
 0x9c7   : > { %3000 = vmatprep.subr.bf16.mxu0 %v9254_v51  ;;  %v9300_v51 = vld [vmem:[%s10708_s29 + $0x1c0] ss:$16 sps:$4 sm:$0xff]  }
 0x9ca   : > { %3001 = vmatpush2.bf16.msra.mxu0 %v9252_v53  ;;  %v9305_v53 = vld [vmem:[%s10708_s29 + $0x1a4] ss:$16 sps:$4 sm:$0xff]  }
 0x9cb   : > { %3002 = vmatprep.subr.bf16.mxu0 %v9257_v54  ;;  %v9303_v54 = vld [vmem:[%s10708_s29 + $0x1a0] ss:$16 sps:$4 sm:$0xff]  }
 0x9ce   : > { %3003 = vmatpush2.bf16.msra.mxu0 %v9255_v55  ;;  %v9308_v55 = vld [vmem:[%s10708_s29 + $0x184] ss:$16 sps:$4 sm:$0xff]  }
 0x9cf   : > { %3004 = vmatprep.subr.bf16.mxu0 %v9260_v56  ;;  %v9306_v56 = vld [vmem:[%s10708_s29 + $0x180] ss:$16 sps:$4 sm:$0xff]  }
 0x9d2   : > { %3005 = vmatpush2.bf16.msra.mxu0 %v9258_v58  ;;  %v9311_v58 = vld [vmem:[%s10708_s29 + $0x164] ss:$16 sps:$4 sm:$0xff]  }
 0x9d3   : > { %3006 = vmatprep.subr.bf16.mxu0 %v9266_v60  ;;  %v9314_v60 = vld [vmem:[%s10708_s29 + $0x144] ss:$16 sps:$4 sm:$0xff]  }
 0x9d6   : > { %3007 = vmatpush2.bf16.msra.mxu0 %v9264_v61  ;;  %v9312_v61 = vld [vmem:[%s10708_s29 + $0x140] ss:$16 sps:$4 sm:$0xff]  }
 0x9d7   : > { %3008 = vmatprep.subr.bf16.mxu0 %v9272_v62  ;;  %v9317_v62 = vld [vmem:[%s10708_s29 + $0x124] ss:$16 sps:$4 sm:$0xff]  }
 0x9da   : > { %3009 = vmatpush2.bf16.msra.mxu0 %v9270_v63  ;;  %v9315_v63 = vld [vmem:[%s10708_s29 + $0x120] ss:$16 sps:$4 sm:$0xff]  }
 0x9db   : > { %3010 = vmatprep.subr.bf16.mxu0 %v9278_v2  ;;  %v9320_v2 = vld [vmem:[%s10708_s29 + $0x104] ss:$16 sps:$4 sm:$0xff]  }
 0x9de   : > { %3011 = vmatpush2.bf16.msra.mxu0 %v9276_v3  ;;  %v9318_v3 = vld [vmem:[%s10708_s29 + $0x100] ss:$16 sps:$4 sm:$0xff]  }
 0x9df   : > { %3012 = vmatprep.subr.bf16.mxu0 %v9284_v4  ;;  %v9325_v4 = vld [vmem:[%s10933_s1 + $0xe8] sm:$0xff]  }
 0x9e2   : > { %3013 = vmatpush2.bf16.msra.mxu0 %v9282_v6  ;;  %v9326_v6 = vld [vmem:[%s10933_s1 + $0xa8] sm:$0xff]  }
 0x9e3   : > { %8642 = vmatprep.subr.bf16.mxu0 %v9321_v7  ;;  %v9327_v7 = vld [vmem:[%s10933_s1 + $0xe0] sm:$0xff]  }
 0xa5d   : > { %v10938_v10 = vpop.f32.mrf.mxu0 }
 0xa5e   : > { %8928 = vmatmul.mubr.msk.f32.vlgmr.msra.gmra.mxu1 %vm1646_vm3, %v10938_v10 }
 0xa5f   : > { %2942 = vmatpush1.bf16.msra.mxu1 %v9261_v8  ;;  %v8920_v15 = vpop.f32.mrf.mxu0  ;;  %v9328_v8 = vld [vmem:[%s10933_s1 + $0xa0] sm:$0xff]  }
 0xa60   : > { %2943 = vmatprep.subr.bf16.mxu1 %v9269_v9  ;;  %v9329_v9 = vld [vmem:[%s10933_s1 + $0xd8] sm:$0xff]   ;;  %v9333_v15 = vld [vmem:[%s10933_s1 + $0xc8] sm:$0xff]  }
 0xa63   : > { %2944 = vmatpush1.bf16.msra.mxu1 %v9267_v11  ;;  %v9330_v11 = vld [vmem:[%s10933_s1 + $0x98] sm:$0xff]  }
 0xa64   : > { %2945 = vmatprep.subr.bf16.mxu1 %v9275_v14  ;;  %v9332_v14 = vld [vmem:[%s10933_s1 + $0x90] sm:$0xff]  }
 0xa65   : > { %v2524_v20 = vpop.f32.mrf.mxu0 }
 0xa66   : > { %v2525_v22 = vadd.f32 %v2524_v20, %v2458_v17  ;;  %v9335_v17 = vld [vmem:[%s10933_s1 + $0xc0] sm:$0xff]   ;;  %v9338_v20 = vld [vmem:[%s10933_s1 + $0x38] sm:$0xff]  }
 0xa67   : > { %v2526_v29 = vpop.f32.mrf.mxu0  ;;  %2946 = vmatpush1.bf16.msra.mxu1 %v9273_v16  ;;  %v9334_v16 = vld [vmem:[%s10933_s1 + $0x88] sm:$0xff]  }
 0xa68   : > { %v2531_v30 = vmax.f32 %v2525_v22, 0.0  ;;  %v2527_v31 = vadd.f32 %v2526_v29, %v2462_v19  ;;  %2947 = vmatprep.subr.bf16.mxu1 %v9281_v18  ;;  %v9336_v18 = vld [vmem:[%s10933_s1 + $0x80] sm:$0xff]   ;;  %v9337_v19 = vld [vmem:[%s10933_s1 + $0x78] sm:$0xff]   ;;  %v9340_v22 = vld [vmem:[%s10933_s1 + $0x30] sm:$0xff]  }
 0xa69   : > { %v2528_v32 = vpop.f32.mrf.mxu0  ;;  %v9342_v29 = vld [vmem:[%s10933_s1 + $0x28] sm:$0xff]  }
 0xa6a   : > { %v2532_v34 = vmax.f32 %v2527_v31, 0.0  ;;  %v2533_v40 = vpack.c.bf16 %v2531_v30, %v2531_v30  ;;  %v9343_v30 = vld [vmem:[%s10933_s1 + $0x60] sm:$0xff]   ;;  %v9345_v32 = vld [vmem:[%s10933_s1 + $0x58] sm:$0xff]  }
 0xa6b   : > { %v2529_v37 = vpop.f32.mrf.mxu0  ;;  %2948 = vmatpush1.bf16.msra.mxu1 %v9279_v21  ;;  %v9339_v21 = vld [vmem:[%s10933_s1 + $0x70] sm:$0xff]   ;;  %v9344_v31 = vld [vmem:[%s10933_s1 + $0x20] sm:$0xff]  }
 0xa6c   : > { %v2534_v39 = vpack.c.bf16 %v2532_v34, %v2532_v34  ;;  %2949 = vmatprep.subr.bf16.mxu1 %v9287_v5  ;;  %v9341_v5 = vld [vmem:[%s10933_s1 + $0x68] sm:$0xff]   ;;  %v9347_v34 = vld [vmem:[%s10933_s1 + $0x50] sm:$0xff]  }
 0xa6d   : > { %v9350_v37 = vld [vmem:[%s10933_s1 + $0x8] sm:$0xff]  }
 0xa6e   : > { %2973 = vmatprep.mubr.bf16.mxu1 %v2534_v39  ;;  %3014 = vmatprep.mubr.bf16.mxu0 %v2534_v39  ;;  %v9352_v39 = vld [vmem:[%s10933_s1] sm:$0xff]  }
 0xa6f   : > { %2950 = vmatpush1.bf16.msra.mxu1 %v9285_v33  ;;  %3015 = vmatmul.mubr.bf16.vlgmr.msra.gmra.mxu0 %v2533_v40  ;;  %v9346_v33 = vld [vmem:[%s10933_s1 + $0x18] sm:$0xff]  }
 0xa70   : > { %2951 = vmatprep.subr.bf16.mxu1 %v9290_v35  ;;  %8643 = vmatpush3.bf16.msra.mxu0 %v9322_v36  ;;  %v9348_v35 = vld [vmem:[%s10933_s1 + $0x10] sm:$0xff]   ;;  %v9349_v36 = vld [vmem:[%s10933_s1 + $0x48] sm:$0xff]  }
 0xa71   : > { %8644 = vmatprep.subr.bf16.mxu0 %v9323_v38  ;;  %v9351_v38 = vld [vmem:[%s10933_s1 + $0x40] sm:$0xff]  }
 0xa73   : > { %2952 = vmatpush1.bf16.msra.mxu1 %v9288_v41 }
 0xa74   : > { %2953 = vmatprep.subr.bf16.mxu1 %v9293_v42  ;;  %8645 = vmatpush3.bf16.msra.mxu0 %v9324_v43 }
 0xa75   : > { %8646 = vmatprep.subr.bf16.mxu0 %v9325_v4 }
 0xa77   : > { %2954 = vmatpush1.bf16.msra.mxu1 %v9291_v44  ;;  %v2599_v44 = vld [vmem:[%s10714_s12] sm:$0xf] }
 0xa78   : > { %2955 = vmatprep.subr.bf16.mxu1 %v9296_v45  ;;  %8647 = vmatpush3.bf16.msra.mxu0 %v9326_v6  ;;  %v2612_v45 = vrot.slane %v2599_v44, %v10731_v24 }
 0xa79   : > { %8648 = vmatprep.subr.bf16.mxu0 %v9327_v7 }
 0xa7b   : > { %2956 = vmatpush1.bf16.msra.mxu1 %v9294_v46  ;;  %v2616_v46 = vrot.slane %v2599_v44, %v10735_v27 }
 0xa7c   : > { %2957 = vmatprep.subr.bf16.mxu1 %v9299_v48  ;;  %8649 = vmatpush3.bf16.msra.mxu0 %v9328_v8 }
 0xa7d   : > { %8650 = vmatprep.subr.bf16.mxu0 %v9329_v9 }
 0xa7f   : > { %2958 = vmatpush2.bf16.msra.mxu1 %v9297_v49 }
 0xa80   : > { %2959 = vmatprep.subr.bf16.mxu1 %v9302_v50  ;;  %8651 = vmatpush3.bf16.msra.mxu0 %v9330_v11 }
 0xa81   : > { %8652 = vmatprep.subr.bf16.mxu0 %v9331_v13 }
 0xa83   : > { %2960 = vmatpush2.bf16.msra.mxu1 %v9300_v51 }
 0xa84   : > { %2961 = vmatprep.subr.bf16.mxu1 %v9305_v53  ;;  %8653 = vmatpush3.bf16.msra.mxu0 %v9332_v14 }
 0xa85   : > { %8654 = vmatprep.subr.bf16.mxu0 %v9333_v15  ;;  %v9357_v15 = vld [vmem:[%s10700_s6 + $0x1c] ss:$8 sps:$4 sm:$0xff]  }
 0xa87   : > { %2962 = vmatpush2.bf16.msra.mxu1 %v9303_v54 }
 0xa88   : > { %2963 = vmatprep.subr.bf16.mxu1 %v9308_v55  ;;  %8655 = vmatpush3.bf16.msra.mxu0 %v9334_v16  ;;  %v9355_v16 = vld [vmem:[%s10700_s6 + $0x18] ss:$8 sps:$4 sm:$0xff]  }
 0xa89   : > { %8656 = vmatprep.subr.bf16.mxu0 %v9335_v17  ;;  %v3375_v17 = vsel %vm10881_vm5, %v10865_v12, %v10815_v47  ;;  %v9369_v47 = vld [vmem:[%s10708_s29 + $0x2cc] ss:$16 sps:$4 sm:$0xff]   ;;  %v9364_v12 = vld [vmem:[%s10708_s29 + $0x2c0] ss:$16 sps:$4 sm:$0xff]  }
 0xa8b   : > { %2964 = vmatpush2.bf16.msra.mxu1 %v9306_v56 }
 0xa8c   : > { %2965 = vmatprep.subr.bf16.mxu1 %v9311_v58  ;;  %8657 = vmatpush3.bf16.msra.mxu0 %v9336_v18  ;;  %v3376_v18 = vpack.c.bf16 %v3375_v17, %v3375_v17  ;;  %v9433_v17 = vld [vmem:[%s10708_s29 + $0x368] ss:$16 sps:$4 sm:$0xff]  }
 0xa8f   : > { %2966 = vmatpush2.bf16.msra.mxu1 %v9309_v59 }
 0xa90   : > { %2967 = vmatprep.subr.bf16.mxu1 %v9314_v60  ;;  %v2604_v60 = vrot.slane %v2599_v44, %v10729_v23 }
 0xa93   : > { %2968 = vmatpush2.bf16.msra.mxu1 %v9312_v61  ;;  %v2608_v61 = vrot.slane %v2599_v44, %v10733_v26  ;;  %v9393_v44 = vld [vmem:[%s10708_s29 + $0x24c] ss:$16 sps:$4 sm:$0xff]  }
 0xa94   : > { %2969 = vmatprep.subr.bf16.mxu1 %v9317_v62 }
 0xa97   : > { %2970 = vmatpush2.bf16.msra.mxu1 %v9315_v63 }
 0xa98   : > { %2971 = vmatprep.subr.bf16.mxu1 %v9320_v2 }
 0xa9b   : > { %2972 = vmatpush2.bf16.msra.mxu1 %v9318_v3 }
 0xa9c   : > { %8620 = vmatprep.subr.bf16.mxu1 %v9337_v19  ;;  %v9360_v19 = vld [vmem:[%s10708_s29 + $0x2e4] ss:$16 sps:$4 sm:$0xff]  }
 0xa9d   : > { %3871 = vmatprep.subr.bf16.mxu0 %v9360_v19  ;;  %v9438_v19 = vld [vmem:[%s10708_s29 + $0x344] ss:$16 sps:$4 sm:$0xff]  }
 0xa9e   : > { %2974 = vmatmul.mubr.bf16.vlgmr.msra.gmra.mxu1 %v2533_v40  ;;  %v7595_v40 = vld [vmem:[%s10700_s6 + $0x28] sm:$0x33] }
 0xa9f   : > { %8621 = vmatpush3.bf16.msra.mxu1 %v9338_v20  ;;  %v7600_v41 = vcombine.high %v7595_v40, %v7595_v40  ;;  %v7599_v7 = vcombine.low %v7595_v40, %v7595_v40  ;;  %v9363_v20 = vld [vmem:[%s10708_s29 + $0x2ec] ss:$16 sps:$4 sm:$0xff]   ;;  %v9382_v40 = vld [vmem:[%s10708_s29 + $0x260] ss:$16 sps:$4 sm:$0xff]  }
 0xaa0   : > { %8622 = vmatprep.subr.bf16.mxu1 %v9339_v21  ;;  %v9358_v21 = vld [vmem:[%s10708_s29 + $0x2e0] ss:$16 sps:$4 sm:$0xff]  }
 0xaa1   : > { %v3413_v14 = vsel %vm2483_vm4, %v7599_v7, 0  ;;  %v9418_v7 = vld [vmem:[%s10708_s29 + $0x3a0] ss:$16 sps:$4 sm:$0xff]  }
 0xaa3   : > { %8623 = vmatpush3.bf16.msra.mxu1 %v9340_v22  ;;  %v9361_v22 = vld [vmem:[%s10708_s29 + $0x2e8] ss:$16 sps:$4 sm:$0xff]  }
 0xaa4   : > { %8624 = vmatprep.subr.bf16.mxu1 %v9341_v5  ;;  %v9366_v5 = vld [vmem:[%s10708_s29 + $0x2c4] ss:$16 sps:$4 sm:$0xff]  }
 0xaa7   : > { %8625 = vmatpush3.bf16.msra.mxu1 %v9342_v29  ;;  %v9367_v29 = vld [vmem:[%s10708_s29 + $0x2c8] ss:$16 sps:$4 sm:$0xff]  }
 0xaa8   : > { %8626 = vmatprep.subr.bf16.mxu1 %v9343_v30  ;;  %v9370_v30 = vld [vmem:[%s10708_s29 + $0x2a0] ss:$16 sps:$4 sm:$0xff]  }
 0xaab   : > { %8627 = vmatpush3.bf16.msra.mxu1 %v9344_v31  ;;  %v9372_v31 = vld [vmem:[%s10708_s29 + $0x2a4] ss:$16 sps:$4 sm:$0xff]  }
 0xaac   : > { %8628 = vmatprep.subr.bf16.mxu1 %v9345_v32  ;;  %v9373_v32 = vld [vmem:[%s10708_s29 + $0x2a8] ss:$16 sps:$4 sm:$0xff]  }
 0xaaf   : > { %8629 = vmatpush3.bf16.msra.mxu1 %v9346_v33  ;;  %v9375_v33 = vld [vmem:[%s10708_s29 + $0x2ac] ss:$16 sps:$4 sm:$0xff]  }
 0xab0   : > { %8630 = vmatprep.subr.bf16.mxu1 %v9347_v34  ;;  %v9378_v34 = vld [vmem:[%s10708_s29 + $0x284] ss:$16 sps:$4 sm:$0xff]  }
 0xab3   : > { %8631 = vmatpush3.bf16.msra.mxu1 %v9348_v35  ;;  %v9381_v35 = vld [vmem:[%s10708_s29 + $0x28c] ss:$16 sps:$4 sm:$0xff]  }
 0xab4   : > { %8632 = vmatprep.subr.bf16.mxu1 %v9349_v36  ;;  %v9376_v36 = vld [vmem:[%s10708_s29 + $0x280] ss:$16 sps:$4 sm:$0xff]  }
 0xab7   : > { %8633 = vmatpush3.bf16.msra.mxu1 %v9350_v37  ;;  %v9379_v37 = vld [vmem:[%s10708_s29 + $0x288] ss:$16 sps:$4 sm:$0xff]  }
 0xab8   : > { %8634 = vmatprep.subr.bf16.mxu1 %v9351_v38  ;;  %v9384_v38 = vld [vmem:[%s10708_s29 + $0x264] ss:$16 sps:$4 sm:$0xff]  }
 0xabb   : > { %8635 = vmatpush3.bf16.msra.mxu1 %v9352_v39  ;;  %v9387_v39 = vld [vmem:[%s10708_s29 + $0x26c] ss:$16 sps:$4 sm:$0xff]  }
 0xabc   : > { %7601 = vmatprep.subr.msk.bf16.mxu1 %vm2483_vm4, %v7600_v41  ;;  %v9385_v41 = vld [vmem:[%s10708_s29 + $0x268] ss:$16 sps:$4 sm:$0xff]  }
 0xb1e   : > { %v11007_v42 = vpop.f32.mrf.mxu1 }
 0xb20   : > { %v8929_v43 = vpop.f32.mrf.mxu1 }
 0xb21   : > { %v9390_v43 = vld [vmem:[%s10708_s29 + $0x244] ss:$16 sps:$4 sm:$0xff]  }
 0xb2f   : > { %v3016_v48 = vpop.f32.mrf.mxu0 }
 0xb30   : > { %v3017_v49 = vadd.f32 %v3016_v48, %v2612_v45  ;;  %v9388_v45 = vld [vmem:[%s10708_s29 + $0x240] ss:$16 sps:$4 sm:$0xff]   ;;  %v9396_v48 = vld [vmem:[%s10708_s29 + $0x224] ss:$16 sps:$4 sm:$0xff]  }
 0xb31   : > { %v3018_v50 = vpop.f32.mrf.mxu0 }
 0xb32   : > { %v3019_v51 = vadd.f32 %v3018_v50, %v2616_v46  ;;  %v3025_v53 = vmax.f32 %v3017_v49, 0.0  ;;  %v9391_v46 = vld [vmem:[%s10708_s29 + $0x248] ss:$16 sps:$4 sm:$0xff]   ;;  %v9399_v49 = vld [vmem:[%s10708_s29 + $0x22c] ss:$16 sps:$4 sm:$0xff]  }
 0xb33   : > { %v3020_v54 = vpop.f32.mrf.mxu0  ;;  %v9394_v50 = vld [vmem:[%s10708_s29 + $0x220] ss:$16 sps:$4 sm:$0xff]  }
 0xb34   : > { %v3026_v55 = vmax.f32 %v3019_v51, 0.0  ;;  %v3029_v59 = vpack.c.bf16 %v3025_v53, %v3025_v53  ;;  %v9397_v51 = vld [vmem:[%s10708_s29 + $0x228] ss:$16 sps:$4 sm:$0xff]   ;;  %v9402_v53 = vld [vmem:[%s10708_s29 + $0x204] ss:$16 sps:$4 sm:$0xff]  }
 0xb35   : > { %v3021_v56 = vpop.f32.mrf.mxu0  ;;  %v9405_v54 = vld [vmem:[%s10708_s29 + $0x20c] ss:$16 sps:$4 sm:$0xff]  }
 0xb36   : > { %v3030_v58 = vpack.c.bf16 %v3026_v55, %v3026_v55  ;;  %v9400_v55 = vld [vmem:[%s10708_s29 + $0x200] ss:$16 sps:$4 sm:$0xff]   ;;  %v9403_v56 = vld [vmem:[%s10708_s29 + $0x208] ss:$16 sps:$4 sm:$0xff]  }
 0xb38   : > { %3366 = vmatprep.mubr.bf16.mxu0 %v3030_v58  ;;  %v9408_v58 = vld [vmem:[%s10708_s29 + $0x3e4] ss:$16 sps:$4 sm:$0xff]  }
 0xb39   : > { %3367 = vmatmul.mubr.bf16.vlgmr.msra.gmra.mxu0 %v3029_v59  ;;  %v9411_v59 = vld [vmem:[%s10708_s29 + $0x3ec] ss:$16 sps:$4 sm:$0xff]  }
 0xb3a   : > { %3872 = vmatpush1.bf16.msra.mxu0 %v9358_v21  ;;  %v9436_v21 = vld [vmem:[%s10708_s29 + $0x340] ss:$16 sps:$4 sm:$0xff]  }
 0xb3b   : > { %3873 = vmatprep.subr.bf16.mxu0 %v9366_v5  ;;  %v9444_v5 = vld [vmem:[%s10708_s29 + $0x324] ss:$16 sps:$4 sm:$0xff]  }
 0xb3e   : > { %3874 = vmatpush1.bf16.msra.mxu0 %v9364_v12  ;;  %v9442_v12 = vld [vmem:[%s10708_s29 + $0x320] ss:$16 sps:$4 sm:$0xff]  }
 0xb3f   : > { %3875 = vmatprep.subr.bf16.mxu0 %v9372_v31  ;;  %v9453_v31 = vld [vmem:[%s10708_s29 + $0x30c] ss:$16 sps:$4 sm:$0xff]  }
 0xb42   : > { %3876 = vmatpush1.bf16.msra.mxu0 %v9370_v30  ;;  %v9450_v30 = vld [vmem:[%s10708_s29 + $0x304] ss:$16 sps:$4 sm:$0xff]  }
 0xb43   : > { %3877 = vmatprep.subr.bf16.mxu0 %v9378_v34  ;;  %v9454_v34 = vld [vmem:[%s10933_s1 + $0x178] sm:$0xff]  }
 0xb46   : > { %3878 = vmatpush1.bf16.msra.mxu0 %v9376_v36 }
 0xb47   : > { %3879 = vmatprep.subr.bf16.mxu0 %v9384_v38 }
 0xb4a   : > { %3880 = vmatpush1.bf16.msra.mxu0 %v9382_v40 }
 0xb4b   : > { %3881 = vmatprep.subr.bf16.mxu0 %v9390_v43 }
 0xb4e   : > { %3882 = vmatpush1.bf16.msra.mxu0 %v9388_v45 }
 0xb4f   : > { %3883 = vmatprep.subr.bf16.mxu0 %v9396_v48 }
 0xb52   : > { %3884 = vmatpush1.bf16.msra.mxu0 %v9394_v50 }
 0xb53   : > { %3885 = vmatprep.subr.bf16.mxu0 %v9402_v53 }
 0xb56   : > { %3886 = vmatpush1.bf16.msra.mxu0 %v9400_v55 }
 0xb57   : > { %3887 = vmatprep.subr.bf16.mxu0 %v9408_v58 }
 0xb5e   : > { %v2975_v62 = vpop.f32.mrf.mxu1 }
 0xb5f   : > { %v2976_v63 = vadd.f32 %v2975_v62, %v2604_v60  ;;  %v9406_v60 = vld [vmem:[%s10708_s29 + $0x3e0] ss:$16 sps:$4 sm:$0xff]   ;;  %v9414_v62 = vld [vmem:[%s10708_s29 + $0x3c4] ss:$16 sps:$4 sm:$0xff]  }
 0xb60   : > { %v2977_v2 = vpop.f32.mrf.mxu1  ;;  %3888 = vmatpush2.bf16.msra.mxu0 %v9406_v60 }
 0xb61   : > { %v2978_v3 = vadd.f32 %v2977_v2, %v2608_v61  ;;  %v3023_v4 = vmax.f32 %v2976_v63, 0.0  ;;  %v9409_v61 = vld [vmem:[%s10708_s29 + $0x3e8] ss:$16 sps:$4 sm:$0xff]   ;;  %v9417_v63 = vld [vmem:[%s10708_s29 + $0x3cc] ss:$16 sps:$4 sm:$0xff]   ;;  %3889 = vmatprep.subr.bf16.mxu0 %v9414_v62 }
 0xb62   : > { %v2979_v6 = vpop.f32.mrf.mxu1  ;;  %v9412_v2 = vld [vmem:[%s10708_s29 + $0x3c0] ss:$16 sps:$4 sm:$0xff]  }
 0xb63   : > { %v3024_v8 = vmax.f32 %v2978_v3, 0.0  ;;  %v3027_v13 = vpack.c.bf16 %v3023_v4, %v3023_v4  ;;  %v9415_v3 = vld [vmem:[%s10708_s29 + $0x3c8] ss:$16 sps:$4 sm:$0xff]   ;;  %v9420_v4 = vld [vmem:[%s10708_s29 + $0x3a4] ss:$16 sps:$4 sm:$0xff]  }
 0xb64   : > { %v2980_v9 = vpop.f32.mrf.mxu1  ;;  %v9423_v6 = vld [vmem:[%s10708_s29 + $0x3ac] ss:$16 sps:$4 sm:$0xff]   ;;  %3890 = vmatpush2.bf16.msra.mxu0 %v9412_v2 }
 0xb65   : > { %v3028_v11 = vpack.c.bf16 %v3024_v8, %v3024_v8  ;;  %v9421_v8 = vld [vmem:[%s10708_s29 + $0x3a8] ss:$16 sps:$4 sm:$0xff]   ;;  %3891 = vmatprep.subr.bf16.mxu0 %v9420_v4  ;;  %v9426_v9 = vld [vmem:[%s10708_s29 + $0x384] ss:$16 sps:$4 sm:$0xff]  }
 0xb66   : > { %v9457_v4 = vld [vmem:[%s10933_s1 + $0x1b8] sm:$0xff]  }
 0xb67   : > { %3326 = vmatprep.mubr.bf16.mxu1 %v3028_v11  ;;  %v9429_v11 = vld [vmem:[%s10708_s29 + $0x38c] ss:$16 sps:$4 sm:$0xff]  }
 0xb68   : > { %3327 = vmatmul.mubr.bf16.vlgmr.msra.gmra.mxu1 %v3027_v13  ;;  %3892 = vmatpush2.bf16.msra.mxu0 %v9418_v7  ;;  %v9424_v13 = vld [vmem:[%s10708_s29 + $0x380] ss:$16 sps:$4 sm:$0xff]  }
 0xb69   : > { %3431 = vmatpush1.bf16.msra.mxu1 %v3413_v14  ;;  %3450 = vmatprep.mubr.bf16.mxu1 %v10288_v0  ;;  %v9427_v14 = vld [vmem:[%s10708_s29 + $0x388] ss:$16 sps:$4 sm:$0xff]   ;;  %v9458_v7 = vld [vmem:[%s10933_s1 + $0x170] sm:$0xff]  }
 0xb6a   : > { %3432 = vmatprep.subr.bf16.mxu1 %v9357_v15  ;;  %3893 = vmatprep.subr.bf16.mxu0 %v9426_v9  ;;  %v9432_v15 = vld [vmem:[%s10708_s29 + $0x364] ss:$16 sps:$4 sm:$0xff]   ;;  %v9459_v9 = vld [vmem:[%s10933_s1 + $0x130] sm:$0xff]  }
 0xb6c   : > { %3894 = vmatpush2.bf16.msra.mxu0 %v9424_v13  ;;  %v9462_v13 = vld [vmem:[%s10933_s1 + $0x168] sm:$0xff]  }
 0xb6d   : > { %3433 = vmatpush1.bf16.msra.mxu1 %v9355_v16  ;;  %v9430_v16 = vld [vmem:[%s10708_s29 + $0x360] ss:$16 sps:$4 sm:$0xff]   ;;  %3895 = vmatprep.subr.bf16.mxu0 %v9432_v15  ;;  %v9463_v15 = vld [vmem:[%s10933_s1 + $0x128] sm:$0xff]  }
 0xb6e   : > { %3912 = vmatprep.subr.bf16.mxu1 %v9363_v20  ;;  %v9441_v20 = vld [vmem:[%s10708_s29 + $0x34c] ss:$16 sps:$4 sm:$0xff]  }
 0xb70   : > { %7602 = vmatmul.mubr.msk.bf16.vlgmr.msra.gmra.mxu1 %vm1646_vm3, %v3376_v18  ;;  %v9435_v18 = vld [vmem:[%s10708_s29 + $0x36c] ss:$16 sps:$4 sm:$0xff]   ;;  %3896 = vmatpush2.bf16.msra.mxu0 %v9430_v16  ;;  %v9465_v16 = vld [vmem:[%s10933_s1 + $0x1a8] sm:$0xff]  }
 0xb71   : > { %3913 = vmatpush1.bf16.msra.mxu1 %v9361_v22  ;;  %v9439_v22 = vld [vmem:[%s10708_s29 + $0x348] ss:$16 sps:$4 sm:$0xff]   ;;  %3897 = vmatprep.subr.bf16.mxu0 %v9438_v19  ;;  %v9467_v19 = vld [vmem:[%s10933_s1 + $0x120] sm:$0xff]  }
 0xb72   : > { %3914 = vmatprep.subr.bf16.mxu1 %v9369_v47  ;;  %v9447_v47 = vld [vmem:[%s10708_s29 + $0x32c] ss:$16 sps:$4 sm:$0xff]  }
 0xb74   : > { %3898 = vmatpush2.bf16.msra.mxu0 %v9436_v21  ;;  %v9470_v21 = vld [vmem:[%s10933_s1 + $0x158] sm:$0xff]  }
 0xb75   : > { %3915 = vmatpush1.bf16.msra.mxu1 %v9367_v29  ;;  %v9445_v29 = vld [vmem:[%s10708_s29 + $0x328] ss:$16 sps:$4 sm:$0xff]   ;;  %3899 = vmatprep.subr.bf16.mxu0 %v9444_v5 }
 0xb76   : > { %3916 = vmatprep.subr.bf16.mxu1 %v9375_v33  ;;  %v9451_v33 = vld [vmem:[%s10708_s29 + $0x308] ss:$16 sps:$4 sm:$0xff]  }
 0xb77   : > { %v9471_v5 = vld [vmem:[%s10933_s1 + $0x118] sm:$0xff]  }
 0xb78   : > { %3900 = vmatpush2.bf16.msra.mxu0 %v9442_v12  ;;  %v9474_v12 = vld [vmem:[%s10933_s1 + $0x150] sm:$0xff]  }
 0xb79   : > { %3917 = vmatpush1.bf16.msra.mxu1 %v9373_v32  ;;  %v9448_v32 = vld [vmem:[%s10708_s29 + $0x300] ss:$16 sps:$4 sm:$0xff]   ;;  %3901 = vmatprep.subr.bf16.mxu0 %v9450_v30 }
 0xb7a   : > { %3918 = vmatprep.subr.bf16.mxu1 %v9381_v35  ;;  %v9456_v35 = vld [vmem:[%s10933_s1 + $0x1f8] sm:$0xff]   ;;  %v9475_v30 = vld [vmem:[%s10933_s1 + $0x110] sm:$0xff]  }
 0xb7c   : > { %3902 = vmatpush2.bf16.msra.mxu0 %v9448_v32  ;;  %v9478_v32 = vld [vmem:[%s10933_s1 + $0x148] sm:$0xff]  }
 0xb7d   : > { %3919 = vmatpush1.bf16.msra.mxu1 %v9379_v37  ;;  %8664 = vmatprep.subr.bf16.mxu0 %v9454_v34  ;;  %v9479_v34 = vld [vmem:[%s10933_s1 + $0x108] sm:$0xff]  }
 0xb7e   : > { %3920 = vmatprep.subr.bf16.mxu1 %v9387_v39 }
 0xb81   : > { %3921 = vmatpush1.bf16.msra.mxu1 %v9385_v41  ;;  %v7560_v41 = vld [vmem:[%s10716_s28] ss:$0 sm:$0xff] }
 0xb82   : > { %3922 = vmatprep.subr.bf16.mxu1 %v9393_v44  ;;  %v7596_v44 = vld [vmem:[%s10706_s30 + $0x2] sm:$0x3] }
 0xb83   : > { %v3387_v50 = vrot.slane %v7596_v44, %v10729_v23 }
 0xb85   : > { %3923 = vmatpush1.bf16.msra.mxu1 %v9391_v46 }
 0xb86   : > { %3924 = vmatprep.subr.bf16.mxu1 %v9399_v49 }
 0xb89   : > { %3925 = vmatpush1.bf16.msra.mxu1 %v9397_v51 }
 0xb8a   : > { %3926 = vmatprep.subr.bf16.mxu1 %v9405_v54  ;;  %v3391_v54 = vrot.slane %v7596_v44, %v10733_v26  ;;  %v7667_v44 = vld [vmem:[%s10714_s12 + $0x4] sm:$0xf] }
 0xb8d   : > { %3927 = vmatpush1.bf16.msra.mxu1 %v9403_v56 }
 0xb8e   : > { %3928 = vmatprep.subr.bf16.mxu1 %v9411_v59 }
 0xb91   : > { %3929 = vmatpush2.bf16.msra.mxu1 %v9409_v61 }
 0xb92   : > { %3930 = vmatprep.subr.bf16.mxu1 %v9417_v63 }
 0xb95   : > { %3931 = vmatpush2.bf16.msra.mxu1 %v9415_v3  ;;  %v9455_v3 = vld [vmem:[%s10933_s1 + $0x138] sm:$0xff]  }
 0xb96   : > { %3932 = vmatprep.subr.bf16.mxu1 %v9423_v6 }
 0xb99   : > { %3933 = vmatpush2.bf16.msra.mxu1 %v9421_v8  ;;  %v9460_v8 = vld [vmem:[%s10933_s1 + $0x1f0] sm:$0xff]  }
 0xb9a   : > { %3934 = vmatprep.subr.bf16.mxu1 %v9429_v11  ;;  %v9461_v11 = vld [vmem:[%s10933_s1 + $0x1b0] sm:$0xff]  }
 0xb9d   : > { %3935 = vmatpush2.bf16.msra.mxu1 %v9427_v14  ;;  %v9464_v14 = vld [vmem:[%s10933_s1 + $0x1e8] sm:$0xff]  }
 0xb9e   : > { %3936 = vmatprep.subr.bf16.mxu1 %v9435_v18  ;;  %v9468_v18 = vld [vmem:[%s10933_s1 + $0x1e0] sm:$0xff]  }
 0xba1   : > { %3937 = vmatpush2.bf16.msra.mxu1 %v9433_v17  ;;  %v9466_v17 = vld [vmem:[%s10933_s1 + $0x160] sm:$0xff]  }
 0xba2   : > { %3938 = vmatprep.subr.bf16.mxu1 %v9441_v20  ;;  %v9469_v20 = vld [vmem:[%s10933_s1 + $0x1a0] sm:$0xff]  }
 0xba5   : > { %3939 = vmatpush2.bf16.msra.mxu1 %v9439_v22  ;;  %v9472_v22 = vld [vmem:[%s10933_s1 + $0x1d8] sm:$0xff]  }
 0xba6   : > { %3940 = vmatprep.subr.bf16.mxu1 %v9447_v47  ;;  %v9473_v47 = vld [vmem:[%s10933_s1 + $0x198] sm:$0xff]  }
 0xba9   : > { %3941 = vmatpush2.bf16.msra.mxu1 %v9445_v29  ;;  %v9476_v29 = vld [vmem:[%s10933_s1 + $0x1d0] sm:$0xff]  }
 0xbaa   : > { %3942 = vmatprep.subr.bf16.mxu1 %v9453_v31  ;;  %v9477_v31 = vld [vmem:[%s10933_s1 + $0x190] sm:$0xff]  }
 0xbad   : > { %3943 = vmatpush2.bf16.msra.mxu1 %v9451_v33  ;;  %v9480_v33 = vld [vmem:[%s10933_s1 + $0x1c8] sm:$0xff]  }
 0xbae   : > { %8686 = vmatprep.subr.bf16.mxu1 %v9456_v35  ;;  %v9481_v35 = vld [vmem:[%s10933_s1 + $0x188] sm:$0xff]  }
 0xbf9   : > { %v8658_v36 = vpop.f32.mrf.mxu0 }
 0xbfb   : > { %v8659_v37 = vpop.f32.mrf.mxu0 }
 0xbfc   : > { %v8660_v48 = vadd.f32 %v8659_v37, %v8658_v36  ;;  %v9482_v36 = vld [vmem:[%s10933_s1 + $0x140] sm:$0xff]  }
 0xbfd   : > { %v8661_v38 = vpop.f32.mrf.mxu0  ;;  %v9484_v37 = vld [vmem:[%s10933_s1 + $0x1c0] sm:$0xff]  }
 0xbfe   : > { %v9483_v38 = vld [vmem:[%s10933_s1 + $0x100] sm:$0xff]  }
 0xbff   : > { %v8662_v39 = vpop.f32.mrf.mxu0 }
 0xc00   : > { %v9485_v39 = vld [vmem:[%s10933_s1 + $0x180] sm:$0xff]  }
 0xc28   : > { %v8636_v40 = vpop.f32.mrf.mxu1 }
 0xc2a   : > { %v8637_v43 = vpop.f32.mrf.mxu1 }
 0xc2b   : > { %v8638_v45 = vadd.f32 %v8637_v43, %v8636_v40  ;;  %v7833_v40 = vld [vmem:[%s10700_s6 + $0x40] sm:$0x33] }
 0xc2c   : > { %v8639_v46 = vpop.f32.mrf.mxu1  ;;  %v9493_v43 = vld [vmem:[%s10708_s29 + $0x4e4] ss:$16 sps:$4 sm:$0xff]  }
 0xc2d   : > { %v3329_v49 = vadd.f32 %v8638_v45, %v7560_v41  ;;  %v7838_v41 = vcombine.high %v7833_v40, %v7833_v40  ;;  %v3534_v45 = vrot.slane %v7667_v44, %v10729_v23  ;;  %v3542_v46 = vrot.slane %v7667_v44, %v10731_v24 }
 0xc2e   : > { %v8640_v51 = vpop.f32.mrf.mxu1 }
 0xc2f   : > { %v3369_v53 = vadd.f32 %v8660_v48, %v3329_v49  ;;  %v3538_v48 = vrot.slane %v7667_v44, %v10733_v26  ;;  %v3546_v49 = vrot.slane %v7667_v44, %v10735_v27  ;;  %v9527_v44 = vld [vmem:[%s10708_s29 + $0x420] ss:$16 sps:$4 sm:$0xff]  }
 0xc30   : > { %v3452_v55 = vpop.f32.mrf.mxu1 }
 0xc31   : > { %3374 = vst.msk [vmem:[%s11096_s24] sm:$0xff] %vm892_vm0, %v3369_v53  ;;  %v3453_v56 = vadd.f32 %v3452_v55, %v3387_v50 }
 0xc32   : > { %v3454_v58 = vpop.f32.mrf.mxu1 }
 0xc33   : > { %v3455_v59 = vadd.f32 %v3454_v58, %v3391_v54  ;;  %v3459_v60 = vmax.f32 %v3453_v56, 0.0 }
 0xc34   : > { %v3456_v61 = vpop.f32.mrf.mxu1 }
 0xc35   : > { %v3460_v62 = vmax.f32 %v3455_v59, 0.0  ;;  %v3461_v6 = vpack.c.bf16 %v3459_v60, %v3459_v60 }
 0xc36   : > { %v3457_v63 = vpop.f32.mrf.mxu1 }
 0xc37   : > { %v3462_v2 = vpack.c.bf16 %v3460_v62, %v3460_v62 }
 0xc39   : > { %3903 = vmatprep.mubr.bf16.mxu0 %v3462_v2  ;;  %3944 = vmatprep.mubr.bf16.mxu1 %v3462_v2  ;;  %v7837_v2 = vcombine.low %v7833_v40, %v7833_v40  ;;  %v9529_v40 = vld [vmem:[%s10708_s29 + $0x424] ss:$16 sps:$4 sm:$0xff]  }
 0xc3a   : > { %3904 = vmatmul.mubr.bf16.vlgmr.msra.gmra.mxu0 %v3461_v6  ;;  %3945 = vmatmul.mubr.bf16.vlgmr.msra.gmra.mxu1 %v3461_v6 }
 0xc3b   : > { %8665 = vmatpush3.bf16.msra.mxu0 %v9455_v3  ;;  %8687 = vmatpush3.bf16.msra.mxu1 %v9457_v4 }
 0xc3c   : > { %8666 = vmatprep.subr.bf16.mxu0 %v9458_v7  ;;  %8688 = vmatprep.subr.bf16.mxu1 %v9460_v8 }
 0xc3f   : > { %8667 = vmatpush3.bf16.msra.mxu0 %v9459_v9  ;;  %8689 = vmatpush3.bf16.msra.mxu1 %v9461_v11 }
 0xc40   : > { %8668 = vmatprep.subr.bf16.mxu0 %v9462_v13  ;;  %8690 = vmatprep.subr.bf16.mxu1 %v9464_v14  ;;  %v4346_v14 = vsel %vm2483_vm4, %v7837_v2, 0  ;;  %v9559_v2 = vld [vmem:[%s10708_s29 + $0x584] ss:$16 sps:$4 sm:$0xff]  }
 0xc43   : > { %8669 = vmatpush3.bf16.msra.mxu0 %v9463_v15  ;;  %8691 = vmatpush3.bf16.msra.mxu1 %v9465_v16  ;;  %v9490_v15 = vld [vmem:[%s10700_s6 + $0x34] ss:$8 sps:$4 sm:$0xff]  }
 0xc44   : > { %8670 = vmatprep.subr.bf16.mxu0 %v9466_v17  ;;  %8692 = vmatprep.subr.bf16.mxu1 %v9468_v18  ;;  %v9491_v16 = vld [vmem:[%s10708_s29 + $0x4e0] ss:$16 sps:$4 sm:$0xff]   ;;  %v9499_v17 = vld [vmem:[%s10708_s29 + $0x4c4] ss:$16 sps:$4 sm:$0xff]  }
 0xc45   : > { %v9488_v18 = vld [vmem:[%s10700_s6 + $0x30] ss:$8 sps:$4 sm:$0xff]  }
 0xc47   : > { %8671 = vmatpush3.bf16.msra.mxu0 %v9467_v19  ;;  %8693 = vmatpush3.bf16.msra.mxu1 %v9469_v20  ;;  %v9496_v19 = vld [vmem:[%s10708_s29 + $0x4ec] ss:$16 sps:$4 sm:$0xff]   ;;  %v9497_v20 = vld [vmem:[%s10708_s29 + $0x4c0] ss:$16 sps:$4 sm:$0xff]  }
 0xc48   : > { %8672 = vmatprep.subr.bf16.mxu0 %v9470_v21  ;;  %8694 = vmatprep.subr.bf16.mxu1 %v9472_v22  ;;  %v4308_v21 = vsel %vm10881_vm5, %v10879_v25, %v10825_v52  ;;  %v9505_v22 = vld [vmem:[%s10708_s29 + $0x4a4] ss:$16 sps:$4 sm:$0xff]   ;;  %v9500_v52 = vld [vmem:[%s10708_s29 + $0x4c8] ss:$16 sps:$4 sm:$0xff]   ;;  %v9508_v25 = vld [vmem:[%s10708_s29 + $0x4ac] ss:$16 sps:$4 sm:$0xff]  }
 0xc4b   : > { %8673 = vmatpush3.bf16.msra.mxu0 %v9471_v5  ;;  %8695 = vmatpush3.bf16.msra.mxu1 %v9473_v47  ;;  %v9494_v5 = vld [vmem:[%s10708_s29 + $0x4e8] ss:$16 sps:$4 sm:$0xff]   ;;  %v4309_v47 = vpack.c.bf16 %v4308_v21, %v4308_v21  ;;  %v9580_v21 = vld [vmem:[%s10708_s29 + $0x52c] ss:$16 sps:$4 sm:$0xff]  }
 0xc4c   : > { %8674 = vmatprep.subr.bf16.mxu0 %v9474_v12  ;;  %8696 = vmatprep.subr.bf16.mxu1 %v9476_v29  ;;  %v9502_v12 = vld [vmem:[%s10708_s29 + $0x4cc] ss:$16 sps:$4 sm:$0xff]   ;;  %v9503_v29 = vld [vmem:[%s10708_s29 + $0x4a0] ss:$16 sps:$4 sm:$0xff]  }
 0xc4f   : > { %8675 = vmatpush3.bf16.msra.mxu0 %v9475_v30  ;;  %8697 = vmatpush3.bf16.msra.mxu1 %v9477_v31  ;;  %v9511_v30 = vld [vmem:[%s10708_s29 + $0x484] ss:$16 sps:$4 sm:$0xff]   ;;  %v9509_v31 = vld [vmem:[%s10708_s29 + $0x480] ss:$16 sps:$4 sm:$0xff]  }
 0xc50   : > { %8676 = vmatprep.subr.bf16.mxu0 %v9478_v32  ;;  %8698 = vmatprep.subr.bf16.mxu1 %v9480_v33  ;;  %v9517_v32 = vld [vmem:[%s10708_s29 + $0x464] ss:$16 sps:$4 sm:$0xff]   ;;  %v9506_v33 = vld [vmem:[%s10708_s29 + $0x4a8] ss:$16 sps:$4 sm:$0xff]  }
 0xc53   : > { %8677 = vmatpush3.bf16.msra.mxu0 %v9479_v34  ;;  %8699 = vmatpush3.bf16.msra.mxu1 %v9481_v35  ;;  %v9514_v34 = vld [vmem:[%s10708_s29 + $0x48c] ss:$16 sps:$4 sm:$0xff]   ;;  %v9515_v35 = vld [vmem:[%s10708_s29 + $0x460] ss:$16 sps:$4 sm:$0xff]  }
 0xc54   : > { %8678 = vmatprep.subr.bf16.mxu0 %v9482_v36  ;;  %8700 = vmatprep.subr.bf16.mxu1 %v9484_v37  ;;  %v9523_v36 = vld [vmem:[%s10708_s29 + $0x444] ss:$16 sps:$4 sm:$0xff]   ;;  %v9512_v37 = vld [vmem:[%s10708_s29 + $0x488] ss:$16 sps:$4 sm:$0xff]  }
 0xc57   : > { %8679 = vmatpush3.bf16.msra.mxu0 %v9483_v38  ;;  %8701 = vmatpush3.bf16.msra.mxu1 %v9485_v39  ;;  %v9520_v38 = vld [vmem:[%s10708_s29 + $0x46c] ss:$16 sps:$4 sm:$0xff]   ;;  %v9521_v39 = vld [vmem:[%s10708_s29 + $0x440] ss:$16 sps:$4 sm:$0xff]  }
 0xc58   : > { %7839 = vmatprep.subr.msk.bf16.mxu0 %vm2483_vm4, %v7838_v41  ;;  %4804 = vmatprep.subr.bf16.mxu1 %v9493_v43  ;;  %v9518_v41 = vld [vmem:[%s10708_s29 + $0x468] ss:$16 sps:$4 sm:$0xff]   ;;  %v9526_v43 = vld [vmem:[%s10708_s29 + $0x44c] ss:$16 sps:$4 sm:$0xff]  }
 0xcfa   : > { %v3905_v50 = vpop.f32.mrf.mxu0  ;;  %v3946_v51 = vpop.f32.mrf.mxu1 }
 0xcfb   : > { %v3906_v53 = vadd.f32 %v3905_v50, %v3534_v45  ;;  %v3947_v54 = vadd.f32 %v3946_v51, %v3542_v46  ;;  %v9535_v45 = vld [vmem:[%s10708_s29 + $0x404] ss:$16 sps:$4 sm:$0xff]   ;;  %v9524_v46 = vld [vmem:[%s10708_s29 + $0x448] ss:$16 sps:$4 sm:$0xff]  }
 0xcfc   : > { %v3907_v55 = vpop.f32.mrf.mxu0  ;;  %v3948_v56 = vpop.f32.mrf.mxu1  ;;  %v9541_v50 = vld [vmem:[%s10708_s29 + $0x5e4] ss:$16 sps:$4 sm:$0xff]   ;;  %v9530_v51 = vld [vmem:[%s10708_s29 + $0x428] ss:$16 sps:$4 sm:$0xff]  }
 0xcfd   : > { %v3908_v58 = vadd.f32 %v3907_v55, %v3538_v48  ;;  %v3949_v59 = vadd.f32 %v3948_v56, %v3546_v49  ;;  %v3953_v60 = vmax.f32 %v3906_v53, 0.0  ;;  %v3955_v61 = vmax.f32 %v3947_v54, 0.0  ;;  %v9532_v48 = vld [vmem:[%s10708_s29 + $0x42c] ss:$16 sps:$4 sm:$0xff]   ;;  %v9533_v49 = vld [vmem:[%s10708_s29 + $0x400] ss:$16 sps:$4 sm:$0xff]  }
 0xcfe   : > { %v3909_v62 = vpop.f32.mrf.mxu0  ;;  %v3950_v63 = vpop.f32.mrf.mxu1  ;;  %v9538_v53 = vld [vmem:[%s10708_s29 + $0x40c] ss:$16 sps:$4 sm:$0xff]   ;;  %v9539_v54 = vld [vmem:[%s10708_s29 + $0x5e0] ss:$16 sps:$4 sm:$0xff]   ;;  %v9547_v55 = vld [vmem:[%s10708_s29 + $0x5c4] ss:$16 sps:$4 sm:$0xff]  }
 0xcff   : > { %v3954_v3 = vmax.f32 %v3908_v58, 0.0  ;;  %v3956_v4 = vmax.f32 %v3949_v59, 0.0  ;;  %v3957_v11 = vpack.c.bf16 %v3953_v60, %v3953_v60  ;;  %v3959_v13 = vpack.c.bf16 %v3955_v61, %v3955_v61  ;;  %v9536_v56 = vld [vmem:[%s10708_s29 + $0x408] ss:$16 sps:$4 sm:$0xff]   ;;  %v9544_v58 = vld [vmem:[%s10708_s29 + $0x5ec] ss:$16 sps:$4 sm:$0xff]  }
 0xd00   : > { %v3910_v6 = vpop.f32.mrf.mxu0  ;;  %v3951_v7 = vpop.f32.mrf.mxu1  ;;  %v9545_v59 = vld [vmem:[%s10708_s29 + $0x5c0] ss:$16 sps:$4 sm:$0xff]   ;;  %v9553_v60 = vld [vmem:[%s10708_s29 + $0x5a4] ss:$16 sps:$4 sm:$0xff]   ;;  %v9542_v61 = vld [vmem:[%s10708_s29 + $0x5e8] ss:$16 sps:$4 sm:$0xff]  }
 0xd01   : > { %v3958_v8 = vpack.c.bf16 %v3954_v3, %v3954_v3  ;;  %v3960_v9 = vpack.c.bf16 %v3956_v4, %v3956_v4  ;;  %v9550_v62 = vld [vmem:[%s10708_s29 + $0x5cc] ss:$16 sps:$4 sm:$0xff]   ;;  %v9551_v63 = vld [vmem:[%s10708_s29 + $0x5a0] ss:$16 sps:$4 sm:$0xff]   ;;  %v9548_v3 = vld [vmem:[%s10708_s29 + $0x5c8] ss:$16 sps:$4 sm:$0xff]  }
 0xd02   : > { %v9556_v4 = vld [vmem:[%s10708_s29 + $0x5ac] ss:$16 sps:$4 sm:$0xff]   ;;  %v9557_v6 = vld [vmem:[%s10708_s29 + $0x580] ss:$16 sps:$4 sm:$0xff]   ;;  %v9554_v7 = vld [vmem:[%s10708_s29 + $0x5a8] ss:$16 sps:$4 sm:$0xff]  }
 0xd03   : > { %4258 = vmatprep.mubr.bf16.mxu0 %v3958_v8  ;;  %4298 = vmatprep.mubr.bf16.mxu1 %v3960_v9  ;;  %v9562_v8 = vld [vmem:[%s10708_s29 + $0x58c] ss:$16 sps:$4 sm:$0xff]   ;;  %v9560_v9 = vld [vmem:[%s10708_s29 + $0x588] ss:$16 sps:$4 sm:$0xff]  }
 0xd04   : > { %4259 = vmatmul.mubr.bf16.vlgmr.msra.gmra.mxu0 %v3957_v11  ;;  %4299 = vmatmul.mubr.bf16.vlgmr.msra.gmra.mxu1 %v3959_v13  ;;  %v9565_v11 = vld [vmem:[%s10708_s29 + $0x564] ss:$16 sps:$4 sm:$0xff]   ;;  %v9568_v13 = vld [vmem:[%s10708_s29 + $0x56c] ss:$16 sps:$4 sm:$0xff]  }
 0xd05   : > { %4364 = vmatpush1.bf16.msra.mxu0 %v4346_v14  ;;  %4383 = vmatprep.mubr.bf16.mxu0 %v10288_v0  ;;  %v9563_v14 = vld [vmem:[%s10708_s29 + $0x560] ss:$16 sps:$4 sm:$0xff]  }
 0xd06   : > { %4365 = vmatprep.subr.bf16.mxu0 %v9490_v15  ;;  %4805 = vmatpush1.bf16.msra.mxu1 %v9491_v16  ;;  %v9566_v15 = vld [vmem:[%s10708_s29 + $0x568] ss:$16 sps:$4 sm:$0xff]   ;;  %v9571_v16 = vld [vmem:[%s10708_s29 + $0x544] ss:$16 sps:$4 sm:$0xff]  }
 0xd07   : > { %4806 = vmatprep.subr.bf16.mxu1 %v9499_v17  ;;  %v9574_v17 = vld [vmem:[%s10708_s29 + $0x54c] ss:$16 sps:$4 sm:$0xff]  }
 0xd09   : > { %4366 = vmatpush1.bf16.msra.mxu0 %v9488_v18  ;;  %v9569_v18 = vld [vmem:[%s10708_s29 + $0x540] ss:$16 sps:$4 sm:$0xff]  }
 0xd0a   : > { %4845 = vmatprep.subr.bf16.mxu0 %v9496_v19  ;;  %4807 = vmatpush1.bf16.msra.mxu1 %v9497_v20  ;;  %v9572_v19 = vld [vmem:[%s10708_s29 + $0x548] ss:$16 sps:$4 sm:$0xff]   ;;  %v9577_v20 = vld [vmem:[%s10708_s29 + $0x524] ss:$16 sps:$4 sm:$0xff]  }
 0xd0b   : > { %4808 = vmatprep.subr.bf16.mxu1 %v9505_v22  ;;  %v9575_v22 = vld [vmem:[%s10708_s29 + $0x520] ss:$16 sps:$4 sm:$0xff]  }
 0xd0c   : > { %7840 = vmatmul.mubr.msk.bf16.vlgmr.msra.gmra.mxu0 %vm1646_vm3, %v4309_v47  ;;  %v9583_v47 = vld [vmem:[%s10708_s29 + $0x504] ss:$16 sps:$4 sm:$0xff]  }
 0xd0d   : > { %4846 = vmatpush1.bf16.msra.mxu0 %v9494_v5  ;;  %v9578_v5 = vld [vmem:[%s10708_s29 + $0x528] ss:$16 sps:$4 sm:$0xff]  }
 0xd0e   : > { %4847 = vmatprep.subr.bf16.mxu0 %v9502_v12  ;;  %4809 = vmatpush1.bf16.msra.mxu1 %v9503_v29  ;;  %v9586_v12 = vld [vmem:[%s10708_s29 + $0x50c] ss:$16 sps:$4 sm:$0xff]   ;;  %v9581_v29 = vld [vmem:[%s10708_s29 + $0x500] ss:$16 sps:$4 sm:$0xff]  }
 0xd0f   : > { %4810 = vmatprep.subr.bf16.mxu1 %v9511_v30  ;;  %v9584_v30 = vld [vmem:[%s10708_s29 + $0x508] ss:$16 sps:$4 sm:$0xff]  }
 0xd11   : > { %4848 = vmatpush1.bf16.msra.mxu0 %v9500_v52  ;;  %v9587_v52 = vld [vmem:[%s10933_s1 + $0x278] sm:$0xff]  }
 0xd12   : > { %4849 = vmatprep.subr.bf16.mxu0 %v9508_v25  ;;  %4811 = vmatpush1.bf16.msra.mxu1 %v9509_v31  ;;  %v9589_v25 = vld [vmem:[%s10933_s1 + $0x2f8] sm:$0xff]  }
 0xd13   : > { %4812 = vmatprep.subr.bf16.mxu1 %v9517_v32 }
 0xd15   : > { %4850 = vmatpush1.bf16.msra.mxu0 %v9506_v33  ;;  %v7797_v33 = vld [vmem:[%s10716_s28 + $0x1] ss:$0 sm:$0xff] }
 0xd16   : > { %4851 = vmatprep.subr.bf16.mxu0 %v9514_v34  ;;  %4813 = vmatpush1.bf16.msra.mxu1 %v9515_v35 }
 0xd17   : > { %4814 = vmatprep.subr.bf16.mxu1 %v9523_v36  ;;  %v7834_v36 = vld [vmem:[%s10706_s30 + $0x4] sm:$0x3] }
 0xd19   : > { %4852 = vmatpush1.bf16.msra.mxu0 %v9512_v37 }
 0xd1a   : > { %4853 = vmatprep.subr.bf16.mxu0 %v9520_v38  ;;  %4815 = vmatpush1.bf16.msra.mxu1 %v9521_v39 }
 0xd1b   : > { %4816 = vmatprep.subr.bf16.mxu1 %v9529_v40 }
 0xd1d   : > { %4854 = vmatpush1.bf16.msra.mxu0 %v9518_v41 }
 0xd1e   : > { %4855 = vmatprep.subr.bf16.mxu0 %v9526_v43  ;;  %4817 = vmatpush1.bf16.msra.mxu1 %v9527_v44  ;;  %v4320_v43 = vrot.slane %v7834_v36, %v10729_v23 }
 0xd1f   : > { %4818 = vmatprep.subr.bf16.mxu1 %v9535_v45 }
 0xd21   : > { %4856 = vmatpush1.bf16.msra.mxu0 %v9524_v46 }
 0xd22   : > { %4857 = vmatprep.subr.bf16.mxu0 %v9532_v48  ;;  %4819 = vmatpush1.bf16.msra.mxu1 %v9533_v49  ;;  %v4324_v48 = vrot.slane %v7834_v36, %v10733_v26  ;;  %v7905_v36 = vld [vmem:[%s10714_s12 + $0x8] sm:$0xf] }
 0xd23   : > { %4820 = vmatprep.subr.bf16.mxu1 %v9541_v50 }
 0xd25   : > { %4858 = vmatpush1.bf16.msra.mxu0 %v9530_v51 }
 0xd26   : > { %4859 = vmatprep.subr.bf16.mxu0 %v9538_v53  ;;  %4821 = vmatpush2.bf16.msra.mxu1 %v9539_v54 }
 0xd27   : > { %4822 = vmatprep.subr.bf16.mxu1 %v9547_v55 }
 0xd29   : > { %4860 = vmatpush1.bf16.msra.mxu0 %v9536_v56 }
 0xd2a   : > { %4861 = vmatprep.subr.bf16.mxu0 %v9544_v58  ;;  %4823 = vmatpush2.bf16.msra.mxu1 %v9545_v59 }
 0xd2b   : > { %4824 = vmatprep.subr.bf16.mxu1 %v9553_v60  ;;  %v9588_v60 = vld [vmem:[%s10933_s1 + $0x238] sm:$0xff]  }
 0xd2d   : > { %4862 = vmatpush2.bf16.msra.mxu0 %v9542_v61  ;;  %v9590_v61 = vld [vmem:[%s10933_s1 + $0x2b8] sm:$0xff]  }
 0xd2e   : > { %4863 = vmatprep.subr.bf16.mxu0 %v9550_v62  ;;  %4825 = vmatpush2.bf16.msra.mxu1 %v9551_v63  ;;  %v9591_v63 = vld [vmem:[%s10933_s1 + $0x270] sm:$0xff]  }
 0xd2f   : > { %4826 = vmatprep.subr.bf16.mxu1 %v9559_v2  ;;  %v9593_v2 = vld [vmem:[%s10933_s1 + $0x2f0] sm:$0xff]  }
 0xd31   : > { %4864 = vmatpush2.bf16.msra.mxu0 %v9548_v3  ;;  %v9592_v3 = vld [vmem:[%s10933_s1 + $0x230] sm:$0xff]  }
 0xd32   : > { %4865 = vmatprep.subr.bf16.mxu0 %v9556_v4  ;;  %4827 = vmatpush2.bf16.msra.mxu1 %v9557_v6  ;;  %v9594_v4 = vld [vmem:[%s10933_s1 + $0x2b0] sm:$0xff]   ;;  %v9595_v6 = vld [vmem:[%s10933_s1 + $0x268] sm:$0xff]  }
 0xd33   : > { %4828 = vmatprep.subr.bf16.mxu1 %v9565_v11  ;;  %v9599_v11 = vld [vmem:[%s10933_s1 + $0x260] sm:$0xff]  }
 0xd35   : > { %4866 = vmatpush2.bf16.msra.mxu0 %v9554_v7  ;;  %v9597_v7 = vld [vmem:[%s10933_s1 + $0x2e8] sm:$0xff]  }
 0xd36   : > { %4867 = vmatprep.subr.bf16.mxu0 %v9562_v8  ;;  %4829 = vmatpush2.bf16.msra.mxu1 %v9563_v14  ;;  %v9596_v8 = vld [vmem:[%s10933_s1 + $0x228] sm:$0xff]   ;;  %v9600_v14 = vld [vmem:[%s10933_s1 + $0x220] sm:$0xff]  }
 0xd37   : > { %4830 = vmatprep.subr.bf16.mxu1 %v9571_v16  ;;  %v9603_v16 = vld [vmem:[%s10933_s1 + $0x258] sm:$0xff]  }
 0xd39   : > { %4868 = vmatpush2.bf16.msra.mxu0 %v9560_v9  ;;  %v9598_v9 = vld [vmem:[%s10933_s1 + $0x2a8] sm:$0xff]  }
 0xd3a   : > { %4869 = vmatprep.subr.bf16.mxu0 %v9568_v13  ;;  %4831 = vmatpush2.bf16.msra.mxu1 %v9569_v18  ;;  %v9601_v13 = vld [vmem:[%s10933_s1 + $0x2e0] sm:$0xff]   ;;  %v9604_v18 = vld [vmem:[%s10933_s1 + $0x218] sm:$0xff]  }
 0xd3b   : > { %4832 = vmatprep.subr.bf16.mxu1 %v9577_v20  ;;  %v9607_v20 = vld [vmem:[%s10933_s1 + $0x250] sm:$0xff]  }
 0xd3d   : > { %4870 = vmatpush2.bf16.msra.mxu0 %v9566_v15  ;;  %v9602_v15 = vld [vmem:[%s10933_s1 + $0x2a0] sm:$0xff]  }
 0xd3e   : > { %4871 = vmatprep.subr.bf16.mxu0 %v9574_v17  ;;  %4833 = vmatpush2.bf16.msra.mxu1 %v9575_v22  ;;  %v9605_v17 = vld [vmem:[%s10933_s1 + $0x2d8] sm:$0xff]   ;;  %v9608_v22 = vld [vmem:[%s10933_s1 + $0x210] sm:$0xff]  }
 0xd3f   : > { %4834 = vmatprep.subr.bf16.mxu1 %v9583_v47  ;;  %v9611_v47 = vld [vmem:[%s10933_s1 + $0x248] sm:$0xff]  }
 0xd41   : > { %4872 = vmatpush2.bf16.msra.mxu0 %v9572_v19  ;;  %v9606_v19 = vld [vmem:[%s10933_s1 + $0x298] sm:$0xff]  }
 0xd42   : > { %4873 = vmatprep.subr.bf16.mxu0 %v9580_v21  ;;  %4835 = vmatpush2.bf16.msra.mxu1 %v9581_v29  ;;  %v9609_v21 = vld [vmem:[%s10933_s1 + $0x2d0] sm:$0xff]   ;;  %v9612_v29 = vld [vmem:[%s10933_s1 + $0x208] sm:$0xff]  }
 0xd43   : > { %8708 = vmatprep.subr.bf16.mxu1 %v9587_v52  ;;  %v9615_v52 = vld [vmem:[%s10933_s1 + $0x240] sm:$0xff]  }
 0xd45   : > { %4874 = vmatpush2.bf16.msra.mxu0 %v9578_v5  ;;  %v9610_v5 = vld [vmem:[%s10933_s1 + $0x290] sm:$0xff]  }
 0xd46   : > { %4875 = vmatprep.subr.bf16.mxu0 %v9586_v12  ;;  %v9613_v12 = vld [vmem:[%s10933_s1 + $0x2c8] sm:$0xff]  }
 0xd49   : > { %4876 = vmatpush2.bf16.msra.mxu0 %v9584_v30  ;;  %v9614_v30 = vld [vmem:[%s10933_s1 + $0x288] sm:$0xff]  }
 0xd4a   : > { %8730 = vmatprep.subr.bf16.mxu0 %v9589_v25  ;;  %v9617_v25 = vld [vmem:[%s10933_s1 + $0x2c0] sm:$0xff]  }
 0xdc4   : > { %v8680_v31 = vpop.f32.mrf.mxu0  ;;  %v8702_v32 = vpop.f32.mrf.mxu1 }
 0xdc6   : > { %v8681_v34 = vpop.f32.mrf.mxu0  ;;  %v8703_v35 = vpop.f32.mrf.mxu1 }
 0xdc7   : > { %v8682_v37 = vadd.f32 %v8681_v34, %v8680_v31  ;;  %v8704_v41 = vadd.f32 %v8703_v35, %v8702_v32  ;;  %v9616_v31 = vld [vmem:[%s10933_s1 + $0x200] sm:$0xff]   ;;  %v9626_v35 = vld [vmem:[%s10708_s29 + $0x6e4] ss:$16 sps:$4 sm:$0xff]  }
 0xdc8   : > { %v8683_v38 = vpop.f32.mrf.mxu0  ;;  %v8705_v39 = vpop.f32.mrf.mxu1  ;;  %v9618_v32 = vld [vmem:[%s10933_s1 + $0x280] sm:$0xff]  }
 0xdc9   : > { %v4261_v40 = vadd.f32 %v8682_v37, %v7797_v33  ;;  %v8071_v33 = vld [vmem:[%s10700_s6 + $0x58] sm:$0x33]  ;;  %v4467_v37 = vrot.slane %v7905_v36, %v10729_v23  ;;  %v4475_v38 = vrot.slane %v7905_v36, %v10731_v24  ;;  %v4471_v39 = vrot.slane %v7905_v36, %v10733_v26 }
 0xdca   : > { %v8684_v44 = vpop.f32.mrf.mxu0  ;;  %v8706_v45 = vpop.f32.mrf.mxu1  ;;  %v8076_v34 = vcombine.high %v8071_v33, %v8071_v33 }
 0xdcb   : > { %v4301_v46 = vadd.f32 %v8704_v41, %v4261_v40  ;;  %v4479_v40 = vrot.slane %v7905_v36, %v10735_v27  ;;  %v9657_v36 = vld [vmem:[%s10708_s29 + $0x648] ss:$16 sps:$4 sm:$0xff]  }
 0xdcc   : > { %v4385_v49 = vpop.f32.mrf.mxu0 }
 0xdcd   : > { %7830 = vst.msk [vmem:[%s11096_s24 + $0x8] sm:$0xff] %vm892_vm0, %v4301_v46  ;;  %v4386_v50 = vadd.f32 %v4385_v49, %v4320_v43 }
 0xdce   : > { %v4387_v51 = vpop.f32.mrf.mxu0 }
 0xdcf   : > { %v4388_v53 = vadd.f32 %v4387_v51, %v4324_v48  ;;  %v4392_v54 = vmax.f32 %v4386_v50, 0.0 }
 0xdd0   : > { %v4389_v55 = vpop.f32.mrf.mxu0 }
 0xdd1   : > { %v4393_v56 = vmax.f32 %v4388_v53, 0.0  ;;  %v4394_v62 = vpack.c.bf16 %v4392_v54, %v4392_v54 }
 0xdd2   : > { %v4390_v58 = vpop.f32.mrf.mxu0 }
 0xdd3   : > { %v4395_v59 = vpack.c.bf16 %v4393_v56, %v4393_v56  ;;  %v8075_v56 = vcombine.low %v8071_v33, %v8071_v33  ;;  %v9659_v33 = vld [vmem:[%s10708_s29 + $0x64c] ss:$16 sps:$4 sm:$0xff]  }
 0xdd5   : > { %4836 = vmatprep.mubr.bf16.mxu1 %v4395_v59  ;;  %4877 = vmatprep.mubr.bf16.mxu0 %v4395_v59 }
 0xdd6   : > { %4837 = vmatmul.mubr.bf16.vlgmr.msra.gmra.mxu1 %v4394_v62  ;;  %4878 = vmatmul.mubr.bf16.vlgmr.msra.gmra.mxu0 %v4394_v62 }
 0xdd7   : > { %8709 = vmatpush3.bf16.msra.mxu1 %v9588_v60  ;;  %8731 = vmatpush3.bf16.msra.mxu0 %v9590_v61 }
 0xdd8   : > { %8710 = vmatprep.subr.bf16.mxu1 %v9591_v63  ;;  %8732 = vmatprep.subr.bf16.mxu0 %v9593_v2 }
 0xddb   : > { %8711 = vmatpush3.bf16.msra.mxu1 %v9592_v3  ;;  %8733 = vmatpush3.bf16.msra.mxu0 %v9594_v4  ;;  %v5279_v4 = vsel %vm2483_vm4, %v8075_v56, 0  ;;  %v9689_v56 = vld [vmem:[%s10708_s29 + $0x7ac] ss:$16 sps:$4 sm:$0xff]  }
 0xddc   : > { %8712 = vmatprep.subr.bf16.mxu1 %v9595_v6  ;;  %8734 = vmatprep.subr.bf16.mxu0 %v9597_v7  ;;  %v9623_v6 = vld [vmem:[%s10700_s6 + $0x4c] ss:$8 sps:$4 sm:$0xff]  }
 0xddd   : > { %v9624_v7 = vld [vmem:[%s10708_s29 + $0x6e0] ss:$16 sps:$4 sm:$0xff]  }
 0xddf   : > { %8713 = vmatpush3.bf16.msra.mxu1 %v9596_v8  ;;  %8735 = vmatpush3.bf16.msra.mxu0 %v9598_v9  ;;  %v9632_v8 = vld [vmem:[%s10708_s29 + $0x6c4] ss:$16 sps:$4 sm:$0xff]  }
 0xde0   : > { %8714 = vmatprep.subr.bf16.mxu1 %v9599_v11  ;;  %8736 = vmatprep.subr.bf16.mxu0 %v9601_v13  ;;  %v9621_v9 = vld [vmem:[%s10700_s6 + $0x48] ss:$8 sps:$4 sm:$0xff]   ;;  %v9630_v13 = vld [vmem:[%s10708_s29 + $0x6c0] ss:$16 sps:$4 sm:$0xff]  }
 0xde1   : > { %v9629_v11 = vld [vmem:[%s10708_s29 + $0x6ec] ss:$16 sps:$4 sm:$0xff]  }
 0xde3   : > { %8715 = vmatpush3.bf16.msra.mxu1 %v9600_v14  ;;  %8737 = vmatpush3.bf16.msra.mxu0 %v9602_v15  ;;  %v5241_v14 = vsel %vm10881_vm5, %v10938_v10, %v10835_v57  ;;  %v9638_v15 = vld [vmem:[%s10708_s29 + $0x6a4] ss:$16 sps:$4 sm:$0xff]   ;;  %v9633_v57 = vld [vmem:[%s10708_s29 + $0x6c8] ss:$16 sps:$4 sm:$0xff]   ;;  %v9641_v10 = vld [vmem:[%s10708_s29 + $0x6ac] ss:$16 sps:$4 sm:$0xff]  }
 0xde4   : > { %8716 = vmatprep.subr.bf16.mxu1 %v9603_v16  ;;  %8738 = vmatprep.subr.bf16.mxu0 %v9605_v17  ;;  %v9627_v16 = vld [vmem:[%s10708_s29 + $0x6e8] ss:$16 sps:$4 sm:$0xff]   ;;  %v5242_v17 = vpack.c.bf16 %v5241_v14, %v5241_v14 }
 0xde5   : > { %v9711_v14 = vld [vmem:[%s10708_s29 + $0x728] ss:$16 sps:$4 sm:$0xff]  }
 0xde7   : > { %8717 = vmatpush3.bf16.msra.mxu1 %v9604_v18  ;;  %8739 = vmatpush3.bf16.msra.mxu0 %v9606_v19  ;;  %v9635_v18 = vld [vmem:[%s10708_s29 + $0x6cc] ss:$16 sps:$4 sm:$0xff]   ;;  %v9636_v19 = vld [vmem:[%s10708_s29 + $0x6a0] ss:$16 sps:$4 sm:$0xff]  }
 0xde8   : > { %8718 = vmatprep.subr.bf16.mxu1 %v9607_v20  ;;  %8740 = vmatprep.subr.bf16.mxu0 %v9609_v21  ;;  %v9644_v20 = vld [vmem:[%s10708_s29 + $0x684] ss:$16 sps:$4 sm:$0xff]   ;;  %v9642_v21 = vld [vmem:[%s10708_s29 + $0x680] ss:$16 sps:$4 sm:$0xff]  }
 0xdeb   : > { %8719 = vmatpush3.bf16.msra.mxu1 %v9608_v22  ;;  %8741 = vmatpush3.bf16.msra.mxu0 %v9610_v5  ;;  %v9650_v22 = vld [vmem:[%s10708_s29 + $0x664] ss:$16 sps:$4 sm:$0xff]   ;;  %v9639_v5 = vld [vmem:[%s10708_s29 + $0x6a8] ss:$16 sps:$4 sm:$0xff]  }
 0xdec   : > { %8720 = vmatprep.subr.bf16.mxu1 %v9611_v47  ;;  %8742 = vmatprep.subr.bf16.mxu0 %v9613_v12  ;;  %v9647_v47 = vld [vmem:[%s10708_s29 + $0x68c] ss:$16 sps:$4 sm:$0xff]   ;;  %v9648_v12 = vld [vmem:[%s10708_s29 + $0x660] ss:$16 sps:$4 sm:$0xff]  }
 0xdef   : > { %8721 = vmatpush3.bf16.msra.mxu1 %v9612_v29  ;;  %8743 = vmatpush3.bf16.msra.mxu0 %v9614_v30  ;;  %v9656_v29 = vld [vmem:[%s10708_s29 + $0x644] ss:$16 sps:$4 sm:$0xff]   ;;  %v9645_v30 = vld [vmem:[%s10708_s29 + $0x688] ss:$16 sps:$4 sm:$0xff]  }
 0xdf0   : > { %8722 = vmatprep.subr.bf16.mxu1 %v9615_v52  ;;  %8744 = vmatprep.subr.bf16.mxu0 %v9617_v25  ;;  %v9653_v52 = vld [vmem:[%s10708_s29 + $0x66c] ss:$16 sps:$4 sm:$0xff]   ;;  %v9654_v25 = vld [vmem:[%s10708_s29 + $0x640] ss:$16 sps:$4 sm:$0xff]  }
 0xdf3   : > { %8723 = vmatpush3.bf16.msra.mxu1 %v9616_v31  ;;  %8745 = vmatpush3.bf16.msra.mxu0 %v9618_v32  ;;  %v9662_v31 = vld [vmem:[%s10708_s29 + $0x624] ss:$16 sps:$4 sm:$0xff]   ;;  %v9651_v32 = vld [vmem:[%s10708_s29 + $0x668] ss:$16 sps:$4 sm:$0xff]  }
 0xdf4   : > { %8077 = vmatprep.subr.msk.bf16.mxu1 %vm2483_vm4, %v8076_v34  ;;  %5737 = vmatprep.subr.bf16.mxu0 %v9626_v35  ;;  %v9660_v34 = vld [vmem:[%s10708_s29 + $0x620] ss:$16 sps:$4 sm:$0xff]   ;;  %v9668_v35 = vld [vmem:[%s10708_s29 + $0x604] ss:$16 sps:$4 sm:$0xff]  }
 0xe96   : > { %v4838_v41 = vpop.f32.mrf.mxu1  ;;  %v4879_v43 = vpop.f32.mrf.mxu0 }
 0xe97   : > { %v4839_v44 = vadd.f32 %v4838_v41, %v4467_v37  ;;  %v4880_v45 = vadd.f32 %v4879_v43, %v4475_v38  ;;  %v9665_v37 = vld [vmem:[%s10708_s29 + $0x62c] ss:$16 sps:$4 sm:$0xff]   ;;  %v9666_v38 = vld [vmem:[%s10708_s29 + $0x600] ss:$16 sps:$4 sm:$0xff]  }
 0xe98   : > { %v4840_v46 = vpop.f32.mrf.mxu1  ;;  %v4881_v48 = vpop.f32.mrf.mxu0  ;;  %v9671_v41 = vld [vmem:[%s10708_s29 + $0x60c] ss:$16 sps:$4 sm:$0xff]   ;;  %v9672_v43 = vld [vmem:[%s10708_s29 + $0x7e0] ss:$16 sps:$4 sm:$0xff]  }
 0xe99   : > { %v4841_v49 = vadd.f32 %v4840_v46, %v4471_v39  ;;  %v4882_v50 = vadd.f32 %v4881_v48, %v4479_v40  ;;  %v4886_v51 = vmax.f32 %v4839_v44, 0.0  ;;  %v4888_v53 = vmax.f32 %v4880_v45, 0.0  ;;  %v9674_v39 = vld [vmem:[%s10708_s29 + $0x7e4] ss:$16 sps:$4 sm:$0xff]   ;;  %v9663_v40 = vld [vmem:[%s10708_s29 + $0x628] ss:$16 sps:$4 sm:$0xff]  }
 0xe9a   : > { %v4842_v54 = vpop.f32.mrf.mxu1  ;;  %v4883_v55 = vpop.f32.mrf.mxu0  ;;  %v9680_v44 = vld [vmem:[%s10708_s29 + $0x7c4] ss:$16 sps:$4 sm:$0xff]   ;;  %v9669_v45 = vld [vmem:[%s10708_s29 + $0x608] ss:$16 sps:$4 sm:$0xff]   ;;  %v9677_v46 = vld [vmem:[%s10708_s29 + $0x7ec] ss:$16 sps:$4 sm:$0xff]  }
 0xe9b   : > { %v4887_v58 = vmax.f32 %v4841_v49, 0.0  ;;  %v4889_v59 = vmax.f32 %v4882_v50, 0.0  ;;  %v4890_v2 = vpack.c.bf16 %v4886_v51, %v4886_v51  ;;  %v4892_v3 = vpack.c.bf16 %v4888_v53, %v4888_v53  ;;  %v9678_v48 = vld [vmem:[%s10708_s29 + $0x7c0] ss:$16 sps:$4 sm:$0xff]   ;;  %v9686_v49 = vld [vmem:[%s10708_s29 + $0x7a4] ss:$16 sps:$4 sm:$0xff]  }
 0xe9c   : > { %v4843_v60 = vpop.f32.mrf.mxu1  ;;  %v4884_v61 = vpop.f32.mrf.mxu0  ;;  %v9675_v50 = vld [vmem:[%s10708_s29 + $0x7e8] ss:$16 sps:$4 sm:$0xff]   ;;  %v9683_v51 = vld [vmem:[%s10708_s29 + $0x7cc] ss:$16 sps:$4 sm:$0xff]   ;;  %v9684_v53 = vld [vmem:[%s10708_s29 + $0x7a0] ss:$16 sps:$4 sm:$0xff]  }
 0xe9d   : > { %v4891_v62 = vpack.c.bf16 %v4887_v58, %v4887_v58  ;;  %v4893_v63 = vpack.c.bf16 %v4889_v59, %v4889_v59  ;;  %v9692_v54 = vld [vmem:[%s10708_s29 + $0x784] ss:$16 sps:$4 sm:$0xff]   ;;  %v9681_v55 = vld [vmem:[%s10708_s29 + $0x7c8] ss:$16 sps:$4 sm:$0xff]   ;;  %v9690_v58 = vld [vmem:[%s10708_s29 + $0x780] ss:$16 sps:$4 sm:$0xff]  }
 0xe9e   : > { %v9687_v59 = vld [vmem:[%s10708_s29 + $0x7a8] ss:$16 sps:$4 sm:$0xff]   ;;  %v9695_v60 = vld [vmem:[%s10708_s29 + $0x78c] ss:$16 sps:$4 sm:$0xff]  }
 0xe9f   : > { %5191 = vmatprep.mubr.bf16.mxu1 %v4891_v62  ;;  %5231 = vmatprep.mubr.bf16.mxu0 %v4893_v63  ;;  %v9693_v61 = vld [vmem:[%s10708_s29 + $0x788] ss:$16 sps:$4 sm:$0xff]   ;;  %v9698_v62 = vld [vmem:[%s10708_s29 + $0x764] ss:$16 sps:$4 sm:$0xff]   ;;  %v9701_v63 = vld [vmem:[%s10708_s29 + $0x76c] ss:$16 sps:$4 sm:$0xff]  }
 0xea0   : > { %5192 = vmatmul.mubr.bf16.vlgmr.msra.gmra.mxu1 %v4890_v2  ;;  %5232 = vmatmul.mubr.bf16.vlgmr.msra.gmra.mxu0 %v4892_v3  ;;  %v9696_v2 = vld [vmem:[%s10708_s29 + $0x760] ss:$16 sps:$4 sm:$0xff]   ;;  %v9699_v3 = vld [vmem:[%s10708_s29 + $0x768] ss:$16 sps:$4 sm:$0xff]  }
 0xea1   : > { %5297 = vmatpush1.bf16.msra.mxu1 %v5279_v4  ;;  %5316 = vmatprep.mubr.bf16.mxu1 %v10288_v0  ;;  %v9704_v4 = vld [vmem:[%s10708_s29 + $0x744] ss:$16 sps:$4 sm:$0xff]  }
 0xea2   : > { %5298 = vmatprep.subr.bf16.mxu1 %v9623_v6  ;;  %5738 = vmatpush1.bf16.msra.mxu0 %v9624_v7  ;;  %v9707_v6 = vld [vmem:[%s10708_s29 + $0x74c] ss:$16 sps:$4 sm:$0xff]   ;;  %v9702_v7 = vld [vmem:[%s10708_s29 + $0x740] ss:$16 sps:$4 sm:$0xff]  }
 0xea3   : > { %5739 = vmatprep.subr.bf16.mxu0 %v9632_v8  ;;  %v9705_v8 = vld [vmem:[%s10708_s29 + $0x748] ss:$16 sps:$4 sm:$0xff]  }
 0xea5   : > { %5299 = vmatpush1.bf16.msra.mxu1 %v9621_v9  ;;  %v9710_v9 = vld [vmem:[%s10708_s29 + $0x724] ss:$16 sps:$4 sm:$0xff]  }
 0xea6   : > { %5778 = vmatprep.subr.bf16.mxu1 %v9629_v11  ;;  %5740 = vmatpush1.bf16.msra.mxu0 %v9630_v13  ;;  %v9713_v11 = vld [vmem:[%s10708_s29 + $0x72c] ss:$16 sps:$4 sm:$0xff]   ;;  %v9708_v13 = vld [vmem:[%s10708_s29 + $0x720] ss:$16 sps:$4 sm:$0xff]  }
 0xea7   : > { %5741 = vmatprep.subr.bf16.mxu0 %v9638_v15  ;;  %v9716_v15 = vld [vmem:[%s10708_s29 + $0x704] ss:$16 sps:$4 sm:$0xff]  }
 0xea8   : > { %8078 = vmatmul.mubr.msk.bf16.vlgmr.msra.gmra.mxu1 %vm1646_vm3, %v5242_v17  ;;  %v9714_v17 = vld [vmem:[%s10708_s29 + $0x700] ss:$16 sps:$4 sm:$0xff]  }
 0xea9   : > { %5779 = vmatpush1.bf16.msra.mxu1 %v9627_v16  ;;  %v9719_v16 = vld [vmem:[%s10708_s29 + $0x70c] ss:$16 sps:$4 sm:$0xff]  }
 0xeaa   : > { %5780 = vmatprep.subr.bf16.mxu1 %v9635_v18  ;;  %5742 = vmatpush1.bf16.msra.mxu0 %v9636_v19  ;;  %v9717_v18 = vld [vmem:[%s10708_s29 + $0x708] ss:$16 sps:$4 sm:$0xff]  }
 0xeab   : > { %5743 = vmatprep.subr.bf16.mxu0 %v9644_v20  ;;  %v9720_v19 = vld [vmem:[%s10933_s1 + $0x378] sm:$0xff]  }
 0xeac   : > { %v9722_v20 = vld [vmem:[%s10933_s1 + $0x3f8] sm:$0xff]  }
 0xead   : > { %5781 = vmatpush1.bf16.msra.mxu1 %v9633_v57 }
 0xeae   : > { %5782 = vmatprep.subr.bf16.mxu1 %v9641_v10  ;;  %5744 = vmatpush1.bf16.msra.mxu0 %v9642_v21  ;;  %v8035_v21 = vld [vmem:[%s10716_s28 + $0x2] ss:$0 sm:$0xff] }
 0xeaf   : > { %5745 = vmatprep.subr.bf16.mxu0 %v9650_v22 }
 0xeb1   : > { %5783 = vmatpush1.bf16.msra.mxu1 %v9639_v5 }
 0xeb2   : > { %5784 = vmatprep.subr.bf16.mxu1 %v9647_v47  ;;  %5746 = vmatpush1.bf16.msra.mxu0 %v9648_v12  ;;  %v8072_v47 = vld [vmem:[%s10706_s30 + $0x6] sm:$0x3] }
 0xeb3   : > { %5747 = vmatprep.subr.bf16.mxu0 %v9656_v29 }
 0xeb5   : > { %5785 = vmatpush1.bf16.msra.mxu1 %v9645_v30 }
 0xeb6   : > { %5786 = vmatprep.subr.bf16.mxu1 %v9653_v52  ;;  %5748 = vmatpush1.bf16.msra.mxu0 %v9654_v25 }
 0xeb7   : > { %5749 = vmatprep.subr.bf16.mxu0 %v9662_v31  ;;  %v5253_v31 = vrot.slane %v8072_v47, %v10729_v23 }
 0xeb9   : > { %5787 = vmatpush1.bf16.msra.mxu1 %v9651_v32 }
 0xeba   : > { %5788 = vmatprep.subr.bf16.mxu1 %v9659_v33  ;;  %5750 = vmatpush1.bf16.msra.mxu0 %v9660_v34 }
 0xebb   : > { %5751 = vmatprep.subr.bf16.mxu0 %v9668_v35  ;;  %v5257_v35 = vrot.slane %v8072_v47, %v10733_v26 }
 0xebd   : > { %5789 = vmatpush1.bf16.msra.mxu1 %v9657_v36 }
 0xebe   : > { %5790 = vmatprep.subr.bf16.mxu1 %v9665_v37  ;;  %5752 = vmatpush1.bf16.msra.mxu0 %v9666_v38 }
 0xebf   : > { %5753 = vmatprep.subr.bf16.mxu0 %v9674_v39 }
 0xec1   : > { %5791 = vmatpush1.bf16.msra.mxu1 %v9663_v40 }
 0xec2   : > { %5792 = vmatprep.subr.bf16.mxu1 %v9671_v41  ;;  %5754 = vmatpush2.bf16.msra.mxu0 %v9672_v43 }
 0xec3   : > { %5755 = vmatprep.subr.bf16.mxu0 %v9680_v44 }
 0xec5   : > { %5793 = vmatpush1.bf16.msra.mxu1 %v9669_v45 }
 0xec6   : > { %5794 = vmatprep.subr.bf16.mxu1 %v9677_v46  ;;  %5756 = vmatpush2.bf16.msra.mxu0 %v9678_v48  ;;  %v9721_v46 = vld [vmem:[%s10933_s1 + $0x338] sm:$0xff]  }
 0xec7   : > { %5757 = vmatprep.subr.bf16.mxu0 %v9686_v49  ;;  %v9723_v48 = vld [vmem:[%s10933_s1 + $0x3b8] sm:$0xff]  }
 0xec9   : > { %5795 = vmatpush2.bf16.msra.mxu1 %v9675_v50  ;;  %v9724_v50 = vld [vmem:[%s10933_s1 + $0x370] sm:$0xff]  }
 0xeca   : > { %5796 = vmatprep.subr.bf16.mxu1 %v9683_v51  ;;  %5758 = vmatpush2.bf16.msra.mxu0 %v9684_v53  ;;  %v9726_v51 = vld [vmem:[%s10933_s1 + $0x3f0] sm:$0xff]  }
 0xecb   : > { %5759 = vmatprep.subr.bf16.mxu0 %v9692_v54  ;;  %v9725_v53 = vld [vmem:[%s10933_s1 + $0x330] sm:$0xff]  }
 0xecc   : > { %v9727_v54 = vld [vmem:[%s10933_s1 + $0x3b0] sm:$0xff]  }
 0xecd   : > { %5797 = vmatpush2.bf16.msra.mxu1 %v9681_v55  ;;  %v9728_v55 = vld [vmem:[%s10933_s1 + $0x368] sm:$0xff]  }
 0xece   : > { %5798 = vmatprep.subr.bf16.mxu1 %v9689_v56  ;;  %5760 = vmatpush2.bf16.msra.mxu0 %v9690_v58  ;;  %v9730_v56 = vld [vmem:[%s10933_s1 + $0x3e8] sm:$0xff]  }
 0xecf   : > { %5761 = vmatprep.subr.bf16.mxu0 %v9698_v62  ;;  %v9729_v58 = vld [vmem:[%s10933_s1 + $0x328] sm:$0xff]   ;;  %v9733_v62 = vld [vmem:[%s10933_s1 + $0x320] sm:$0xff]  }
 0xed1   : > { %5799 = vmatpush2.bf16.msra.mxu1 %v9687_v59  ;;  %v9731_v59 = vld [vmem:[%s10933_s1 + $0x3a8] sm:$0xff]  }
 0xed2   : > { %5800 = vmatprep.subr.bf16.mxu1 %v9695_v60  ;;  %5762 = vmatpush2.bf16.msra.mxu0 %v9696_v2  ;;  %v9732_v60 = vld [vmem:[%s10933_s1 + $0x360] sm:$0xff]   ;;  %v9736_v2 = vld [vmem:[%s10933_s1 + $0x358] sm:$0xff]  }
 0xed3   : > { %5763 = vmatprep.subr.bf16.mxu0 %v9704_v4  ;;  %v9737_v4 = vld [vmem:[%s10933_s1 + $0x318] sm:$0xff]  }
 0xed5   : > { %5801 = vmatpush2.bf16.msra.mxu1 %v9693_v61  ;;  %v9734_v61 = vld [vmem:[%s10933_s1 + $0x3e0] sm:$0xff]  }
 0xed6   : > { %5802 = vmatprep.subr.bf16.mxu1 %v9701_v63  ;;  %5764 = vmatpush2.bf16.msra.mxu0 %v9702_v7  ;;  %v9735_v63 = vld [vmem:[%s10933_s1 + $0x3a0] sm:$0xff]   ;;  %v9740_v7 = vld [vmem:[%s10933_s1 + $0x350] sm:$0xff]  }
 0xed7   : > { %5765 = vmatprep.subr.bf16.mxu0 %v9710_v9  ;;  %v9741_v9 = vld [vmem:[%s10933_s1 + $0x310] sm:$0xff]  }
 0xed9   : > { %5803 = vmatpush2.bf16.msra.mxu1 %v9699_v3  ;;  %v9738_v3 = vld [vmem:[%s10933_s1 + $0x3d8] sm:$0xff]  }
 0xeda   : > { %5804 = vmatprep.subr.bf16.mxu1 %v9707_v6  ;;  %5766 = vmatpush2.bf16.msra.mxu0 %v9708_v13  ;;  %v9739_v6 = vld [vmem:[%s10933_s1 + $0x398] sm:$0xff]   ;;  %v9744_v13 = vld [vmem:[%s10933_s1 + $0x348] sm:$0xff]  }
 0xedb   : > { %5767 = vmatprep.subr.bf16.mxu0 %v9716_v15  ;;  %v9745_v15 = vld [vmem:[%s10933_s1 + $0x308] sm:$0xff]  }
 0xedd   : > { %5805 = vmatpush2.bf16.msra.mxu1 %v9705_v8  ;;  %v9742_v8 = vld [vmem:[%s10933_s1 + $0x3d0] sm:$0xff]  }
 0xede   : > { %5806 = vmatprep.subr.bf16.mxu1 %v9713_v11  ;;  %5768 = vmatpush2.bf16.msra.mxu0 %v9714_v17  ;;  %v9743_v11 = vld [vmem:[%s10933_s1 + $0x390] sm:$0xff]   ;;  %v9748_v17 = vld [vmem:[%s10933_s1 + $0x340] sm:$0xff]  }
 0xedf   : > { %8752 = vmatprep.subr.bf16.mxu0 %v9720_v19  ;;  %v9749_v19 = vld [vmem:[%s10933_s1 + $0x300] sm:$0xff]  }
 0xee1   : > { %5807 = vmatpush2.bf16.msra.mxu1 %v9711_v14  ;;  %v9746_v14 = vld [vmem:[%s10933_s1 + $0x3c8] sm:$0xff]  }
 0xee2   : > { %5808 = vmatprep.subr.bf16.mxu1 %v9719_v16  ;;  %v9747_v16 = vld [vmem:[%s10933_s1 + $0x388] sm:$0xff]  }
 0xee5   : > { %5809 = vmatpush2.bf16.msra.mxu1 %v9717_v18  ;;  %v9750_v18 = vld [vmem:[%s10933_s1 + $0x3c0] sm:$0xff]  }
 0xee6   : > { %8774 = vmatprep.subr.bf16.mxu1 %v9722_v20  ;;  %v9751_v20 = vld [vmem:[%s10933_s1 + $0x380] sm:$0xff]  }
 0xf60   : > { %v8724_v57 = vpop.f32.mrf.mxu1  ;;  %v8746_v10 = vpop.f32.mrf.mxu0 }
 0xf62   : > { %v8725_v22 = vpop.f32.mrf.mxu1  ;;  %v8747_v5 = vpop.f32.mrf.mxu0 }
 0xf63   : > { %v8726_v12 = vadd.f32 %v8725_v22, %v8724_v57  ;;  %v8748_v25 = vadd.f32 %v8747_v5, %v8746_v10  ;;  %v8309_v57 = vld [vmem:[%s10700_s6 + $0x70] sm:$0x33] }
 0xf64   : > { %v8727_v29 = vpop.f32.mrf.mxu1  ;;  %v8749_v30 = vpop.f32.mrf.mxu0  ;;  %v8314_v10 = vcombine.high %v8309_v57, %v8309_v57  ;;  %v8143_v22 = vld [vmem:[%s10714_s12 + $0xc] sm:$0xf] }
 0xf65   : > { %v5194_v52 = vadd.f32 %v8726_v12, %v8035_v21  ;;  %v9759_v21 = vld [vmem:[%s10708_s29 + $0x8e4] ss:$16 sps:$4 sm:$0xff]   ;;  %v5400_v5 = vrot.slane %v8143_v22, %v10729_v23  ;;  %v5408_v47 = vrot.slane %v8143_v22, %v10731_v24  ;;  %v5404_v12 = vrot.slane %v8143_v22, %v10733_v26 }
 0xf66   : > { %v8728_v32 = vpop.f32.mrf.mxu1  ;;  %v8750_v33 = vpop.f32.mrf.mxu0  ;;  %v5412_v29 = vrot.slane %v8143_v22, %v10735_v27  ;;  %v9796_v22 = vld [vmem:[%s10708_s29 + $0x828] ss:$16 sps:$4 sm:$0xff]  }
 0xf67   : > { %v5234_v34 = vadd.f32 %v8748_v25, %v5194_v52 }
 0xf68   : > { %v5318_v36 = vpop.f32.mrf.mxu1 }
 0xf69   : > { %8068 = vst.msk [vmem:[%s11096_s24 + $0x10] sm:$0xff] %vm892_vm0, %v5234_v34  ;;  %v5319_v37 = vadd.f32 %v5318_v36, %v5253_v31 }
 0xf6a   : > { %v5320_v38 = vpop.f32.mrf.mxu1 }
 0xf6b   : > { %v5321_v39 = vadd.f32 %v5320_v38, %v5257_v35  ;;  %v5325_v40 = vmax.f32 %v5319_v37, 0.0 }
 0xf6c   : > { %v5322_v41 = vpop.f32.mrf.mxu1 }
 0xf6d   : > { %v5326_v43 = vmax.f32 %v5321_v39, 0.0  ;;  %v5327_v49 = vpack.c.bf16 %v5325_v40, %v5325_v40  ;;  %v8313_v40 = vcombine.low %v8309_v57, %v8309_v57  ;;  %v9798_v57 = vld [vmem:[%s10708_s29 + $0x82c] ss:$16 sps:$4 sm:$0xff]  }
 0xf6e   : > { %v5323_v44 = vpop.f32.mrf.mxu1 }
 0xf6f   : > { %v5328_v45 = vpack.c.bf16 %v5326_v43, %v5326_v43 }
 0xf71   : > { %5769 = vmatprep.mubr.bf16.mxu0 %v5328_v45  ;;  %5810 = vmatprep.mubr.bf16.mxu1 %v5328_v45 }
 0xf72   : > { %5770 = vmatmul.mubr.bf16.vlgmr.msra.gmra.mxu0 %v5327_v49  ;;  %5811 = vmatmul.mubr.bf16.vlgmr.msra.gmra.mxu1 %v5327_v49 }
 0xf73   : > { %8753 = vmatpush3.bf16.msra.mxu0 %v9721_v46  ;;  %8775 = vmatpush3.bf16.msra.mxu1 %v9723_v48 }
 0xf74   : > { %8754 = vmatprep.subr.bf16.mxu0 %v9724_v50  ;;  %8776 = vmatprep.subr.bf16.mxu1 %v9726_v51  ;;  %v6212_v51 = vsel %vm2483_vm4, %v8313_v40, 0  ;;  %v9826_v40 = vld [vmem:[%s10708_s29 + $0x988] ss:$16 sps:$4 sm:$0xff]  }
 0xf77   : > { %8755 = vmatpush3.bf16.msra.mxu0 %v9725_v53  ;;  %8777 = vmatpush3.bf16.msra.mxu1 %v9727_v54  ;;  %v9756_v53 = vld [vmem:[%s10700_s6 + $0x64] ss:$8 sps:$4 sm:$0xff]  }
 0xf78   : > { %8756 = vmatprep.subr.bf16.mxu0 %v9728_v55  ;;  %8778 = vmatprep.subr.bf16.mxu1 %v9730_v56  ;;  %v9757_v54 = vld [vmem:[%s10708_s29 + $0x8e0] ss:$16 sps:$4 sm:$0xff]   ;;  %v9765_v55 = vld [vmem:[%s10708_s29 + $0x8c4] ss:$16 sps:$4 sm:$0xff]  }
 0xf79   : > { %v9754_v56 = vld [vmem:[%s10700_s6 + $0x60] ss:$8 sps:$4 sm:$0xff]  }
 0xf7b   : > { %8757 = vmatpush3.bf16.msra.mxu0 %v9729_v58  ;;  %8779 = vmatpush3.bf16.msra.mxu1 %v9731_v59  ;;  %v9762_v58 = vld [vmem:[%s10708_s29 + $0x8ec] ss:$16 sps:$4 sm:$0xff]   ;;  %v9763_v59 = vld [vmem:[%s10708_s29 + $0x8c0] ss:$16 sps:$4 sm:$0xff]  }
 0xf7c   : > { %8758 = vmatprep.subr.bf16.mxu0 %v9732_v60  ;;  %8780 = vmatprep.subr.bf16.mxu1 %v9734_v61  ;;  %v6174_v60 = vsel %vm10881_vm5, %v11007_v42, %v10849_v1  ;;  %v9771_v61 = vld [vmem:[%s10708_s29 + $0x8a4] ss:$16 sps:$4 sm:$0xff]   ;;  %v9766_v1 = vld [vmem:[%s10708_s29 + $0x8c8] ss:$16 sps:$4 sm:$0xff]   ;;  %v9775_v42 = vld [vmem:[%s10708_s29 + $0x880] ss:$16 sps:$4 sm:$0xff]  }
 0xf7f   : > { %8759 = vmatpush3.bf16.msra.mxu0 %v9733_v62  ;;  %8781 = vmatpush3.bf16.msra.mxu1 %v9735_v63  ;;  %v9760_v62 = vld [vmem:[%s10708_s29 + $0x8e8] ss:$16 sps:$4 sm:$0xff]   ;;  %v6175_v63 = vpack.c.bf16 %v6174_v60, %v6174_v60 }
 0xf80   : > { %8760 = vmatprep.subr.bf16.mxu0 %v9736_v2  ;;  %8782 = vmatprep.subr.bf16.mxu1 %v9738_v3  ;;  %v9769_v2 = vld [vmem:[%s10708_s29 + $0x8a0] ss:$16 sps:$4 sm:$0xff]   ;;  %v9777_v3 = vld [vmem:[%s10708_s29 + $0x884] ss:$16 sps:$4 sm:$0xff]   ;;  %v9850_v60 = vld [vmem:[%s10708_s29 + $0x908] ss:$16 sps:$4 sm:$0xff]  }
 0xf83   : > { %8761 = vmatpush3.bf16.msra.mxu0 %v9737_v4  ;;  %8783 = vmatpush3.bf16.msra.mxu1 %v9739_v6  ;;  %v9783_v4 = vld [vmem:[%s10708_s29 + $0x864] ss:$16 sps:$4 sm:$0xff]   ;;  %v9772_v6 = vld [vmem:[%s10708_s29 + $0x8a8] ss:$16 sps:$4 sm:$0xff]  }
 0xf84   : > { %8762 = vmatprep.subr.bf16.mxu0 %v9740_v7  ;;  %8784 = vmatprep.subr.bf16.mxu1 %v9742_v8  ;;  %v9780_v7 = vld [vmem:[%s10708_s29 + $0x88c] ss:$16 sps:$4 sm:$0xff]   ;;  %v9781_v8 = vld [vmem:[%s10708_s29 + $0x860] ss:$16 sps:$4 sm:$0xff]  }
 0xf87   : > { %8763 = vmatpush3.bf16.msra.mxu0 %v9741_v9  ;;  %8785 = vmatpush3.bf16.msra.mxu1 %v9743_v11  ;;  %v9789_v9 = vld [vmem:[%s10708_s29 + $0x844] ss:$16 sps:$4 sm:$0xff]   ;;  %v9778_v11 = vld [vmem:[%s10708_s29 + $0x888] ss:$16 sps:$4 sm:$0xff]  }
 0xf88   : > { %8764 = vmatprep.subr.bf16.mxu0 %v9744_v13  ;;  %8786 = vmatprep.subr.bf16.mxu1 %v9746_v14  ;;  %v9786_v13 = vld [vmem:[%s10708_s29 + $0x86c] ss:$16 sps:$4 sm:$0xff]   ;;  %v9787_v14 = vld [vmem:[%s10708_s29 + $0x840] ss:$16 sps:$4 sm:$0xff]  }
 0xf8b   : > { %8765 = vmatpush3.bf16.msra.mxu0 %v9745_v15  ;;  %8787 = vmatpush3.bf16.msra.mxu1 %v9747_v16  ;;  %v9795_v15 = vld [vmem:[%s10708_s29 + $0x824] ss:$16 sps:$4 sm:$0xff]   ;;  %v9784_v16 = vld [vmem:[%s10708_s29 + $0x868] ss:$16 sps:$4 sm:$0xff]  }
 0xf8c   : > { %8766 = vmatprep.subr.bf16.mxu0 %v9748_v17  ;;  %8788 = vmatprep.subr.bf16.mxu1 %v9750_v18  ;;  %v9792_v17 = vld [vmem:[%s10708_s29 + $0x84c] ss:$16 sps:$4 sm:$0xff]   ;;  %v9793_v18 = vld [vmem:[%s10708_s29 + $0x820] ss:$16 sps:$4 sm:$0xff]  }
 0xf8f   : > { %8767 = vmatpush3.bf16.msra.mxu0 %v9749_v19  ;;  %8789 = vmatpush3.bf16.msra.mxu1 %v9751_v20  ;;  %v9801_v19 = vld [vmem:[%s10708_s29 + $0x804] ss:$16 sps:$4 sm:$0xff]   ;;  %v9790_v20 = vld [vmem:[%s10708_s29 + $0x848] ss:$16 sps:$4 sm:$0xff]  }
 0xf90   : > { %8315 = vmatprep.subr.msk.bf16.mxu0 %vm2483_vm4, %v8314_v10  ;;  %6670 = vmatprep.subr.bf16.mxu1 %v9759_v21  ;;  %v9799_v10 = vld [vmem:[%s10708_s29 + $0x800] ss:$16 sps:$4 sm:$0xff]   ;;  %v9807_v21 = vld [vmem:[%s10708_s29 + $0x9e4] ss:$16 sps:$4 sm:$0xff]  }
0x1032   : > { %v5771_v30 = vpop.f32.mrf.mxu0  ;;  %v5812_v52 = vpop.f32.mrf.mxu1 }
0x1033   : > { %v5772_v25 = vadd.f32 %v5771_v30, %v5400_v5  ;;  %v5813_v31 = vadd.f32 %v5812_v52, %v5408_v47  ;;  %v9804_v5 = vld [vmem:[%s10708_s29 + $0x80c] ss:$16 sps:$4 sm:$0xff]   ;;  %v9805_v47 = vld [vmem:[%s10708_s29 + $0x9e0] ss:$16 sps:$4 sm:$0xff]  }
0x1034   : > { %v5773_v32 = vpop.f32.mrf.mxu0  ;;  %v5814_v33 = vpop.f32.mrf.mxu1  ;;  %v9810_v30 = vld [vmem:[%s10708_s29 + $0x9ec] ss:$16 sps:$4 sm:$0xff]   ;;  %v9811_v52 = vld [vmem:[%s10708_s29 + $0x9c0] ss:$16 sps:$4 sm:$0xff]  }
0x1035   : > { %v5774_v34 = vadd.f32 %v5773_v32, %v5404_v12  ;;  %v5815_v35 = vadd.f32 %v5814_v33, %v5412_v29  ;;  %v5819_v36 = vmax.f32 %v5772_v25, 0.0  ;;  %v5821_v37 = vmax.f32 %v5813_v31, 0.0  ;;  %v9813_v12 = vld [vmem:[%s10708_s29 + $0x9c4] ss:$16 sps:$4 sm:$0xff]   ;;  %v9802_v29 = vld [vmem:[%s10708_s29 + $0x808] ss:$16 sps:$4 sm:$0xff]  }
0x1036   : > { %v5775_v38 = vpop.f32.mrf.mxu0  ;;  %v5816_v39 = vpop.f32.mrf.mxu1  ;;  %v9819_v25 = vld [vmem:[%s10708_s29 + $0x9a4] ss:$16 sps:$4 sm:$0xff]   ;;  %v9808_v31 = vld [vmem:[%s10708_s29 + $0x9e8] ss:$16 sps:$4 sm:$0xff]   ;;  %v9816_v32 = vld [vmem:[%s10708_s29 + $0x9cc] ss:$16 sps:$4 sm:$0xff]  }
0x1037   : > { %v5820_v41 = vmax.f32 %v5774_v34, 0.0  ;;  %v5822_v43 = vmax.f32 %v5815_v35, 0.0  ;;  %v5823_v49 = vpack.c.bf16 %v5819_v36, %v5819_v36  ;;  %v5825_v50 = vpack.c.bf16 %v5821_v37, %v5821_v37  ;;  %v9817_v33 = vld [vmem:[%s10708_s29 + $0x9a0] ss:$16 sps:$4 sm:$0xff]   ;;  %v9825_v34 = vld [vmem:[%s10708_s29 + $0x984] ss:$16 sps:$4 sm:$0xff]  }
0x1038   : > { %v5776_v44 = vpop.f32.mrf.mxu0  ;;  %v5817_v45 = vpop.f32.mrf.mxu1  ;;  %v9814_v35 = vld [vmem:[%s10708_s29 + $0x9c8] ss:$16 sps:$4 sm:$0xff]   ;;  %v9822_v36 = vld [vmem:[%s10708_s29 + $0x9ac] ss:$16 sps:$4 sm:$0xff]   ;;  %v9823_v37 = vld [vmem:[%s10708_s29 + $0x980] ss:$16 sps:$4 sm:$0xff]  }
0x1039   : > { %v5824_v46 = vpack.c.bf16 %v5820_v41, %v5820_v41  ;;  %v5826_v48 = vpack.c.bf16 %v5822_v43, %v5822_v43  ;;  %v9820_v38 = vld [vmem:[%s10708_s29 + $0x9a8] ss:$16 sps:$4 sm:$0xff]   ;;  %v9828_v39 = vld [vmem:[%s10708_s29 + $0x98c] ss:$16 sps:$4 sm:$0xff]   ;;  %v9831_v41 = vld [vmem:[%s10708_s29 + $0x964] ss:$16 sps:$4 sm:$0xff]  }
0x103a   : > { %v9834_v43 = vld [vmem:[%s10708_s29 + $0x96c] ss:$16 sps:$4 sm:$0xff]   ;;  %v9829_v44 = vld [vmem:[%s10708_s29 + $0x960] ss:$16 sps:$4 sm:$0xff]   ;;  %v9832_v45 = vld [vmem:[%s10708_s29 + $0x968] ss:$16 sps:$4 sm:$0xff]  }
0x103b   : > { %6124 = vmatprep.mubr.bf16.mxu0 %v5824_v46  ;;  %6164 = vmatprep.mubr.bf16.mxu1 %v5826_v48  ;;  %v9837_v46 = vld [vmem:[%s10708_s29 + $0x944] ss:$16 sps:$4 sm:$0xff]   ;;  %v9840_v48 = vld [vmem:[%s10708_s29 + $0x94c] ss:$16 sps:$4 sm:$0xff]  }
0x103c   : > { %6125 = vmatmul.mubr.bf16.vlgmr.msra.gmra.mxu0 %v5823_v49  ;;  %6165 = vmatmul.mubr.bf16.vlgmr.msra.gmra.mxu1 %v5825_v50  ;;  %v9835_v49 = vld [vmem:[%s10708_s29 + $0x940] ss:$16 sps:$4 sm:$0xff]   ;;  %v9838_v50 = vld [vmem:[%s10708_s29 + $0x948] ss:$16 sps:$4 sm:$0xff]  }
0x103d   : > { %6230 = vmatpush1.bf16.msra.mxu0 %v6212_v51  ;;  %6249 = vmatprep.mubr.bf16.mxu0 %v10288_v0  ;;  %v9768_v0 = vld [vmem:[%s10708_s29 + $0x8cc] ss:$16 sps:$4 sm:$0xff]   ;;  %v9843_v51 = vld [vmem:[%s10708_s29 + $0x924] ss:$16 sps:$4 sm:$0xff]  }
0x103e   : > { %6231 = vmatprep.subr.bf16.mxu0 %v9756_v53  ;;  %6671 = vmatpush1.bf16.msra.mxu1 %v9757_v54  ;;  %v9846_v53 = vld [vmem:[%s10708_s29 + $0x92c] ss:$16 sps:$4 sm:$0xff]   ;;  %v9841_v54 = vld [vmem:[%s10708_s29 + $0x920] ss:$16 sps:$4 sm:$0xff]  }
0x103f   : > { %6672 = vmatprep.subr.bf16.mxu1 %v9765_v55  ;;  %v9844_v55 = vld [vmem:[%s10708_s29 + $0x928] ss:$16 sps:$4 sm:$0xff]  }
0x1041   : > { %6232 = vmatpush1.bf16.msra.mxu0 %v9754_v56  ;;  %v9849_v56 = vld [vmem:[%s10708_s29 + $0x904] ss:$16 sps:$4 sm:$0xff]  }
0x1042   : > { %6711 = vmatprep.subr.bf16.mxu0 %v9762_v58  ;;  %6673 = vmatpush1.bf16.msra.mxu1 %v9763_v59  ;;  %v9852_v58 = vld [vmem:[%s10708_s29 + $0x90c] ss:$16 sps:$4 sm:$0xff]   ;;  %v9847_v59 = vld [vmem:[%s10708_s29 + $0x900] ss:$16 sps:$4 sm:$0xff]  }
0x1043   : > { %6674 = vmatprep.subr.bf16.mxu1 %v9771_v61  ;;  %v9853_v61 = vld [vmem:[%s10933_s1 + $0x478] sm:$0xff]  }
0x1044   : > { %8316 = vmatmul.mubr.msk.bf16.vlgmr.msra.gmra.mxu0 %vm1646_vm3, %v6175_v63 }
0x1045   : > { %6712 = vmatpush1.bf16.msra.mxu0 %v9760_v62  ;;  %v9854_v62 = vld [vmem:[%s10933_s1 + $0x4f8] sm:$0xff]  }
0x1046   : > { %6713 = vmatprep.subr.bf16.mxu0 %v9768_v0  ;;  %6675 = vmatpush1.bf16.msra.mxu1 %v9769_v2  ;;  %v8273_v2 = vld [vmem:[%s10716_s28 + $0x3] ss:$0 sm:$0xff] }
0x1047   : > { %6676 = vmatprep.subr.bf16.mxu1 %v9777_v3 }
0x1049   : > { %6714 = vmatpush1.bf16.msra.mxu0 %v9766_v1 }
0x104a   : > { %6715 = vmatprep.subr.bf16.mxu0 %v9774_v28  ;;  %6677 = vmatpush1.bf16.msra.mxu1 %v9775_v42  ;;  %v8310_v28 = vld [vmem:[%s10706_s30 + $0x8] sm:$0x3] }
0x104b   : > { %6678 = vmatprep.subr.bf16.mxu1 %v9783_v4 }
0x104d   : > { %6716 = vmatpush1.bf16.msra.mxu0 %v9772_v6 }
0x104e   : > { %6717 = vmatprep.subr.bf16.mxu0 %v9780_v7  ;;  %6679 = vmatpush1.bf16.msra.mxu1 %v9781_v8 }
0x104f   : > { %6680 = vmatprep.subr.bf16.mxu1 %v9789_v9  ;;  %v6186_v9 = vrot.slane %v8310_v28, %v10729_v23 }
0x1051   : > { %6718 = vmatpush1.bf16.msra.mxu0 %v9778_v11 }
0x1052   : > { %6719 = vmatprep.subr.bf16.mxu0 %v9786_v13  ;;  %6681 = vmatpush1.bf16.msra.mxu1 %v9787_v14 }
0x1053   : > { %6682 = vmatprep.subr.bf16.mxu1 %v9795_v15  ;;  %v6190_v15 = vrot.slane %v8310_v28, %v10733_v26 }
0x1055   : > { %6720 = vmatpush1.bf16.msra.mxu0 %v9784_v16 }
0x1056   : > { %6721 = vmatprep.subr.bf16.mxu0 %v9792_v17  ;;  %6683 = vmatpush1.bf16.msra.mxu1 %v9793_v18 }
0x1057   : > { %6684 = vmatprep.subr.bf16.mxu1 %v9801_v19 }
0x1059   : > { %6722 = vmatpush1.bf16.msra.mxu0 %v9790_v20 }
0x105a   : > { %6723 = vmatprep.subr.bf16.mxu0 %v9798_v57  ;;  %6685 = vmatpush1.bf16.msra.mxu1 %v9799_v10 }
0x105b   : > { %6686 = vmatprep.subr.bf16.mxu1 %v9807_v21 }
0x105d   : > { %6724 = vmatpush1.bf16.msra.mxu0 %v9796_v22 }
0x105e   : > { %6725 = vmatprep.subr.bf16.mxu0 %v9804_v5  ;;  %6687 = vmatpush2.bf16.msra.mxu1 %v9805_v47  ;;  %v9855_v5 = vld [vmem:[%s10933_s1 + $0x438] sm:$0xff]  }
0x105f   : > { %6688 = vmatprep.subr.bf16.mxu1 %v9813_v12  ;;  %v9856_v47 = vld [vmem:[%s10933_s1 + $0x4b8] sm:$0xff]  }
0x1061   : > { %6726 = vmatpush1.bf16.msra.mxu0 %v9802_v29  ;;  %v9857_v29 = vld [vmem:[%s10933_s1 + $0x470] sm:$0xff]  }
0x1062   : > { %6727 = vmatprep.subr.bf16.mxu0 %v9810_v30  ;;  %6689 = vmatpush2.bf16.msra.mxu1 %v9811_v52  ;;  %v9858_v30 = vld [vmem:[%s10933_s1 + $0x4f0] sm:$0xff]  }
0x1063   : > { %6690 = vmatprep.subr.bf16.mxu1 %v9819_v25  ;;  %v9859_v52 = vld [vmem:[%s10933_s1 + $0x430] sm:$0xff]  }
0x1064   : > { %v9860_v25 = vld [vmem:[%s10933_s1 + $0x4b0] sm:$0xff]  }
0x1065   : > { %6728 = vmatpush2.bf16.msra.mxu0 %v9808_v31  ;;  %v9861_v31 = vld [vmem:[%s10933_s1 + $0x468] sm:$0xff]  }
0x1066   : > { %6729 = vmatprep.subr.bf16.mxu0 %v9816_v32  ;;  %6691 = vmatpush2.bf16.msra.mxu1 %v9817_v33  ;;  %v9862_v32 = vld [vmem:[%s10933_s1 + $0x4e8] sm:$0xff]  }
0x1067   : > { %6692 = vmatprep.subr.bf16.mxu1 %v9825_v34  ;;  %v9863_v33 = vld [vmem:[%s10933_s1 + $0x428] sm:$0xff]  }
0x1068   : > { %v9864_v34 = vld [vmem:[%s10933_s1 + $0x4a8] sm:$0xff]  }
0x1069   : > { %6730 = vmatpush2.bf16.msra.mxu0 %v9814_v35  ;;  %v9865_v35 = vld [vmem:[%s10933_s1 + $0x460] sm:$0xff]  }
0x106a   : > { %6731 = vmatprep.subr.bf16.mxu0 %v9822_v36  ;;  %6693 = vmatpush2.bf16.msra.mxu1 %v9823_v37  ;;  %v9866_v36 = vld [vmem:[%s10933_s1 + $0x4e0] sm:$0xff]  }
0x106b   : > { %6694 = vmatprep.subr.bf16.mxu1 %v9831_v41  ;;  %v9867_v37 = vld [vmem:[%s10933_s1 + $0x420] sm:$0xff]   ;;  %v9871_v41 = vld [vmem:[%s10933_s1 + $0x418] sm:$0xff]  }
0x106d   : > { %6732 = vmatpush2.bf16.msra.mxu0 %v9820_v38  ;;  %v9868_v38 = vld [vmem:[%s10933_s1 + $0x4a0] sm:$0xff]  }
0x106e   : > { %6733 = vmatprep.subr.bf16.mxu0 %v9828_v39  ;;  %6695 = vmatpush2.bf16.msra.mxu1 %v9829_v44  ;;  %v9869_v39 = vld [vmem:[%s10933_s1 + $0x458] sm:$0xff]   ;;  %v9873_v44 = vld [vmem:[%s10933_s1 + $0x450] sm:$0xff]  }
0x106f   : > { %6696 = vmatprep.subr.bf16.mxu1 %v9837_v46  ;;  %v9875_v46 = vld [vmem:[%s10933_s1 + $0x410] sm:$0xff]  }
0x1071   : > { %6734 = vmatpush2.bf16.msra.mxu0 %v9826_v40  ;;  %v9870_v40 = vld [vmem:[%s10933_s1 + $0x4d8] sm:$0xff]  }
0x1072   : > { %6735 = vmatprep.subr.bf16.mxu0 %v9834_v43  ;;  %6697 = vmatpush2.bf16.msra.mxu1 %v9835_v49  ;;  %v9872_v43 = vld [vmem:[%s10933_s1 + $0x498] sm:$0xff]   ;;  %v9877_v49 = vld [vmem:[%s10933_s1 + $0x448] sm:$0xff]  }
0x1073   : > { %6698 = vmatprep.subr.bf16.mxu1 %v9843_v51  ;;  %v9879_v51 = vld [vmem:[%s10933_s1 + $0x408] sm:$0xff]  }
0x1075   : > { %6736 = vmatpush2.bf16.msra.mxu0 %v9832_v45  ;;  %v9874_v45 = vld [vmem:[%s10933_s1 + $0x4d0] sm:$0xff]  }
0x1076   : > { %6737 = vmatprep.subr.bf16.mxu0 %v9840_v48  ;;  %6699 = vmatpush2.bf16.msra.mxu1 %v9841_v54  ;;  %v9876_v48 = vld [vmem:[%s10933_s1 + $0x490] sm:$0xff]   ;;  %v9881_v54 = vld [vmem:[%s10933_s1 + $0x440] sm:$0xff]  }
0x1077   : > { %6700 = vmatprep.subr.bf16.mxu1 %v9849_v56  ;;  %v9883_v56 = vld [vmem:[%s10933_s1 + $0x400] sm:$0xff]  }
0x1079   : > { %6738 = vmatpush2.bf16.msra.mxu0 %v9838_v50  ;;  %v9878_v50 = vld [vmem:[%s10933_s1 + $0x4c8] sm:$0xff]  }
0x107a   : > { %6739 = vmatprep.subr.bf16.mxu0 %v9846_v53  ;;  %6701 = vmatpush2.bf16.msra.mxu1 %v9847_v59  ;;  %v9880_v53 = vld [vmem:[%s10933_s1 + $0x488] sm:$0xff]  }
0x107b   : > { %8796 = vmatprep.subr.bf16.mxu1 %v9853_v61  ;;  %v8381_v59 = vld [vmem:[%s10714_s12 + $0x10] sm:$0xf] }
0x107c   : > { %v6341_v61 = vrot.slane %v8381_v59, %v10731_v24 }
0x107d   : > { %6740 = vmatpush2.bf16.msra.mxu0 %v9844_v55  ;;  %v9882_v55 = vld [vmem:[%s10933_s1 + $0x4c0] sm:$0xff]  }
0x107e   : > { %6741 = vmatprep.subr.bf16.mxu0 %v9852_v58  ;;  %v9884_v58 = vld [vmem:[%s10933_s1 + $0x480] sm:$0xff]  }
0x1081   : > { %6742 = vmatpush2.bf16.msra.mxu0 %v9850_v60  ;;  %v6333_v60 = vrot.slane %v8381_v59, %v10729_v23 }
0x1082   : > { %8818 = vmatprep.subr.bf16.mxu0 %v9854_v62  ;;  %v6337_v62 = vrot.slane %v8381_v59, %v10733_v26 }
0x10fc   : > { %v8768_v63 = vpop.f32.mrf.mxu0  ;;  %v8790_v0 = vpop.f32.mrf.mxu1 }
0x10fe   : > { %v8769_v3 = vpop.f32.mrf.mxu0  ;;  %v8791_v1 = vpop.f32.mrf.mxu1 }
0x10ff   : > { %v8770_v42 = vadd.f32 %v8769_v3, %v8768_v63  ;;  %v8792_v8 = vadd.f32 %v8791_v1, %v8790_v0  ;;  %v6345_v63 = vrot.slane %v8381_v59, %v10735_v27 }
0x1100   : > { %v8771_v4 = vpop.f32.mrf.mxu0  ;;  %v8793_v6 = vpop.f32.mrf.mxu1 }
0x1101   : > { %v6127_v7 = vadd.f32 %v8770_v42, %v8273_v2 }
0x1102   : > { %v8772_v11 = vpop.f32.mrf.mxu0  ;;  %v8794_v13 = vpop.f32.mrf.mxu1 }
0x1103   : > { %v6167_v14 = vadd.f32 %v8792_v8, %v6127_v7 }
0x1104   : > { %v6251_v16 = vpop.f32.mrf.mxu0 }
0x1105   : > { %8306 = vst.msk [vmem:[%s11096_s24 + $0x18] sm:$0xff] %vm892_vm0, %v6167_v14  ;;  %v6252_v17 = vadd.f32 %v6251_v16, %v6186_v9 }
0x1106   : > { %v6253_v18 = vpop.f32.mrf.mxu0 }
0x1107   : > { %v6254_v19 = vadd.f32 %v6253_v18, %v6190_v15  ;;  %v6258_v20 = vmax.f32 %v6252_v17, 0.0 }
0x1108   : > { %v6255_v57 = vpop.f32.mrf.mxu0 }
0x1109   : > { %v6259_v10 = vmax.f32 %v6254_v19, 0.0  ;;  %v6260_v12 = vpack.c.bf16 %v6258_v20, %v6258_v20  ;;  %v8511_v19 = vld [vmem:[%s10716_s28 + $0x4] ss:$0 sm:$0xff] }
0x110a   : > { %v6256_v21 = vpop.f32.mrf.mxu0 }
0x110b   : > { %v6261_v22 = vpack.c.bf16 %v6259_v10, %v6259_v10 }
0x110d   : > { %6702 = vmatprep.mubr.bf16.mxu1 %v6261_v22  ;;  %6743 = vmatprep.mubr.bf16.mxu0 %v6261_v22 }
0x110e   : > { %6703 = vmatmul.mubr.bf16.vlgmr.msra.gmra.mxu1 %v6260_v12  ;;  %6744 = vmatmul.mubr.bf16.vlgmr.msra.gmra.mxu0 %v6260_v12 }
0x110f   : > { %8797 = vmatpush3.bf16.msra.mxu1 %v9855_v5  ;;  %8819 = vmatpush3.bf16.msra.mxu0 %v9856_v47 }
0x1110   : > { %8798 = vmatprep.subr.bf16.mxu1 %v9857_v29  ;;  %8820 = vmatprep.subr.bf16.mxu0 %v9858_v30 }
0x1113   : > { %8799 = vmatpush3.bf16.msra.mxu1 %v9859_v52  ;;  %8821 = vmatpush3.bf16.msra.mxu0 %v9860_v25 }
0x1114   : > { %8800 = vmatprep.subr.bf16.mxu1 %v9861_v31  ;;  %8822 = vmatprep.subr.bf16.mxu0 %v9862_v32 }
0x1117   : > { %8801 = vmatpush3.bf16.msra.mxu1 %v9863_v33  ;;  %8823 = vmatpush3.bf16.msra.mxu0 %v9864_v34 }
0x1118   : > { %8802 = vmatprep.subr.bf16.mxu1 %v9865_v35  ;;  %8824 = vmatprep.subr.bf16.mxu0 %v9866_v36 }
0x111b   : > { %8803 = vmatpush3.bf16.msra.mxu1 %v9867_v37  ;;  %8825 = vmatpush3.bf16.msra.mxu0 %v9868_v38 }
0x111c   : > { %8804 = vmatprep.subr.bf16.mxu1 %v9869_v39  ;;  %8826 = vmatprep.subr.bf16.mxu0 %v9870_v40 }
0x111f   : > { %8805 = vmatpush3.bf16.msra.mxu1 %v9871_v41  ;;  %8827 = vmatpush3.bf16.msra.mxu0 %v9872_v43 }
0x1120   : > { %8806 = vmatprep.subr.bf16.mxu1 %v9873_v44  ;;  %8828 = vmatprep.subr.bf16.mxu0 %v9874_v45 }
0x1123   : > { %8807 = vmatpush3.bf16.msra.mxu1 %v9875_v46  ;;  %8829 = vmatpush3.bf16.msra.mxu0 %v9876_v48 }
0x1124   : > { %8808 = vmatprep.subr.bf16.mxu1 %v9877_v49  ;;  %8830 = vmatprep.subr.bf16.mxu0 %v9878_v50 }
0x1127   : > { %8809 = vmatpush3.bf16.msra.mxu1 %v9879_v51  ;;  %8831 = vmatpush3.bf16.msra.mxu0 %v9880_v53 }
0x1128   : > { %8810 = vmatprep.subr.bf16.mxu1 %v9881_v54  ;;  %8832 = vmatprep.subr.bf16.mxu0 %v9882_v55 }
0x112b   : > { %8811 = vmatpush3.bf16.msra.mxu1 %v9883_v56  ;;  %8833 = vmatpush3.bf16.msra.mxu0 %v9884_v58 }
0x11ce   : > { %v6704_v0 = vpop.f32.mrf.mxu1  ;;  %v6745_v2 = vpop.f32.mrf.mxu0 }
0x11cf   : > { %v6705_v3 = vadd.f32 %v6704_v0, %v6333_v60  ;;  %v6746_v1 = vadd.f32 %v6745_v2, %v6341_v61 }
0x11d0   : > { %v6706_v28 = vpop.f32.mrf.mxu1  ;;  %v6747_v42 = vpop.f32.mrf.mxu0 }
0x11d1   : > { %v6707_v4 = vadd.f32 %v6706_v28, %v6337_v62  ;;  %v6748_v6 = vadd.f32 %v6747_v42, %v6345_v63  ;;  %v6752_v7 = vmax.f32 %v6705_v3, 0.0  ;;  %v6754_v8 = vmax.f32 %v6746_v1, 0.0 }
0x11d2   : > { %v6708_v9 = vpop.f32.mrf.mxu1  ;;  %v6749_v11 = vpop.f32.mrf.mxu0 }
0x11d3   : > { %v6753_v23 = vmax.f32 %v6707_v4, 0.0  ;;  %v6755_v13 = vmax.f32 %v6748_v6, 0.0  ;;  %v6756_v27 = vpack.c.bf16 %v6752_v7, %v6752_v7  ;;  %v6758_v16 = vpack.c.bf16 %v6754_v8, %v6754_v8 }
0x11d4   : > { %v6709_v24 = vpop.f32.mrf.mxu1  ;;  %v6750_v14 = vpop.f32.mrf.mxu0 }
0x11d5   : > { %v6757_v26 = vpack.c.bf16 %v6753_v23, %v6753_v23  ;;  %v6759_v15 = vpack.c.bf16 %v6755_v13, %v6755_v13 }
0x11d7   : > { %7057 = vmatprep.mubr.bf16.mxu1 %v6757_v26  ;;  %7097 = vmatprep.mubr.bf16.mxu0 %v6759_v15 }
0x11d8   : > { %7058 = vmatmul.mubr.bf16.vlgmr.msra.gmra.mxu1 %v6756_v27  ;;  %7098 = vmatmul.mubr.bf16.vlgmr.msra.gmra.mxu0 %v6758_v16 }
0x1298   : > { %v8812_v17 = vpop.f32.mrf.mxu1  ;;  %v8834_v18 = vpop.f32.mrf.mxu0 }
0x129a   : > { %v8813_v20 = vpop.f32.mrf.mxu1  ;;  %v8835_v57 = vpop.f32.mrf.mxu0 }
0x129b   : > { %v8814_v10 = vadd.f32 %v8813_v20, %v8812_v17  ;;  %v8836_v47 = vadd.f32 %v8835_v57, %v8834_v18 }
0x129c   : > { %v8815_v21 = vpop.f32.mrf.mxu1  ;;  %v8837_v22 = vpop.f32.mrf.mxu0 }
0x129d   : > { %v7060_v5 = vadd.f32 %v8814_v10, %v8511_v19 }
0x129e   : > { %v8816_v12 = vpop.f32.mrf.mxu1  ;;  %v8838_v29 = vpop.f32.mrf.mxu0 }
0x129f   : > { %v7100_v30 = vadd.f32 %v8836_v47, %v7060_v5 }
0x12a1   : > { %8544 = vst.msk [vmem:[%s11096_s24 + $0x20] sm:$0xff] %vm892_vm0, %v7100_v30 }
0x12a2 PF: > { %s11599_s16 = sld [smem:[#allocation31_spill]] }
0x12a3   : > { %s11600_s29 = sld [smem:[#allocation28_spill]] }
0x12a4   : > { %s11601_s30 = sld [smem:[#allocation29_spill]] }
0x12a5   : > { %s11602_s15 = sld [smem:[#allocation32_spill]] }
0x12a8   : > { %p34_p8 = scmp.ge.s32.totalorder %s11599_s16, 4  }
0x12aa   :  { %36 = sbr.rel (!%p34_p8) target bundleno = 19 (0x13), region = 233 }
0x12af   :  { %7129 = vsyncpa [#allocation3], 1 }
0x12b0   :  { %7131 = vsyncpa [#allocation3 + $0x1], 1 }
0x12b1   :  { %7132 = vsyncpa [#allocation5], 1 }
0x12b2   :  { %7133 = vsyncpa [#allocation8], 1 }
0x12b3   :  { %7134 = vsyncpa [#allocation11], 1 }
0x12b4   :  { %7135 = vsyncpa [#allocation14], 1 }
0x12b5   :  { %7137 = vsyncpa [#allocation14 + $0x1], 1 }
0x12b6   :  { %7138 = vsyncpa [#allocation17], 1 }
0x12b7   :  { %7140 = vsyncpa [#allocation17 + $0x1], 1 }
0x12b8   :  { %7141 = vsyncpa [#allocation20], 1 }
0x12b9   :  { %7143 = vsyncpa [#allocation20 + $0x1], 1 }

</bundles_post_ra>
